<compile_context>
chip_gen: v7x
topology: tpu7x:2x2x1
jax: 0.10.0
libtpu: 0.0.40
codegen_flags: <defaults>
</compile_context>

<pallas_src>
import jax
import jax.numpy as jnp
from jax.experimental import pallas as pl
from jax.experimental.pallas import tpu as pltpu


# ------------------------- fused Pallas kernel ----------------------------- #

def _captioning_kernel(cap_ref,                      # SMEM (B, T-1) int32 (scalar prefetch)
                       img_ref, emb_ref, w1_ref, b1_ref,
                       wih_ref, whh_ref, b_ref, w2_hbm, b2_ref,
                       o_ref,
                       x_sc, gx_sc, hs_sc, w2_vmem, w2_sem):
    T, B, V = o_ref.shape
    H = whh_ref.shape[0]

    # --- start the linear2 weight DMA now; it overlaps everything below ---- #
    w2_copy = pltpu.make_async_copy(w2_hbm, w2_vmem, w2_sem)
    w2_copy.start()

    # --- fused linear1: image feature -> LSTM input at t=0 (bf16 MXU) ------ #
    feat = (
        jnp.dot(img_ref[...].astype(jnp.bfloat16), w1_ref[...],
                preferred_element_type=jnp.float32)
        + b1_ref[...]
    )                                                            # (B, E) f32
    x_sc[0:B, :] = feat

    # --- in-kernel embedding gather: row t*B+b = emb[captions[b, t-1]] ------ #
    # (SMEM scalar reads happen before the DMA wait() below.)
    for t in range(1, T):
        for b in range(B):
            tok = cap_ref[b, t - 1]                              # SMEM scalar
            x_sc[pl.ds(t * B + b, 1), :] = emb_ref[pl.ds(tok, 1), :]

    # --- hoisted input projection: one (T*B, E) @ (E, 4H) matmul + bias ----- #
    gx_sc[...] = (
        jnp.dot(x_sc[...].astype(jnp.bfloat16), wih_ref[...],
                preferred_element_type=jnp.float32)
        + b_ref[...]
    )                                                            # (T*B, 4H) f32

    # --- recurrence: only h@Whh + elementwise on the serial path ------------ #
    c = jnp.zeros((B, H), jnp.float32)
    h = jnp.zeros((B, H), jnp.float32)
    for t in range(T):                      # fully unrolled (T small & static)
        gx = gx_sc[t * B:(t + 1) * B, :]                          # (B, 4H) f32
        if t == 0:
            gates = gx                      # h == 0: skip the matmul entirely
        else:
            gates = gx + jnp.dot(h.astype(jnp.bfloat16), whh_ref[...],
                                 preferred_element_type=jnp.float32)
        # PyTorch gate order [i, f, g, o]; elementwise kept in f32.
        i_g = jax.nn.sigmoid(gates[:, 0 * H:1 * H])
        f_g = jax.nn.sigmoid(gates[:, 1 * H:2 * H])
        g_g = jnp.tanh(gates[:, 2 * H:3 * H])
        o_g = jax.nn.sigmoid(gates[:, 3 * H:4 * H])
        c = f_g * c + i_g * g_g
        h = o_g * jnp.tanh(c)
        hs_sc[t * B:(t + 1) * B, :] = h

    # --- hoisted linear2: one batched (T*B, H) @ (H, V) matmul -------------- #
    w2_copy.wait()                          # W2 DMA hidden behind recurrence
    logits = (
        jnp.dot(hs_sc[...].astype(jnp.bfloat16), w2_vmem[...],
                preferred_element_type=jnp.float32)
        + b2_ref[...]
    )                                                            # (T*B, V) f32
    o_ref[...] = logits.reshape(T, B, V)                         # lane-dense V


def fused_captioning_pallas(image_feature, cap_in, kp):
    # image_feature: (B, FT) f32; cap_in: (B, T-1) int32 token ids
    B, FT = image_feature.shape
    Tm1 = cap_in.shape[1]
    T = Tm1 + 1
    Vocab, E = kp["emb"].shape
    H = kp["Whh"].shape[0]
    V = kp["W2"].shape[1]

    def full(shape):
        n = len(shape)
        # index_map receives (grid_i, *scalar_prefetch_refs)
        return pl.BlockSpec(shape, lambda i, cap, n=n: (0,) * n)

    flops = 2 * (B * FT * E + T * B * E * 4 * H
                 + (T - 1) * B * H * 4 * H + T * B * H * V)
    transcendentals = 5 * T * B * H            # 3 sigmoid + 2 tanh per element
    bytes_accessed = (
        image_feature.size * 4 + cap_in.size * 4 + kp["emb"].size * 4
        + kp["W1"].size * 2 + kp["b1"].size * 4
        + kp["Wih"].size * 2 + kp["Whh"].size * 2 + kp["b"].size * 4
        + kp["W2"].size * 2 + kp["b2"].size * 4
        + T * B * V * 4)

    return pl.pallas_call(
        _captioning_kernel,
        out_shape=jax.ShapeDtypeStruct((T, B, V), jnp.float32),
        grid_spec=pltpu.PrefetchScalarGridSpec(
            num_scalar_prefetch=1,               # captions -> SMEM
            grid=(1,),
            in_specs=[
                full((B, FT)),                    # image feature (f32)
                full((Vocab, E)),                 # embedding table (f32)
                full((FT, E)),                    # W1 (bf16)
                full((1, E)),                     # b1 (f32)
                full((E, 4 * H)),                 # Wih (bf16, pre-transposed)
                full((H, 4 * H)),                 # Whh (bf16, pre-transposed)
                full((1, 4 * H)),                 # b_ih + b_hh (f32)
                pl.BlockSpec(memory_space=pl.ANY),  # W2 stays in HBM; manual DMA
                full((1, V)),                     # b2 (f32)
            ],
            out_specs=pl.BlockSpec((T, B, V), lambda i, cap: (0, 0, 0)),
            scratch_shapes=[
                pltpu.VMEM((T * B, E), jnp.float32),       # x_sc: inputs, time-major
                pltpu.VMEM((T * B, 4 * H), jnp.float32),   # gx_sc: x @ Wih + b
                pltpu.VMEM((T * B, H), jnp.float32),       # hs_sc: hidden states
                pltpu.VMEM((H, V), jnp.bfloat16),          # W2 landing buffer
                pltpu.SemaphoreType.DMA(()),               # W2 DMA semaphore
            ],
        ),
        compiler_params=pltpu.CompilerParams(
            dimension_semantics=("arbitrary",)),
        cost_estimate=pl.CostEstimate(
            flops=int(flops), transcendentals=int(transcendentals),
            bytes_accessed=int(bytes_accessed)),
    )(cap_in, image_feature, kp["emb"], kp["W1"], kp["b1"],
      kp["Wih"], kp["Whh"], kp["b"], kp["W2"], kp["b2"])


# ------------------------- model wrapper ----------------------------------- #

def prepare_kernel_params(p):
    """Cast MXU-feeding weights to bf16 once; biases (f32 accum path) stay f32.

    The embedding table is kept f32 so the in-kernel dynamic row gather uses
    plain (unpacked) sublane slices; rows are consumed via the bf16 x@Wih
    matmul anyway.
    """
    return {
        "emb": p["emb"],
        "W1":  p["W1"].astype(jnp.bfloat16),
        "b1":  p["b1"],
        "Wih": p["Wih"].astype(jnp.bfloat16),
        "Whh": p["Whh"].astype(jnp.bfloat16),
        "b":   p["b"],
        "W2":  p["W2"].astype(jnp.bfloat16),
        "b2":  p["b2"],
    }


def lstm_captioning_forward(image_feature, captions, kp):
    # Only captions[:, :-1] ever reaches the LSTM (cat + [:, :-1] in PyTorch);
    # the gather itself happens inside the kernel via scalar prefetch.
    cap_in = captions[:, :-1].astype(jnp.int32)                      # (B, T-1)
    logits_tbv = fused_captioning_pallas(image_feature, cap_in, kp)  # (T, B, V)
    return jnp.transpose(logits_tbv, (1, 2, 0))                      # (B, V, T)


# ------------------------- pure-JAX reference ------------------------------ #

def reference_forward(image_feature, captions, p):
    feat = image_feature @ p["W1"] + p["b1"][0]
    cap_emb = p["emb"][captions]
    inseq = jnp.concatenate([feat[:, None, :], cap_emb], axis=1)[:, :-1, :]
    B, T, E = inseq.shape
    H = p["Whh"].shape[0]

    def step(carry, x):
        h, c = carry
        gates = x @ p["Wih"] + h @ p["Whh"] + p["b"][0]
        i = jax.nn.sigmoid(gates[:, 0 * H:1 * H])
        f = jax.nn.sigmoid(gates[:, 1 * H:2 * H])
        g = jnp.tanh(gates[:, 2 * H:3 * H])
        o = jax.nn.sigmoid(gates[:, 3 * H:4 * H])
        c = f * c + i * g
        h = o * jnp.tanh(c)
        return (h, c), h

    init = (jnp.zeros((B, H), jnp.float32), jnp.zeros((B, H), jnp.float32))
    _, hs = jax.lax.scan(step, init, jnp.transpose(inseq, (1, 0, 2)))
    hs = jnp.transpose(hs, (1, 0, 2))                        # (B, T, H)
    out = hs @ p["W2"] + p["b2"][0]                          # (B, T, V)
    return jnp.transpose(out, (0, 2, 1))                     # (B, V, T)


# ------------------------- main --------------------------------------------- #

if __name__ == "__main__":
    # small, TPU-friendly shapes consistent with the module
    B, FT, E, H, V, SEQ = 8, 128, 128, 128, 128, 8

    key = jax.random.PRNGKey(0)
    ks = jax.random.split(key, 10)
    s = 0.05
    params = {
        "W1":  (jax.random.normal(ks[0], (FT, E)) * s).astype(jnp.float32),
        "b1":  (jax.random.normal(ks[1], (1, E)) * s).astype(jnp.float32),
        "emb": (jax.random.normal(ks[2], (V, E)) * s).astype(jnp.float32),
        # LSTM weights pre-transposed to (in, 4H); bias = b_ih + b_hh combined
        "Wih": (jax.random.normal(ks[3], (E, 4 * H)) * s).astype(jnp.float32),
        "Whh": (jax.random.normal(ks[4], (H, 4 * H)) * s).astype(jnp.float32),
        "b":   (jax.random.normal(ks[5], (1, 4 * H)) * s).astype(jnp.float32),
        "W2":  (jax.random.normal(ks[6], (H, V)) * s).astype(jnp.float32),
        "b2":  (jax.random.normal(ks[7], (1, V)) * s).astype(jnp.float32),
    }
    kparams = prepare_kernel_params(params)

    image_feature = jax.random.normal(ks[8], (B, FT)).astype(jnp.float32)
    captions = jax.random.randint(ks[9], (B, SEQ), 0, V, dtype=jnp.int32)

    fwd = jax.jit(lstm_captioning_forward)
    out = jax.block_until_ready(fwd(image_feature, captions, kparams))
    ref = jax.block_until_ready(
        reference_forward(image_feature, captions, params))

    assert out.shape == (B, V, SEQ), out.shape
    # bf16 MXU operands (f32 accumulation) vs a pure-f32 reference: tolerance
    # loosened accordingly (see review correctness note).
    max_err = float(jnp.max(jnp.abs(out - ref)))
    assert jnp.allclose(out, ref, rtol=2e-2, atol=2e-2), max_err

    print("KERNEL_OK")
</pallas_src>

<mosaic_0001>
module attributes {stable_mosaic.version = 11 : i64} {
  func.func @_captioning_kernel(%arg0: i32, %arg1: memref<8x7xi32, #tpu.memory_space<smem>>, %arg2: memref<8x128xf32, #tpu.memory_space<vmem>>, %arg3: memref<128x128xf32, #tpu.memory_space<vmem>>, %arg4: memref<128x128xbf16, #tpu.memory_space<vmem>>, %arg5: memref<1x128xf32, #tpu.memory_space<vmem>>, %arg6: memref<128x512xbf16, #tpu.memory_space<vmem>>, %arg7: memref<128x512xbf16, #tpu.memory_space<vmem>>, %arg8: memref<1x512xf32, #tpu.memory_space<vmem>>, %arg9: memref<128x128xbf16, #tpu.memory_space<any>>, %arg10: memref<1x128xf32, #tpu.memory_space<vmem>>, %arg11: memref<8x8x128xf32, #tpu.memory_space<vmem>>, %arg12: memref<64x128xf32, #tpu.memory_space<vmem>>, %arg13: memref<64x512xf32, #tpu.memory_space<vmem>>, %arg14: memref<64x128xf32, #tpu.memory_space<vmem>>, %arg15: memref<128x128xbf16, #tpu.memory_space<vmem>>, %arg16: memref<!tpu.dma_semaphore, #tpu.memory_space<semaphore_mem>>) attributes {dimension_semantics = [#tpu.dimension_semantics<arbitrary>], iteration_bounds = array<i64: 1>, scalar_prefetch = 1 : i64, scratch_operands = 5 : i64, tpu.core_type = #tpu.core_type<tc>, window_params = [{pipeline_mode = #tpu.pipeline_mode<synchronous>, transform_indices = @transform_0, window_bounds = array<i64: 8, 128>}, {pipeline_mode = #tpu.pipeline_mode<synchronous>, transform_indices = @transform_1, window_bounds = array<i64: 128, 128>}, {pipeline_mode = #tpu.pipeline_mode<synchronous>, transform_indices = @transform_2, window_bounds = array<i64: 128, 128>}, {pipeline_mode = #tpu.pipeline_mode<synchronous>, transform_indices = @transform_3, window_bounds = array<i64: 1, 128>}, {pipeline_mode = #tpu.pipeline_mode<synchronous>, transform_indices = @transform_4, window_bounds = array<i64: 128, 512>}, {pipeline_mode = #tpu.pipeline_mode<synchronous>, transform_indices = @transform_5, window_bounds = array<i64: 128, 512>}, {pipeline_mode = #tpu.pipeline_mode<synchronous>, transform_indices = @transform_6, window_bounds = array<i64: 1, 512>}, {}, {pipeline_mode = #tpu.pipeline_mode<synchronous>, transform_indices = @transform_8, window_bounds = array<i64: 1, 128>}, {pipeline_mode = #tpu.pipeline_mode<synchronous>, transform_indices = @transform_9, window_bounds = array<i64: 8, 8, 128>}]} {
    tpu.enqueue_dma source(%arg9 : memref<128x128xbf16, #tpu.memory_space<any>>) target(%arg15 : memref<128x128xbf16, #tpu.memory_space<vmem>>) target_semaphore(%arg16 : memref<!tpu.dma_semaphore, #tpu.memory_space<semaphore_mem>>)
    %c0 = arith.constant 0 : index
    %c0_0 = arith.constant 0 : index
    %0 = vector.load %arg2[%c0, %c0_0] : memref<8x128xf32, #tpu.memory_space<vmem>>, vector<8x128xf32>
    %1 = arith.truncf %0 : vector<8x128xf32> to vector<8x128xbf16>
    %c0_1 = arith.constant 0 : index
    %c0_2 = arith.constant 0 : index
    %2 = vector.load %arg4[%c0_1, %c0_2] : memref<128x128xbf16, #tpu.memory_space<vmem>>, vector<128x128xbf16>
    %cst = arith.constant dense<0.000000e+00> : vector<8x128xf32>
    %3 = tpu.matmul %1, %2, %cst {dimension_numbers = #tpu.dot_dimension_numbers<[1], [0], [0], [1], [0, 0, 1, 1], [], []>} : vector<8x128xbf16>, vector<128x128xbf16>, vector<8x128xf32> -> vector<8x128xf32>
    %c0_3 = arith.constant 0 : index
    %c0_4 = arith.constant 0 : index
    %4 = vector.load %arg5[%c0_3, %c0_4] : memref<1x128xf32, #tpu.memory_space<vmem>>, vector<1x128xf32>
    %5 = vector.broadcast %4 : vector<1x128xf32> to vector<8x128xf32>
    %6 = arith.addf %3, %5 : vector<8x128xf32>
    %c0_5 = arith.constant 0 : index
    %c0_6 = arith.constant 0 : index
    %7 = vector.load %arg12[%c0_5, %c0_6] : memref<64x128xf32, #tpu.memory_space<vmem>>, vector<8x128xf32>
    tpu.vector_store %arg12[%c0_5, %c0_6], %6 {strides = array<i32>} : memref<64x128xf32, #tpu.memory_space<vmem>>, vector<8x128xf32>,
    %c0_7 = arith.constant 0 : index
    %c0_8 = arith.constant 0 : index
    %8 = memref.load %arg1[%c0_7, %c0_8] : memref<8x7xi32, #tpu.memory_space<smem>>
    %9 = arith.index_cast %8 : i32 to index
    %c0_9 = arith.constant 0 : index
    %10 = vector.load %arg3[%9, %c0_9] : memref<128x128xf32, #tpu.memory_space<vmem>>, vector<1x128xf32>
    %c8 = arith.constant 8 : index
    %c0_10 = arith.constant 0 : index
    %11 = vector.load %arg12[%c8, %c0_10] : memref<64x128xf32, #tpu.memory_space<vmem>>, vector<1x128xf32>
    tpu.vector_store %arg12[%c8, %c0_10], %10 {strides = array<i32>} : memref<64x128xf32, #tpu.memory_space<vmem>>, vector<1x128xf32>,
    %c1 = arith.constant 1 : index
    %c0_11 = arith.constant 0 : index
    %12 = memref.load %arg1[%c1, %c0_11] : memref<8x7xi32, #tpu.memory_space<smem>>
    %13 = arith.index_cast %12 : i32 to index
    %c0_12 = arith.constant 0 : index
    %14 = vector.load %arg3[%13, %c0_12] : memref<128x128xf32, #tpu.memory_space<vmem>>, vector<1x128xf32>
    %c9 = arith.constant 9 : index
    %c0_13 = arith.constant 0 : index
    %15 = vector.load %arg12[%c9, %c0_13] : memref<64x128xf32, #tpu.memory_space<vmem>>, vector<1x128xf32>
    tpu.vector_store %arg12[%c9, %c0_13], %14 {strides = array<i32>} : memref<64x128xf32, #tpu.memory_space<vmem>>, vector<1x128xf32>,
    %c2 = arith.constant 2 : index
    %c0_14 = arith.constant 0 : index
    %16 = memref.load %arg1[%c2, %c0_14] : memref<8x7xi32, #tpu.memory_space<smem>>
    %17 = arith.index_cast %16 : i32 to index
    %c0_15 = arith.constant 0 : index
    %18 = vector.load %arg3[%17, %c0_15] : memref<128x128xf32, #tpu.memory_space<vmem>>, vector<1x128xf32>
    %c10 = arith.constant 10 : index
    %c0_16 = arith.constant 0 : index
    %19 = vector.load %arg12[%c10, %c0_16] : memref<64x128xf32, #tpu.memory_space<vmem>>, vector<1x128xf32>
    tpu.vector_store %arg12[%c10, %c0_16], %18 {strides = array<i32>} : memref<64x128xf32, #tpu.memory_space<vmem>>, vector<1x128xf32>,
    %c3 = arith.constant 3 : index
    %c0_17 = arith.constant 0 : index
    %20 = memref.load %arg1[%c3, %c0_17] : memref<8x7xi32, #tpu.memory_space<smem>>
    %21 = arith.index_cast %20 : i32 to index
    %c0_18 = arith.constant 0 : index
    %22 = vector.load %arg3[%21, %c0_18] : memref<128x128xf32, #tpu.memory_space<vmem>>, vector<1x128xf32>
    %c11 = arith.constant 11 : index
    %c0_19 = arith.constant 0 : index
    %23 = vector.load %arg12[%c11, %c0_19] : memref<64x128xf32, #tpu.memory_space<vmem>>, vector<1x128xf32>
    tpu.vector_store %arg12[%c11, %c0_19], %22 {strides = array<i32>} : memref<64x128xf32, #tpu.memory_space<vmem>>, vector<1x128xf32>,
    %c4 = arith.constant 4 : index
    %c0_20 = arith.constant 0 : index
    %24 = memref.load %arg1[%c4, %c0_20] : memref<8x7xi32, #tpu.memory_space<smem>>
    %25 = arith.index_cast %24 : i32 to index
    %c0_21 = arith.constant 0 : index
    %26 = vector.load %arg3[%25, %c0_21] : memref<128x128xf32, #tpu.memory_space<vmem>>, vector<1x128xf32>
    %c12 = arith.constant 12 : index
    %c0_22 = arith.constant 0 : index
    %27 = vector.load %arg12[%c12, %c0_22] : memref<64x128xf32, #tpu.memory_space<vmem>>, vector<1x128xf32>
    tpu.vector_store %arg12[%c12, %c0_22], %26 {strides = array<i32>} : memref<64x128xf32, #tpu.memory_space<vmem>>, vector<1x128xf32>,
    %c5 = arith.constant 5 : index
    %c0_23 = arith.constant 0 : index
    %28 = memref.load %arg1[%c5, %c0_23] : memref<8x7xi32, #tpu.memory_space<smem>>
    %29 = arith.index_cast %28 : i32 to index
    %c0_24 = arith.constant 0 : index
    %30 = vector.load %arg3[%29, %c0_24] : memref<128x128xf32, #tpu.memory_space<vmem>>, vector<1x128xf32>
    %c13 = arith.constant 13 : index
    %c0_25 = arith.constant 0 : index
    %31 = vector.load %arg12[%c13, %c0_25] : memref<64x128xf32, #tpu.memory_space<vmem>>, vector<1x128xf32>
    tpu.vector_store %arg12[%c13, %c0_25], %30 {strides = array<i32>} : memref<64x128xf32, #tpu.memory_space<vmem>>, vector<1x128xf32>,
    %c6 = arith.constant 6 : index
    %c0_26 = arith.constant 0 : index
    %32 = memref.load %arg1[%c6, %c0_26] : memref<8x7xi32, #tpu.memory_space<smem>>
    %33 = arith.index_cast %32 : i32 to index
    %c0_27 = arith.constant 0 : index
    %34 = vector.load %arg3[%33, %c0_27] : memref<128x128xf32, #tpu.memory_space<vmem>>, vector<1x128xf32>
    %c14 = arith.constant 14 : index
    %c0_28 = arith.constant 0 : index
    %35 = vector.load %arg12[%c14, %c0_28] : memref<64x128xf32, #tpu.memory_space<vmem>>, vector<1x128xf32>
    tpu.vector_store %arg12[%c14, %c0_28], %34 {strides = array<i32>} : memref<64x128xf32, #tpu.memory_space<vmem>>, vector<1x128xf32>,
    %c7 = arith.constant 7 : index
    %c0_29 = arith.constant 0 : index
    %36 = memref.load %arg1[%c7, %c0_29] : memref<8x7xi32, #tpu.memory_space<smem>>
    %37 = arith.index_cast %36 : i32 to index
    %c0_30 = arith.constant 0 : index
    %38 = vector.load %arg3[%37, %c0_30] : memref<128x128xf32, #tpu.memory_space<vmem>>, vector<1x128xf32>
    %c15 = arith.constant 15 : index
    %c0_31 = arith.constant 0 : index
    %39 = vector.load %arg12[%c15, %c0_31] : memref<64x128xf32, #tpu.memory_space<vmem>>, vector<1x128xf32>
    tpu.vector_store %arg12[%c15, %c0_31], %38 {strides = array<i32>} : memref<64x128xf32, #tpu.memory_space<vmem>>, vector<1x128xf32>,
    %c0_32 = arith.constant 0 : index
    %c1_33 = arith.constant 1 : index
    %40 = memref.load %arg1[%c0_32, %c1_33] : memref<8x7xi32, #tpu.memory_space<smem>>
    %41 = arith.index_cast %40 : i32 to index
    %c0_34 = arith.constant 0 : index
    %42 = vector.load %arg3[%41, %c0_34] : memref<128x128xf32, #tpu.memory_space<vmem>>, vector<1x128xf32>
    %c16 = arith.constant 16 : index
    %c0_35 = arith.constant 0 : index
    %43 = vector.load %arg12[%c16, %c0_35] : memref<64x128xf32, #tpu.memory_space<vmem>>, vector<1x128xf32>
    tpu.vector_store %arg12[%c16, %c0_35], %42 {strides = array<i32>} : memref<64x128xf32, #tpu.memory_space<vmem>>, vector<1x128xf32>,
    %c1_36 = arith.constant 1 : index
    %c1_37 = arith.constant 1 : index
    %44 = memref.load %arg1[%c1_36, %c1_37] : memref<8x7xi32, #tpu.memory_space<smem>>
    %45 = arith.index_cast %44 : i32 to index
    %c0_38 = arith.constant 0 : index
    %46 = vector.load %arg3[%45, %c0_38] : memref<128x128xf32, #tpu.memory_space<vmem>>, vector<1x128xf32>
    %c17 = arith.constant 17 : index
    %c0_39 = arith.constant 0 : index
    %47 = vector.load %arg12[%c17, %c0_39] : memref<64x128xf32, #tpu.memory_space<vmem>>, vector<1x128xf32>
    tpu.vector_store %arg12[%c17, %c0_39], %46 {strides = array<i32>} : memref<64x128xf32, #tpu.memory_space<vmem>>, vector<1x128xf32>,
    %c2_40 = arith.constant 2 : index
    %c1_41 = arith.constant 1 : index
    %48 = memref.load %arg1[%c2_40, %c1_41] : memref<8x7xi32, #tpu.memory_space<smem>>
    %49 = arith.index_cast %48 : i32 to index
    %c0_42 = arith.constant 0 : index
    %50 = vector.load %arg3[%49, %c0_42] : memref<128x128xf32, #tpu.memory_space<vmem>>, vector<1x128xf32>
    %c18 = arith.constant 18 : index
    %c0_43 = arith.constant 0 : index
    %51 = vector.load %arg12[%c18, %c0_43] : memref<64x128xf32, #tpu.memory_space<vmem>>, vector<1x128xf32>
    tpu.vector_store %arg12[%c18, %c0_43], %50 {strides = array<i32>} : memref<64x128xf32, #tpu.memory_space<vmem>>, vector<1x128xf32>,
    %c3_44 = arith.constant 3 : index
    %c1_45 = arith.constant 1 : index
    %52 = memref.load %arg1[%c3_44, %c1_45] : memref<8x7xi32, #tpu.memory_space<smem>>
    %53 = arith.index_cast %52 : i32 to index
    %c0_46 = arith.constant 0 : index
    %54 = vector.load %arg3[%53, %c0_46] : memref<128x128xf32, #tpu.memory_space<vmem>>, vector<1x128xf32>
    %c19 = arith.constant 19 : index
    %c0_47 = arith.constant 0 : index
    %55 = vector.load %arg12[%c19, %c0_47] : memref<64x128xf32, #tpu.memory_space<vmem>>, vector<1x128xf32>
    tpu.vector_store %arg12[%c19, %c0_47], %54 {strides = array<i32>} : memref<64x128xf32, #tpu.memory_space<vmem>>, vector<1x128xf32>,
    %c4_48 = arith.constant 4 : index
    %c1_49 = arith.constant 1 : index
    %56 = memref.load %arg1[%c4_48, %c1_49] : memref<8x7xi32, #tpu.memory_space<smem>>
    %57 = arith.index_cast %56 : i32 to index
    %c0_50 = arith.constant 0 : index
    %58 = vector.load %arg3[%57, %c0_50] : memref<128x128xf32, #tpu.memory_space<vmem>>, vector<1x128xf32>
    %c20 = arith.constant 20 : index
    %c0_51 = arith.constant 0 : index
    %59 = vector.load %arg12[%c20, %c0_51] : memref<64x128xf32, #tpu.memory_space<vmem>>, vector<1x128xf32>
    tpu.vector_store %arg12[%c20, %c0_51], %58 {strides = array<i32>} : memref<64x128xf32, #tpu.memory_space<vmem>>, vector<1x128xf32>,
    %c5_52 = arith.constant 5 : index
    %c1_53 = arith.constant 1 : index
    %60 = memref.load %arg1[%c5_52, %c1_53] : memref<8x7xi32, #tpu.memory_space<smem>>
    %61 = arith.index_cast %60 : i32 to index
    %c0_54 = arith.constant 0 : index
    %62 = vector.load %arg3[%61, %c0_54] : memref<128x128xf32, #tpu.memory_space<vmem>>, vector<1x128xf32>
    %c21 = arith.constant 21 : index
    %c0_55 = arith.constant 0 : index
    %63 = vector.load %arg12[%c21, %c0_55] : memref<64x128xf32, #tpu.memory_space<vmem>>, vector<1x128xf32>
    tpu.vector_store %arg12[%c21, %c0_55], %62 {strides = array<i32>} : memref<64x128xf32, #tpu.memory_space<vmem>>, vector<1x128xf32>,
    %c6_56 = arith.constant 6 : index
    %c1_57 = arith.constant 1 : index
    %64 = memref.load %arg1[%c6_56, %c1_57] : memref<8x7xi32, #tpu.memory_space<smem>>
    %65 = arith.index_cast %64 : i32 to index
    %c0_58 = arith.constant 0 : index
    %66 = vector.load %arg3[%65, %c0_58] : memref<128x128xf32, #tpu.memory_space<vmem>>, vector<1x128xf32>
    %c22 = arith.constant 22 : index
    %c0_59 = arith.constant 0 : index
    %67 = vector.load %arg12[%c22, %c0_59] : memref<64x128xf32, #tpu.memory_space<vmem>>, vector<1x128xf32>
    tpu.vector_store %arg12[%c22, %c0_59], %66 {strides = array<i32>} : memref<64x128xf32, #tpu.memory_space<vmem>>, vector<1x128xf32>,
    %c7_60 = arith.constant 7 : index
    %c1_61 = arith.constant 1 : index
    %68 = memref.load %arg1[%c7_60, %c1_61] : memref<8x7xi32, #tpu.memory_space<smem>>
    %69 = arith.index_cast %68 : i32 to index
    %c0_62 = arith.constant 0 : index
    %70 = vector.load %arg3[%69, %c0_62] : memref<128x128xf32, #tpu.memory_space<vmem>>, vector<1x128xf32>
    %c23 = arith.constant 23 : index
    %c0_63 = arith.constant 0 : index
    %71 = vector.load %arg12[%c23, %c0_63] : memref<64x128xf32, #tpu.memory_space<vmem>>, vector<1x128xf32>
    tpu.vector_store %arg12[%c23, %c0_63], %70 {strides = array<i32>} : memref<64x128xf32, #tpu.memory_space<vmem>>, vector<1x128xf32>,
    %c0_64 = arith.constant 0 : index
    %c2_65 = arith.constant 2 : index
    %72 = memref.load %arg1[%c0_64, %c2_65] : memref<8x7xi32, #tpu.memory_space<smem>>
    %73 = arith.index_cast %72 : i32 to index
    %c0_66 = arith.constant 0 : index
    %74 = vector.load %arg3[%73, %c0_66] : memref<128x128xf32, #tpu.memory_space<vmem>>, vector<1x128xf32>
    %c24 = arith.constant 24 : index
    %c0_67 = arith.constant 0 : index
    %75 = vector.load %arg12[%c24, %c0_67] : memref<64x128xf32, #tpu.memory_space<vmem>>, vector<1x128xf32>
    tpu.vector_store %arg12[%c24, %c0_67], %74 {strides = array<i32>} : memref<64x128xf32, #tpu.memory_space<vmem>>, vector<1x128xf32>,
    %c1_68 = arith.constant 1 : index
    %c2_69 = arith.constant 2 : index
    %76 = memref.load %arg1[%c1_68, %c2_69] : memref<8x7xi32, #tpu.memory_space<smem>>
    %77 = arith.index_cast %76 : i32 to index
    %c0_70 = arith.constant 0 : index
    %78 = vector.load %arg3[%77, %c0_70] : memref<128x128xf32, #tpu.memory_space<vmem>>, vector<1x128xf32>
    %c25 = arith.constant 25 : index
    %c0_71 = arith.constant 0 : index
    %79 = vector.load %arg12[%c25, %c0_71] : memref<64x128xf32, #tpu.memory_space<vmem>>, vector<1x128xf32>
    tpu.vector_store %arg12[%c25, %c0_71], %78 {strides = array<i32>} : memref<64x128xf32, #tpu.memory_space<vmem>>, vector<1x128xf32>,
    %c2_72 = arith.constant 2 : index
    %c2_73 = arith.constant 2 : index
    %80 = memref.load %arg1[%c2_72, %c2_73] : memref<8x7xi32, #tpu.memory_space<smem>>
    %81 = arith.index_cast %80 : i32 to index
    %c0_74 = arith.constant 0 : index
    %82 = vector.load %arg3[%81, %c0_74] : memref<128x128xf32, #tpu.memory_space<vmem>>, vector<1x128xf32>
    %c26 = arith.constant 26 : index
    %c0_75 = arith.constant 0 : index
    %83 = vector.load %arg12[%c26, %c0_75] : memref<64x128xf32, #tpu.memory_space<vmem>>, vector<1x128xf32>
    tpu.vector_store %arg12[%c26, %c0_75], %82 {strides = array<i32>} : memref<64x128xf32, #tpu.memory_space<vmem>>, vector<1x128xf32>,
    %c3_76 = arith.constant 3 : index
    %c2_77 = arith.constant 2 : index
    %84 = memref.load %arg1[%c3_76, %c2_77] : memref<8x7xi32, #tpu.memory_space<smem>>
    %85 = arith.index_cast %84 : i32 to index
    %c0_78 = arith.constant 0 : index
    %86 = vector.load %arg3[%85, %c0_78] : memref<128x128xf32, #tpu.memory_space<vmem>>, vector<1x128xf32>
    %c27 = arith.constant 27 : index
    %c0_79 = arith.constant 0 : index
    %87 = vector.load %arg12[%c27, %c0_79] : memref<64x128xf32, #tpu.memory_space<vmem>>, vector<1x128xf32>
    tpu.vector_store %arg12[%c27, %c0_79], %86 {strides = array<i32>} : memref<64x128xf32, #tpu.memory_space<vmem>>, vector<1x128xf32>,
    %c4_80 = arith.constant 4 : index
    %c2_81 = arith.constant 2 : index
    %88 = memref.load %arg1[%c4_80, %c2_81] : memref<8x7xi32, #tpu.memory_space<smem>>
    %89 = arith.index_cast %88 : i32 to index
    %c0_82 = arith.constant 0 : index
    %90 = vector.load %arg3[%89, %c0_82] : memref<128x128xf32, #tpu.memory_space<vmem>>, vector<1x128xf32>
    %c28 = arith.constant 28 : index
    %c0_83 = arith.constant 0 : index
    %91 = vector.load %arg12[%c28, %c0_83] : memref<64x128xf32, #tpu.memory_space<vmem>>, vector<1x128xf32>
    tpu.vector_store %arg12[%c28, %c0_83], %90 {strides = array<i32>} : memref<64x128xf32, #tpu.memory_space<vmem>>, vector<1x128xf32>,
    %c5_84 = arith.constant 5 : index
    %c2_85 = arith.constant 2 : index
    %92 = memref.load %arg1[%c5_84, %c2_85] : memref<8x7xi32, #tpu.memory_space<smem>>
    %93 = arith.index_cast %92 : i32 to index
    %c0_86 = arith.constant 0 : index
    %94 = vector.load %arg3[%93, %c0_86] : memref<128x128xf32, #tpu.memory_space<vmem>>, vector<1x128xf32>
    %c29 = arith.constant 29 : index
    %c0_87 = arith.constant 0 : index
    %95 = vector.load %arg12[%c29, %c0_87] : memref<64x128xf32, #tpu.memory_space<vmem>>, vector<1x128xf32>
    tpu.vector_store %arg12[%c29, %c0_87], %94 {strides = array<i32>} : memref<64x128xf32, #tpu.memory_space<vmem>>, vector<1x128xf32>,
    %c6_88 = arith.constant 6 : index
    %c2_89 = arith.constant 2 : index
    %96 = memref.load %arg1[%c6_88, %c2_89] : memref<8x7xi32, #tpu.memory_space<smem>>
    %97 = arith.index_cast %96 : i32 to index
    %c0_90 = arith.constant 0 : index
    %98 = vector.load %arg3[%97, %c0_90] : memref<128x128xf32, #tpu.memory_space<vmem>>, vector<1x128xf32>
    %c30 = arith.constant 30 : index
    %c0_91 = arith.constant 0 : index
    %99 = vector.load %arg12[%c30, %c0_91] : memref<64x128xf32, #tpu.memory_space<vmem>>, vector<1x128xf32>
    tpu.vector_store %arg12[%c30, %c0_91], %98 {strides = array<i32>} : memref<64x128xf32, #tpu.memory_space<vmem>>, vector<1x128xf32>,
    %c7_92 = arith.constant 7 : index
    %c2_93 = arith.constant 2 : index
    %100 = memref.load %arg1[%c7_92, %c2_93] : memref<8x7xi32, #tpu.memory_space<smem>>
    %101 = arith.index_cast %100 : i32 to index
    %c0_94 = arith.constant 0 : index
    %102 = vector.load %arg3[%101, %c0_94] : memref<128x128xf32, #tpu.memory_space<vmem>>, vector<1x128xf32>
    %c31 = arith.constant 31 : index
    %c0_95 = arith.constant 0 : index
    %103 = vector.load %arg12[%c31, %c0_95] : memref<64x128xf32, #tpu.memory_space<vmem>>, vector<1x128xf32>
    tpu.vector_store %arg12[%c31, %c0_95], %102 {strides = array<i32>} : memref<64x128xf32, #tpu.memory_space<vmem>>, vector<1x128xf32>,
    %c0_96 = arith.constant 0 : index
    %c3_97 = arith.constant 3 : index
    %104 = memref.load %arg1[%c0_96, %c3_97] : memref<8x7xi32, #tpu.memory_space<smem>>
    %105 = arith.index_cast %104 : i32 to index
    %c0_98 = arith.constant 0 : index
    %106 = vector.load %arg3[%105, %c0_98] : memref<128x128xf32, #tpu.memory_space<vmem>>, vector<1x128xf32>
    %c32 = arith.constant 32 : index
    %c0_99 = arith.constant 0 : index
    %107 = vector.load %arg12[%c32, %c0_99] : memref<64x128xf32, #tpu.memory_space<vmem>>, vector<1x128xf32>
    tpu.vector_store %arg12[%c32, %c0_99], %106 {strides = array<i32>} : memref<64x128xf32, #tpu.memory_space<vmem>>, vector<1x128xf32>,
    %c1_100 = arith.constant 1 : index
    %c3_101 = arith.constant 3 : index
    %108 = memref.load %arg1[%c1_100, %c3_101] : memref<8x7xi32, #tpu.memory_space<smem>>
    %109 = arith.index_cast %108 : i32 to index
    %c0_102 = arith.constant 0 : index
    %110 = vector.load %arg3[%109, %c0_102] : memref<128x128xf32, #tpu.memory_space<vmem>>, vector<1x128xf32>
    %c33 = arith.constant 33 : index
    %c0_103 = arith.constant 0 : index
    %111 = vector.load %arg12[%c33, %c0_103] : memref<64x128xf32, #tpu.memory_space<vmem>>, vector<1x128xf32>
    tpu.vector_store %arg12[%c33, %c0_103], %110 {strides = array<i32>} : memref<64x128xf32, #tpu.memory_space<vmem>>, vector<1x128xf32>,
    %c2_104 = arith.constant 2 : index
    %c3_105 = arith.constant 3 : index
    %112 = memref.load %arg1[%c2_104, %c3_105] : memref<8x7xi32, #tpu.memory_space<smem>>
    %113 = arith.index_cast %112 : i32 to index
    %c0_106 = arith.constant 0 : index
    %114 = vector.load %arg3[%113, %c0_106] : memref<128x128xf32, #tpu.memory_space<vmem>>, vector<1x128xf32>
    %c34 = arith.constant 34 : index
    %c0_107 = arith.constant 0 : index
    %115 = vector.load %arg12[%c34, %c0_107] : memref<64x128xf32, #tpu.memory_space<vmem>>, vector<1x128xf32>
    tpu.vector_store %arg12[%c34, %c0_107], %114 {strides = array<i32>} : memref<64x128xf32, #tpu.memory_space<vmem>>, vector<1x128xf32>,
    %c3_108 = arith.constant 3 : index
    %c3_109 = arith.constant 3 : index
    %116 = memref.load %arg1[%c3_108, %c3_109] : memref<8x7xi32, #tpu.memory_space<smem>>
    %117 = arith.index_cast %116 : i32 to index
    %c0_110 = arith.constant 0 : index
    %118 = vector.load %arg3[%117, %c0_110] : memref<128x128xf32, #tpu.memory_space<vmem>>, vector<1x128xf32>
    %c35 = arith.constant 35 : index
    %c0_111 = arith.constant 0 : index
    %119 = vector.load %arg12[%c35, %c0_111] : memref<64x128xf32, #tpu.memory_space<vmem>>, vector<1x128xf32>
    tpu.vector_store %arg12[%c35, %c0_111], %118 {strides = array<i32>} : memref<64x128xf32, #tpu.memory_space<vmem>>, vector<1x128xf32>,
    %c4_112 = arith.constant 4 : index
    %c3_113 = arith.constant 3 : index
    %120 = memref.load %arg1[%c4_112, %c3_113] : memref<8x7xi32, #tpu.memory_space<smem>>
    %121 = arith.index_cast %120 : i32 to index
    %c0_114 = arith.constant 0 : index
    %122 = vector.load %arg3[%121, %c0_114] : memref<128x128xf32, #tpu.memory_space<vmem>>, vector<1x128xf32>
    %c36 = arith.constant 36 : index
    %c0_115 = arith.constant 0 : index
    %123 = vector.load %arg12[%c36, %c0_115] : memref<64x128xf32, #tpu.memory_space<vmem>>, vector<1x128xf32>
    tpu.vector_store %arg12[%c36, %c0_115], %122 {strides = array<i32>} : memref<64x128xf32, #tpu.memory_space<vmem>>, vector<1x128xf32>,
    %c5_116 = arith.constant 5 : index
    %c3_117 = arith.constant 3 : index
    %124 = memref.load %arg1[%c5_116, %c3_117] : memref<8x7xi32, #tpu.memory_space<smem>>
    %125 = arith.index_cast %124 : i32 to index
    %c0_118 = arith.constant 0 : index
    %126 = vector.load %arg3[%125, %c0_118] : memref<128x128xf32, #tpu.memory_space<vmem>>, vector<1x128xf32>
    %c37 = arith.constant 37 : index
    %c0_119 = arith.constant 0 : index
    %127 = vector.load %arg12[%c37, %c0_119] : memref<64x128xf32, #tpu.memory_space<vmem>>, vector<1x128xf32>
    tpu.vector_store %arg12[%c37, %c0_119], %126 {strides = array<i32>} : memref<64x128xf32, #tpu.memory_space<vmem>>, vector<1x128xf32>,
    %c6_120 = arith.constant 6 : index
    %c3_121 = arith.constant 3 : index
    %128 = memref.load %arg1[%c6_120, %c3_121] : memref<8x7xi32, #tpu.memory_space<smem>>
    %129 = arith.index_cast %128 : i32 to index
    %c0_122 = arith.constant 0 : index
    %130 = vector.load %arg3[%129, %c0_122] : memref<128x128xf32, #tpu.memory_space<vmem>>, vector<1x128xf32>
    %c38 = arith.constant 38 : index
    %c0_123 = arith.constant 0 : index
    %131 = vector.load %arg12[%c38, %c0_123] : memref<64x128xf32, #tpu.memory_space<vmem>>, vector<1x128xf32>
    tpu.vector_store %arg12[%c38, %c0_123], %130 {strides = array<i32>} : memref<64x128xf32, #tpu.memory_space<vmem>>, vector<1x128xf32>,
    %c7_124 = arith.constant 7 : index
    %c3_125 = arith.constant 3 : index
    %132 = memref.load %arg1[%c7_124, %c3_125] : memref<8x7xi32, #tpu.memory_space<smem>>
    %133 = arith.index_cast %132 : i32 to index
    %c0_126 = arith.constant 0 : index
    %134 = vector.load %arg3[%133, %c0_126] : memref<128x128xf32, #tpu.memory_space<vmem>>, vector<1x128xf32>
    %c39 = arith.constant 39 : index
    %c0_127 = arith.constant 0 : index
    %135 = vector.load %arg12[%c39, %c0_127] : memref<64x128xf32, #tpu.memory_space<vmem>>, vector<1x128xf32>
    tpu.vector_store %arg12[%c39, %c0_127], %134 {strides = array<i32>} : memref<64x128xf32, #tpu.memory_space<vmem>>, vector<1x128xf32>,
    %c0_128 = arith.constant 0 : index
    %c4_129 = arith.constant 4 : index
    %136 = memref.load %arg1[%c0_128, %c4_129] : memref<8x7xi32, #tpu.memory_space<smem>>
    %137 = arith.index_cast %136 : i32 to index
    %c0_130 = arith.constant 0 : index
    %138 = vector.load %arg3[%137, %c0_130] : memref<128x128xf32, #tpu.memory_space<vmem>>, vector<1x128xf32>
    %c40 = arith.constant 40 : index
    %c0_131 = arith.constant 0 : index
    %139 = vector.load %arg12[%c40, %c0_131] : memref<64x128xf32, #tpu.memory_space<vmem>>, vector<1x128xf32>
    tpu.vector_store %arg12[%c40, %c0_131], %138 {strides = array<i32>} : memref<64x128xf32, #tpu.memory_space<vmem>>, vector<1x128xf32>,
    %c1_132 = arith.constant 1 : index
    %c4_133 = arith.constant 4 : index
    %140 = memref.load %arg1[%c1_132, %c4_133] : memref<8x7xi32, #tpu.memory_space<smem>>
    %141 = arith.index_cast %140 : i32 to index
    %c0_134 = arith.constant 0 : index
    %142 = vector.load %arg3[%141, %c0_134] : memref<128x128xf32, #tpu.memory_space<vmem>>, vector<1x128xf32>
    %c41 = arith.constant 41 : index
    %c0_135 = arith.constant 0 : index
    %143 = vector.load %arg12[%c41, %c0_135] : memref<64x128xf32, #tpu.memory_space<vmem>>, vector<1x128xf32>
    tpu.vector_store %arg12[%c41, %c0_135], %142 {strides = array<i32>} : memref<64x128xf32, #tpu.memory_space<vmem>>, vector<1x128xf32>,
    %c2_136 = arith.constant 2 : index
    %c4_137 = arith.constant 4 : index
    %144 = memref.load %arg1[%c2_136, %c4_137] : memref<8x7xi32, #tpu.memory_space<smem>>
    %145 = arith.index_cast %144 : i32 to index
    %c0_138 = arith.constant 0 : index
    %146 = vector.load %arg3[%145, %c0_138] : memref<128x128xf32, #tpu.memory_space<vmem>>, vector<1x128xf32>
    %c42 = arith.constant 42 : index
    %c0_139 = arith.constant 0 : index
    %147 = vector.load %arg12[%c42, %c0_139] : memref<64x128xf32, #tpu.memory_space<vmem>>, vector<1x128xf32>
    tpu.vector_store %arg12[%c42, %c0_139], %146 {strides = array<i32>} : memref<64x128xf32, #tpu.memory_space<vmem>>, vector<1x128xf32>,
    %c3_140 = arith.constant 3 : index
    %c4_141 = arith.constant 4 : index
    %148 = memref.load %arg1[%c3_140, %c4_141] : memref<8x7xi32, #tpu.memory_space<smem>>
    %149 = arith.index_cast %148 : i32 to index
    %c0_142 = arith.constant 0 : index
    %150 = vector.load %arg3[%149, %c0_142] : memref<128x128xf32, #tpu.memory_space<vmem>>, vector<1x128xf32>
    %c43 = arith.constant 43 : index
    %c0_143 = arith.constant 0 : index
    %151 = vector.load %arg12[%c43, %c0_143] : memref<64x128xf32, #tpu.memory_space<vmem>>, vector<1x128xf32>
    tpu.vector_store %arg12[%c43, %c0_143], %150 {strides = array<i32>} : memref<64x128xf32, #tpu.memory_space<vmem>>, vector<1x128xf32>,
    %c4_144 = arith.constant 4 : index
    %c4_145 = arith.constant 4 : index
    %152 = memref.load %arg1[%c4_144, %c4_145] : memref<8x7xi32, #tpu.memory_space<smem>>
    %153 = arith.index_cast %152 : i32 to index
    %c0_146 = arith.constant 0 : index
    %154 = vector.load %arg3[%153, %c0_146] : memref<128x128xf32, #tpu.memory_space<vmem>>, vector<1x128xf32>
    %c44 = arith.constant 44 : index
    %c0_147 = arith.constant 0 : index
    %155 = vector.load %arg12[%c44, %c0_147] : memref<64x128xf32, #tpu.memory_space<vmem>>, vector<1x128xf32>
    tpu.vector_store %arg12[%c44, %c0_147], %154 {strides = array<i32>} : memref<64x128xf32, #tpu.memory_space<vmem>>, vector<1x128xf32>,
    %c5_148 = arith.constant 5 : index
    %c4_149 = arith.constant 4 : index
    %156 = memref.load %arg1[%c5_148, %c4_149] : memref<8x7xi32, #tpu.memory_space<smem>>
    %157 = arith.index_cast %156 : i32 to index
    %c0_150 = arith.constant 0 : index
    %158 = vector.load %arg3[%157, %c0_150] : memref<128x128xf32, #tpu.memory_space<vmem>>, vector<1x128xf32>
    %c45 = arith.constant 45 : index
    %c0_151 = arith.constant 0 : index
    %159 = vector.load %arg12[%c45, %c0_151] : memref<64x128xf32, #tpu.memory_space<vmem>>, vector<1x128xf32>
    tpu.vector_store %arg12[%c45, %c0_151], %158 {strides = array<i32>} : memref<64x128xf32, #tpu.memory_space<vmem>>, vector<1x128xf32>,
    %c6_152 = arith.constant 6 : index
    %c4_153 = arith.constant 4 : index
    %160 = memref.load %arg1[%c6_152, %c4_153] : memref<8x7xi32, #tpu.memory_space<smem>>
    %161 = arith.index_cast %160 : i32 to index
    %c0_154 = arith.constant 0 : index
    %162 = vector.load %arg3[%161, %c0_154] : memref<128x128xf32, #tpu.memory_space<vmem>>, vector<1x128xf32>
    %c46 = arith.constant 46 : index
    %c0_155 = arith.constant 0 : index
    %163 = vector.load %arg12[%c46, %c0_155] : memref<64x128xf32, #tpu.memory_space<vmem>>, vector<1x128xf32>
    tpu.vector_store %arg12[%c46, %c0_155], %162 {strides = array<i32>} : memref<64x128xf32, #tpu.memory_space<vmem>>, vector<1x128xf32>,
    %c7_156 = arith.constant 7 : index
    %c4_157 = arith.constant 4 : index
    %164 = memref.load %arg1[%c7_156, %c4_157] : memref<8x7xi32, #tpu.memory_space<smem>>
    %165 = arith.index_cast %164 : i32 to index
    %c0_158 = arith.constant 0 : index
    %166 = vector.load %arg3[%165, %c0_158] : memref<128x128xf32, #tpu.memory_space<vmem>>, vector<1x128xf32>
    %c47 = arith.constant 47 : index
    %c0_159 = arith.constant 0 : index
    %167 = vector.load %arg12[%c47, %c0_159] : memref<64x128xf32, #tpu.memory_space<vmem>>, vector<1x128xf32>
    tpu.vector_store %arg12[%c47, %c0_159], %166 {strides = array<i32>} : memref<64x128xf32, #tpu.memory_space<vmem>>, vector<1x128xf32>,
    %c0_160 = arith.constant 0 : index
    %c5_161 = arith.constant 5 : index
    %168 = memref.load %arg1[%c0_160, %c5_161] : memref<8x7xi32, #tpu.memory_space<smem>>
    %169 = arith.index_cast %168 : i32 to index
    %c0_162 = arith.constant 0 : index
    %170 = vector.load %arg3[%169, %c0_162] : memref<128x128xf32, #tpu.memory_space<vmem>>, vector<1x128xf32>
    %c48 = arith.constant 48 : index
    %c0_163 = arith.constant 0 : index
    %171 = vector.load %arg12[%c48, %c0_163] : memref<64x128xf32, #tpu.memory_space<vmem>>, vector<1x128xf32>
    tpu.vector_store %arg12[%c48, %c0_163], %170 {strides = array<i32>} : memref<64x128xf32, #tpu.memory_space<vmem>>, vector<1x128xf32>,
    %c1_164 = arith.constant 1 : index
    %c5_165 = arith.constant 5 : index
    %172 = memref.load %arg1[%c1_164, %c5_165] : memref<8x7xi32, #tpu.memory_space<smem>>
    %173 = arith.index_cast %172 : i32 to index
    %c0_166 = arith.constant 0 : index
    %174 = vector.load %arg3[%173, %c0_166] : memref<128x128xf32, #tpu.memory_space<vmem>>, vector<1x128xf32>
    %c49 = arith.constant 49 : index
    %c0_167 = arith.constant 0 : index
    %175 = vector.load %arg12[%c49, %c0_167] : memref<64x128xf32, #tpu.memory_space<vmem>>, vector<1x128xf32>
    tpu.vector_store %arg12[%c49, %c0_167], %174 {strides = array<i32>} : memref<64x128xf32, #tpu.memory_space<vmem>>, vector<1x128xf32>,
    %c2_168 = arith.constant 2 : index
    %c5_169 = arith.constant 5 : index
    %176 = memref.load %arg1[%c2_168, %c5_169] : memref<8x7xi32, #tpu.memory_space<smem>>
    %177 = arith.index_cast %176 : i32 to index
    %c0_170 = arith.constant 0 : index
    %178 = vector.load %arg3[%177, %c0_170] : memref<128x128xf32, #tpu.memory_space<vmem>>, vector<1x128xf32>
    %c50 = arith.constant 50 : index
    %c0_171 = arith.constant 0 : index
    %179 = vector.load %arg12[%c50, %c0_171] : memref<64x128xf32, #tpu.memory_space<vmem>>, vector<1x128xf32>
    tpu.vector_store %arg12[%c50, %c0_171], %178 {strides = array<i32>} : memref<64x128xf32, #tpu.memory_space<vmem>>, vector<1x128xf32>,
    %c3_172 = arith.constant 3 : index
    %c5_173 = arith.constant 5 : index
    %180 = memref.load %arg1[%c3_172, %c5_173] : memref<8x7xi32, #tpu.memory_space<smem>>
    %181 = arith.index_cast %180 : i32 to index
    %c0_174 = arith.constant 0 : index
    %182 = vector.load %arg3[%181, %c0_174] : memref<128x128xf32, #tpu.memory_space<vmem>>, vector<1x128xf32>
    %c51 = arith.constant 51 : index
    %c0_175 = arith.constant 0 : index
    %183 = vector.load %arg12[%c51, %c0_175] : memref<64x128xf32, #tpu.memory_space<vmem>>, vector<1x128xf32>
    tpu.vector_store %arg12[%c51, %c0_175], %182 {strides = array<i32>} : memref<64x128xf32, #tpu.memory_space<vmem>>, vector<1x128xf32>,
    %c4_176 = arith.constant 4 : index
    %c5_177 = arith.constant 5 : index
    %184 = memref.load %arg1[%c4_176, %c5_177] : memref<8x7xi32, #tpu.memory_space<smem>>
    %185 = arith.index_cast %184 : i32 to index
    %c0_178 = arith.constant 0 : index
    %186 = vector.load %arg3[%185, %c0_178] : memref<128x128xf32, #tpu.memory_space<vmem>>, vector<1x128xf32>
    %c52 = arith.constant 52 : index
    %c0_179 = arith.constant 0 : index
    %187 = vector.load %arg12[%c52, %c0_179] : memref<64x128xf32, #tpu.memory_space<vmem>>, vector<1x128xf32>
    tpu.vector_store %arg12[%c52, %c0_179], %186 {strides = array<i32>} : memref<64x128xf32, #tpu.memory_space<vmem>>, vector<1x128xf32>,
    %c5_180 = arith.constant 5 : index
    %c5_181 = arith.constant 5 : index
    %188 = memref.load %arg1[%c5_180, %c5_181] : memref<8x7xi32, #tpu.memory_space<smem>>
    %189 = arith.index_cast %188 : i32 to index
    %c0_182 = arith.constant 0 : index
    %190 = vector.load %arg3[%189, %c0_182] : memref<128x128xf32, #tpu.memory_space<vmem>>, vector<1x128xf32>
    %c53 = arith.constant 53 : index
    %c0_183 = arith.constant 0 : index
    %191 = vector.load %arg12[%c53, %c0_183] : memref<64x128xf32, #tpu.memory_space<vmem>>, vector<1x128xf32>
    tpu.vector_store %arg12[%c53, %c0_183], %190 {strides = array<i32>} : memref<64x128xf32, #tpu.memory_space<vmem>>, vector<1x128xf32>,
    %c6_184 = arith.constant 6 : index
    %c5_185 = arith.constant 5 : index
    %192 = memref.load %arg1[%c6_184, %c5_185] : memref<8x7xi32, #tpu.memory_space<smem>>
    %193 = arith.index_cast %192 : i32 to index
    %c0_186 = arith.constant 0 : index
    %194 = vector.load %arg3[%193, %c0_186] : memref<128x128xf32, #tpu.memory_space<vmem>>, vector<1x128xf32>
    %c54 = arith.constant 54 : index
    %c0_187 = arith.constant 0 : index
    %195 = vector.load %arg12[%c54, %c0_187] : memref<64x128xf32, #tpu.memory_space<vmem>>, vector<1x128xf32>
    tpu.vector_store %arg12[%c54, %c0_187], %194 {strides = array<i32>} : memref<64x128xf32, #tpu.memory_space<vmem>>, vector<1x128xf32>,
    %c7_188 = arith.constant 7 : index
    %c5_189 = arith.constant 5 : index
    %196 = memref.load %arg1[%c7_188, %c5_189] : memref<8x7xi32, #tpu.memory_space<smem>>
    %197 = arith.index_cast %196 : i32 to index
    %c0_190 = arith.constant 0 : index
    %198 = vector.load %arg3[%197, %c0_190] : memref<128x128xf32, #tpu.memory_space<vmem>>, vector<1x128xf32>
    %c55 = arith.constant 55 : index
    %c0_191 = arith.constant 0 : index
    %199 = vector.load %arg12[%c55, %c0_191] : memref<64x128xf32, #tpu.memory_space<vmem>>, vector<1x128xf32>
    tpu.vector_store %arg12[%c55, %c0_191], %198 {strides = array<i32>} : memref<64x128xf32, #tpu.memory_space<vmem>>, vector<1x128xf32>,
    %c0_192 = arith.constant 0 : index
    %c6_193 = arith.constant 6 : index
    %200 = memref.load %arg1[%c0_192, %c6_193] : memref<8x7xi32, #tpu.memory_space<smem>>
    %201 = arith.index_cast %200 : i32 to index
    %c0_194 = arith.constant 0 : index
    %202 = vector.load %arg3[%201, %c0_194] : memref<128x128xf32, #tpu.memory_space<vmem>>, vector<1x128xf32>
    %c56 = arith.constant 56 : index
    %c0_195 = arith.constant 0 : index
    %203 = vector.load %arg12[%c56, %c0_195] : memref<64x128xf32, #tpu.memory_space<vmem>>, vector<1x128xf32>
    tpu.vector_store %arg12[%c56, %c0_195], %202 {strides = array<i32>} : memref<64x128xf32, #tpu.memory_space<vmem>>, vector<1x128xf32>,
    %c1_196 = arith.constant 1 : index
    %c6_197 = arith.constant 6 : index
    %204 = memref.load %arg1[%c1_196, %c6_197] : memref<8x7xi32, #tpu.memory_space<smem>>
    %205 = arith.index_cast %204 : i32 to index
    %c0_198 = arith.constant 0 : index
    %206 = vector.load %arg3[%205, %c0_198] : memref<128x128xf32, #tpu.memory_space<vmem>>, vector<1x128xf32>
    %c57 = arith.constant 57 : index
    %c0_199 = arith.constant 0 : index
    %207 = vector.load %arg12[%c57, %c0_199] : memref<64x128xf32, #tpu.memory_space<vmem>>, vector<1x128xf32>
    tpu.vector_store %arg12[%c57, %c0_199], %206 {strides = array<i32>} : memref<64x128xf32, #tpu.memory_space<vmem>>, vector<1x128xf32>,
    %c2_200 = arith.constant 2 : index
    %c6_201 = arith.constant 6 : index
    %208 = memref.load %arg1[%c2_200, %c6_201] : memref<8x7xi32, #tpu.memory_space<smem>>
    %209 = arith.index_cast %208 : i32 to index
    %c0_202 = arith.constant 0 : index
    %210 = vector.load %arg3[%209, %c0_202] : memref<128x128xf32, #tpu.memory_space<vmem>>, vector<1x128xf32>
    %c58 = arith.constant 58 : index
    %c0_203 = arith.constant 0 : index
    %211 = vector.load %arg12[%c58, %c0_203] : memref<64x128xf32, #tpu.memory_space<vmem>>, vector<1x128xf32>
    tpu.vector_store %arg12[%c58, %c0_203], %210 {strides = array<i32>} : memref<64x128xf32, #tpu.memory_space<vmem>>, vector<1x128xf32>,
    %c3_204 = arith.constant 3 : index
    %c6_205 = arith.constant 6 : index
    %212 = memref.load %arg1[%c3_204, %c6_205] : memref<8x7xi32, #tpu.memory_space<smem>>
    %213 = arith.index_cast %212 : i32 to index
    %c0_206 = arith.constant 0 : index
    %214 = vector.load %arg3[%213, %c0_206] : memref<128x128xf32, #tpu.memory_space<vmem>>, vector<1x128xf32>
    %c59 = arith.constant 59 : index
    %c0_207 = arith.constant 0 : index
    %215 = vector.load %arg12[%c59, %c0_207] : memref<64x128xf32, #tpu.memory_space<vmem>>, vector<1x128xf32>
    tpu.vector_store %arg12[%c59, %c0_207], %214 {strides = array<i32>} : memref<64x128xf32, #tpu.memory_space<vmem>>, vector<1x128xf32>,
    %c4_208 = arith.constant 4 : index
    %c6_209 = arith.constant 6 : index
    %216 = memref.load %arg1[%c4_208, %c6_209] : memref<8x7xi32, #tpu.memory_space<smem>>
    %217 = arith.index_cast %216 : i32 to index
    %c0_210 = arith.constant 0 : index
    %218 = vector.load %arg3[%217, %c0_210] : memref<128x128xf32, #tpu.memory_space<vmem>>, vector<1x128xf32>
    %c60 = arith.constant 60 : index
    %c0_211 = arith.constant 0 : index
    %219 = vector.load %arg12[%c60, %c0_211] : memref<64x128xf32, #tpu.memory_space<vmem>>, vector<1x128xf32>
    tpu.vector_store %arg12[%c60, %c0_211], %218 {strides = array<i32>} : memref<64x128xf32, #tpu.memory_space<vmem>>, vector<1x128xf32>,
    %c5_212 = arith.constant 5 : index
    %c6_213 = arith.constant 6 : index
    %220 = memref.load %arg1[%c5_212, %c6_213] : memref<8x7xi32, #tpu.memory_space<smem>>
    %221 = arith.index_cast %220 : i32 to index
    %c0_214 = arith.constant 0 : index
    %222 = vector.load %arg3[%221, %c0_214] : memref<128x128xf32, #tpu.memory_space<vmem>>, vector<1x128xf32>
    %c61 = arith.constant 61 : index
    %c0_215 = arith.constant 0 : index
    %223 = vector.load %arg12[%c61, %c0_215] : memref<64x128xf32, #tpu.memory_space<vmem>>, vector<1x128xf32>
    tpu.vector_store %arg12[%c61, %c0_215], %222 {strides = array<i32>} : memref<64x128xf32, #tpu.memory_space<vmem>>, vector<1x128xf32>,
    %c6_216 = arith.constant 6 : index
    %c6_217 = arith.constant 6 : index
    %224 = memref.load %arg1[%c6_216, %c6_217] : memref<8x7xi32, #tpu.memory_space<smem>>
    %225 = arith.index_cast %224 : i32 to index
    %c0_218 = arith.constant 0 : index
    %226 = vector.load %arg3[%225, %c0_218] : memref<128x128xf32, #tpu.memory_space<vmem>>, vector<1x128xf32>
    %c62 = arith.constant 62 : index
    %c0_219 = arith.constant 0 : index
    %227 = vector.load %arg12[%c62, %c0_219] : memref<64x128xf32, #tpu.memory_space<vmem>>, vector<1x128xf32>
    tpu.vector_store %arg12[%c62, %c0_219], %226 {strides = array<i32>} : memref<64x128xf32, #tpu.memory_space<vmem>>, vector<1x128xf32>,
    %c7_220 = arith.constant 7 : index
    %c6_221 = arith.constant 6 : index
    %228 = memref.load %arg1[%c7_220, %c6_221] : memref<8x7xi32, #tpu.memory_space<smem>>
    %229 = arith.index_cast %228 : i32 to index
    %c0_222 = arith.constant 0 : index
    %230 = vector.load %arg3[%229, %c0_222] : memref<128x128xf32, #tpu.memory_space<vmem>>, vector<1x128xf32>
    %c63 = arith.constant 63 : index
    %c0_223 = arith.constant 0 : index
    %231 = vector.load %arg12[%c63, %c0_223] : memref<64x128xf32, #tpu.memory_space<vmem>>, vector<1x128xf32>
    tpu.vector_store %arg12[%c63, %c0_223], %230 {strides = array<i32>} : memref<64x128xf32, #tpu.memory_space<vmem>>, vector<1x128xf32>,
    %c0_224 = arith.constant 0 : index
    %c0_225 = arith.constant 0 : index
    %232 = vector.load %arg12[%c0_224, %c0_225] : memref<64x128xf32, #tpu.memory_space<vmem>>, vector<64x128xf32>
    %233 = arith.truncf %232 : vector<64x128xf32> to vector<64x128xbf16>
    %c0_226 = arith.constant 0 : index
    %c0_227 = arith.constant 0 : index
    %234 = vector.load %arg6[%c0_226, %c0_227] : memref<128x512xbf16, #tpu.memory_space<vmem>>, vector<128x512xbf16>
    %cst_228 = arith.constant dense<0.000000e+00> : vector<64x512xf32>
    %235 = tpu.matmul %233, %234, %cst_228 {dimension_numbers = #tpu.dot_dimension_numbers<[1], [0], [0], [1], [0, 0, 1, 1], [], []>} : vector<64x128xbf16>, vector<128x512xbf16>, vector<64x512xf32> -> vector<64x512xf32>
    %c0_229 = arith.constant 0 : index
    %c0_230 = arith.constant 0 : index
    %236 = vector.load %arg8[%c0_229, %c0_230] : memref<1x512xf32, #tpu.memory_space<vmem>>, vector<1x512xf32>
    %237 = vector.broadcast %236 : vector<1x512xf32> to vector<64x512xf32>
    %238 = arith.addf %235, %237 : vector<64x512xf32>
    %c0_231 = arith.constant 0 : index
    %c0_232 = arith.constant 0 : index
    %239 = vector.load %arg13[%c0_231, %c0_232] : memref<64x512xf32, #tpu.memory_space<vmem>>, vector<64x512xf32>
    tpu.vector_store %arg13[%c0_231, %c0_232], %238 {strides = array<i32>} : memref<64x512xf32, #tpu.memory_space<vmem>>, vector<64x512xf32>,
    %cst_233 = arith.constant 0.000000e+00 : f32
    %240 = vector.broadcast %cst_233 : f32 to vector<8x128xf32>
    %c0_234 = arith.constant 0 : index
    %c0_235 = arith.constant 0 : index
    %241 = vector.load %arg13[%c0_234, %c0_235] : memref<64x512xf32, #tpu.memory_space<vmem>>, vector<8x512xf32>
    %242 = vector.extract_strided_slice %241 {offsets = [0, 0], sizes = [8, 128], strides = [1, 1]} : vector<8x512xf32> to vector<8x128xf32>
    %243 = arith.negf %242 : vector<8x128xf32>
    %244 = math.exp %243 : vector<8x128xf32>
    %cst_236 = arith.constant 1.000000e+00 : f32
    %245 = vector.broadcast %cst_236 : f32 to vector<8x128xf32>
    %246 = arith.addf %245, %244 : vector<8x128xf32>
    %247 = arith.divf %245, %246 : vector<8x128xf32>
    %248 = vector.extract_strided_slice %241 {offsets = [0, 128], sizes = [8, 128], strides = [1, 1]} : vector<8x512xf32> to vector<8x128xf32>
    %249 = arith.negf %248 : vector<8x128xf32>
    %250 = math.exp %249 : vector<8x128xf32>
    %cst_237 = arith.constant 1.000000e+00 : f32
    %251 = vector.broadcast %cst_237 : f32 to vector<8x128xf32>
    %252 = arith.addf %251, %250 : vector<8x128xf32>
    %253 = arith.divf %251, %252 : vector<8x128xf32>
    %254 = vector.extract_strided_slice %241 {offsets = [0, 256], sizes = [8, 128], strides = [1, 1]} : vector<8x512xf32> to vector<8x128xf32>
    %255 = math.tanh %254 : vector<8x128xf32>
    %256 = vector.extract_strided_slice %241 {offsets = [0, 384], sizes = [8, 128], strides = [1, 1]} : vector<8x512xf32> to vector<8x128xf32>
    %257 = arith.negf %256 : vector<8x128xf32>
    %258 = math.exp %257 : vector<8x128xf32>
    %cst_238 = arith.constant 1.000000e+00 : f32
    %259 = vector.broadcast %cst_238 : f32 to vector<8x128xf32>
    %260 = arith.addf %259, %258 : vector<8x128xf32>
    %261 = arith.divf %259, %260 : vector<8x128xf32>
    %262 = arith.mulf %253, %240 : vector<8x128xf32>
    %263 = arith.mulf %247, %255 : vector<8x128xf32>
    %264 = arith.addf %262, %263 : vector<8x128xf32>
    %265 = math.tanh %264 : vector<8x128xf32>
    %266 = arith.mulf %261, %265 : vector<8x128xf32>
    %c0_239 = arith.constant 0 : index
    %c0_240 = arith.constant 0 : index
    %267 = vector.load %arg14[%c0_239, %c0_240] : memref<64x128xf32, #tpu.memory_space<vmem>>, vector<8x128xf32>
    tpu.vector_store %arg14[%c0_239, %c0_240], %266 {strides = array<i32>} : memref<64x128xf32, #tpu.memory_space<vmem>>, vector<8x128xf32>,
    %c8_241 = arith.constant 8 : index
    %c0_242 = arith.constant 0 : index
    %268 = vector.load %arg13[%c8_241, %c0_242] : memref<64x512xf32, #tpu.memory_space<vmem>>, vector<8x512xf32>
    %269 = arith.truncf %266 : vector<8x128xf32> to vector<8x128xbf16>
    %c0_243 = arith.constant 0 : index
    %c0_244 = arith.constant 0 : index
    %270 = vector.load %arg7[%c0_243, %c0_244] : memref<128x512xbf16, #tpu.memory_space<vmem>>, vector<128x512xbf16>
    %cst_245 = arith.constant dense<0.000000e+00> : vector<8x512xf32>
    %271 = tpu.matmul %269, %270, %cst_245 {dimension_numbers = #tpu.dot_dimension_numbers<[1], [0], [0], [1], [0, 0, 1, 1], [], []>} : vector<8x128xbf16>, vector<128x512xbf16>, vector<8x512xf32> -> vector<8x512xf32>
    %272 = arith.addf %268, %271 : vector<8x512xf32>
    %273 = vector.extract_strided_slice %272 {offsets = [0, 0], sizes = [8, 128], strides = [1, 1]} : vector<8x512xf32> to vector<8x128xf32>
    %274 = arith.negf %273 : vector<8x128xf32>
    %275 = math.exp %274 : vector<8x128xf32>
    %cst_246 = arith.constant 1.000000e+00 : f32
    %276 = vector.broadcast %cst_246 : f32 to vector<8x128xf32>
    %277 = arith.addf %276, %275 : vector<8x128xf32>
    %278 = arith.divf %276, %277 : vector<8x128xf32>
    %279 = vector.extract_strided_slice %272 {offsets = [0, 128], sizes = [8, 128], strides = [1, 1]} : vector<8x512xf32> to vector<8x128xf32>
    %280 = arith.negf %279 : vector<8x128xf32>
    %281 = math.exp %280 : vector<8x128xf32>
    %cst_247 = arith.constant 1.000000e+00 : f32
    %282 = vector.broadcast %cst_247 : f32 to vector<8x128xf32>
    %283 = arith.addf %282, %281 : vector<8x128xf32>
    %284 = arith.divf %282, %283 : vector<8x128xf32>
    %285 = vector.extract_strided_slice %272 {offsets = [0, 256], sizes = [8, 128], strides = [1, 1]} : vector<8x512xf32> to vector<8x128xf32>
    %286 = math.tanh %285 : vector<8x128xf32>
    %287 = vector.extract_strided_slice %272 {offsets = [0, 384], sizes = [8, 128], strides = [1, 1]} : vector<8x512xf32> to vector<8x128xf32>
    %288 = arith.negf %287 : vector<8x128xf32>
    %289 = math.exp %288 : vector<8x128xf32>
    %cst_248 = arith.constant 1.000000e+00 : f32
    %290 = vector.broadcast %cst_248 : f32 to vector<8x128xf32>
    %291 = arith.addf %290, %289 : vector<8x128xf32>
    %292 = arith.divf %290, %291 : vector<8x128xf32>
    %293 = arith.mulf %284, %264 : vector<8x128xf32>
    %294 = arith.mulf %278, %286 : vector<8x128xf32>
    %295 = arith.addf %293, %294 : vector<8x128xf32>
    %296 = math.tanh %295 : vector<8x128xf32>
    %297 = arith.mulf %292, %296 : vector<8x128xf32>
    %c8_249 = arith.constant 8 : index
    %c0_250 = arith.constant 0 : index
    %298 = vector.load %arg14[%c8_249, %c0_250] : memref<64x128xf32, #tpu.memory_space<vmem>>, vector<8x128xf32>
    tpu.vector_store %arg14[%c8_249, %c0_250], %297 {strides = array<i32>} : memref<64x128xf32, #tpu.memory_space<vmem>>, vector<8x128xf32>,
    %c16_251 = arith.constant 16 : index
    %c0_252 = arith.constant 0 : index
    %299 = vector.load %arg13[%c16_251, %c0_252] : memref<64x512xf32, #tpu.memory_space<vmem>>, vector<8x512xf32>
    %300 = arith.truncf %297 : vector<8x128xf32> to vector<8x128xbf16>
    %c0_253 = arith.constant 0 : index
    %c0_254 = arith.constant 0 : index
    %301 = vector.load %arg7[%c0_253, %c0_254] : memref<128x512xbf16, #tpu.memory_space<vmem>>, vector<128x512xbf16>
    %cst_255 = arith.constant dense<0.000000e+00> : vector<8x512xf32>
    %302 = tpu.matmul %300, %301, %cst_255 {dimension_numbers = #tpu.dot_dimension_numbers<[1], [0], [0], [1], [0, 0, 1, 1], [], []>} : vector<8x128xbf16>, vector<128x512xbf16>, vector<8x512xf32> -> vector<8x512xf32>
    %303 = arith.addf %299, %302 : vector<8x512xf32>
    %304 = vector.extract_strided_slice %303 {offsets = [0, 0], sizes = [8, 128], strides = [1, 1]} : vector<8x512xf32> to vector<8x128xf32>
    %305 = arith.negf %304 : vector<8x128xf32>
    %306 = math.exp %305 : vector<8x128xf32>
    %cst_256 = arith.constant 1.000000e+00 : f32
    %307 = vector.broadcast %cst_256 : f32 to vector<8x128xf32>
    %308 = arith.addf %307, %306 : vector<8x128xf32>
    %309 = arith.divf %307, %308 : vector<8x128xf32>
    %310 = vector.extract_strided_slice %303 {offsets = [0, 128], sizes = [8, 128], strides = [1, 1]} : vector<8x512xf32> to vector<8x128xf32>
    %311 = arith.negf %310 : vector<8x128xf32>
    %312 = math.exp %311 : vector<8x128xf32>
    %cst_257 = arith.constant 1.000000e+00 : f32
    %313 = vector.broadcast %cst_257 : f32 to vector<8x128xf32>
    %314 = arith.addf %313, %312 : vector<8x128xf32>
    %315 = arith.divf %313, %314 : vector<8x128xf32>
    %316 = vector.extract_strided_slice %303 {offsets = [0, 256], sizes = [8, 128], strides = [1, 1]} : vector<8x512xf32> to vector<8x128xf32>
    %317 = math.tanh %316 : vector<8x128xf32>
    %318 = vector.extract_strided_slice %303 {offsets = [0, 384], sizes = [8, 128], strides = [1, 1]} : vector<8x512xf32> to vector<8x128xf32>
    %319 = arith.negf %318 : vector<8x128xf32>
    %320 = math.exp %319 : vector<8x128xf32>
    %cst_258 = arith.constant 1.000000e+00 : f32
    %321 = vector.broadcast %cst_258 : f32 to vector<8x128xf32>
    %322 = arith.addf %321, %320 : vector<8x128xf32>
    %323 = arith.divf %321, %322 : vector<8x128xf32>
    %324 = arith.mulf %315, %295 : vector<8x128xf32>
    %325 = arith.mulf %309, %317 : vector<8x128xf32>
    %326 = arith.addf %324, %325 : vector<8x128xf32>
    %327 = math.tanh %326 : vector<8x128xf32>
    %328 = arith.mulf %323, %327 : vector<8x128xf32>
    %c16_259 = arith.constant 16 : index
    %c0_260 = arith.constant 0 : index
    %329 = vector.load %arg14[%c16_259, %c0_260] : memref<64x128xf32, #tpu.memory_space<vmem>>, vector<8x128xf32>
    tpu.vector_store %arg14[%c16_259, %c0_260], %328 {strides = array<i32>} : memref<64x128xf32, #tpu.memory_space<vmem>>, vector<8x128xf32>,
    %c24_261 = arith.constant 24 : index
    %c0_262 = arith.constant 0 : index
    %330 = vector.load %arg13[%c24_261, %c0_262] : memref<64x512xf32, #tpu.memory_space<vmem>>, vector<8x512xf32>
    %331 = arith.truncf %328 : vector<8x128xf32> to vector<8x128xbf16>
    %c0_263 = arith.constant 0 : index
    %c0_264 = arith.constant 0 : index
    %332 = vector.load %arg7[%c0_263, %c0_264] : memref<128x512xbf16, #tpu.memory_space<vmem>>, vector<128x512xbf16>
    %cst_265 = arith.constant dense<0.000000e+00> : vector<8x512xf32>
    %333 = tpu.matmul %331, %332, %cst_265 {dimension_numbers = #tpu.dot_dimension_numbers<[1], [0], [0], [1], [0, 0, 1, 1], [], []>} : vector<8x128xbf16>, vector<128x512xbf16>, vector<8x512xf32> -> vector<8x512xf32>
    %334 = arith.addf %330, %333 : vector<8x512xf32>
    %335 = vector.extract_strided_slice %334 {offsets = [0, 0], sizes = [8, 128], strides = [1, 1]} : vector<8x512xf32> to vector<8x128xf32>
    %336 = arith.negf %335 : vector<8x128xf32>
    %337 = math.exp %336 : vector<8x128xf32>
    %cst_266 = arith.constant 1.000000e+00 : f32
    %338 = vector.broadcast %cst_266 : f32 to vector<8x128xf32>
    %339 = arith.addf %338, %337 : vector<8x128xf32>
    %340 = arith.divf %338, %339 : vector<8x128xf32>
    %341 = vector.extract_strided_slice %334 {offsets = [0, 128], sizes = [8, 128], strides = [1, 1]} : vector<8x512xf32> to vector<8x128xf32>
    %342 = arith.negf %341 : vector<8x128xf32>
    %343 = math.exp %342 : vector<8x128xf32>
    %cst_267 = arith.constant 1.000000e+00 : f32
    %344 = vector.broadcast %cst_267 : f32 to vector<8x128xf32>
    %345 = arith.addf %344, %343 : vector<8x128xf32>
    %346 = arith.divf %344, %345 : vector<8x128xf32>
    %347 = vector.extract_strided_slice %334 {offsets = [0, 256], sizes = [8, 128], strides = [1, 1]} : vector<8x512xf32> to vector<8x128xf32>
    %348 = math.tanh %347 : vector<8x128xf32>
    %349 = vector.extract_strided_slice %334 {offsets = [0, 384], sizes = [8, 128], strides = [1, 1]} : vector<8x512xf32> to vector<8x128xf32>
    %350 = arith.negf %349 : vector<8x128xf32>
    %351 = math.exp %350 : vector<8x128xf32>
    %cst_268 = arith.constant 1.000000e+00 : f32
    %352 = vector.broadcast %cst_268 : f32 to vector<8x128xf32>
    %353 = arith.addf %352, %351 : vector<8x128xf32>
    %354 = arith.divf %352, %353 : vector<8x128xf32>
    %355 = arith.mulf %346, %326 : vector<8x128xf32>
    %356 = arith.mulf %340, %348 : vector<8x128xf32>
    %357 = arith.addf %355, %356 : vector<8x128xf32>
    %358 = math.tanh %357 : vector<8x128xf32>
    %359 = arith.mulf %354, %358 : vector<8x128xf32>
    %c24_269 = arith.constant 24 : index
    %c0_270 = arith.constant 0 : index
    %360 = vector.load %arg14[%c24_269, %c0_270] : memref<64x128xf32, #tpu.memory_space<vmem>>, vector<8x128xf32>
    tpu.vector_store %arg14[%c24_269, %c0_270], %359 {strides = array<i32>} : memref<64x128xf32, #tpu.memory_space<vmem>>, vector<8x128xf32>,
    %c32_271 = arith.constant 32 : index
    %c0_272 = arith.constant 0 : index
    %361 = vector.load %arg13[%c32_271, %c0_272] : memref<64x512xf32, #tpu.memory_space<vmem>>, vector<8x512xf32>
    %362 = arith.truncf %359 : vector<8x128xf32> to vector<8x128xbf16>
    %c0_273 = arith.constant 0 : index
    %c0_274 = arith.constant 0 : index
    %363 = vector.load %arg7[%c0_273, %c0_274] : memref<128x512xbf16, #tpu.memory_space<vmem>>, vector<128x512xbf16>
    %cst_275 = arith.constant dense<0.000000e+00> : vector<8x512xf32>
    %364 = tpu.matmul %362, %363, %cst_275 {dimension_numbers = #tpu.dot_dimension_numbers<[1], [0], [0], [1], [0, 0, 1, 1], [], []>} : vector<8x128xbf16>, vector<128x512xbf16>, vector<8x512xf32> -> vector<8x512xf32>
    %365 = arith.addf %361, %364 : vector<8x512xf32>
    %366 = vector.extract_strided_slice %365 {offsets = [0, 0], sizes = [8, 128], strides = [1, 1]} : vector<8x512xf32> to vector<8x128xf32>
    %367 = arith.negf %366 : vector<8x128xf32>
    %368 = math.exp %367 : vector<8x128xf32>
    %cst_276 = arith.constant 1.000000e+00 : f32
    %369 = vector.broadcast %cst_276 : f32 to vector<8x128xf32>
    %370 = arith.addf %369, %368 : vector<8x128xf32>
    %371 = arith.divf %369, %370 : vector<8x128xf32>
    %372 = vector.extract_strided_slice %365 {offsets = [0, 128], sizes = [8, 128], strides = [1, 1]} : vector<8x512xf32> to vector<8x128xf32>
    %373 = arith.negf %372 : vector<8x128xf32>
    %374 = math.exp %373 : vector<8x128xf32>
    %cst_277 = arith.constant 1.000000e+00 : f32
    %375 = vector.broadcast %cst_277 : f32 to vector<8x128xf32>
    %376 = arith.addf %375, %374 : vector<8x128xf32>
    %377 = arith.divf %375, %376 : vector<8x128xf32>
    %378 = vector.extract_strided_slice %365 {offsets = [0, 256], sizes = [8, 128], strides = [1, 1]} : vector<8x512xf32> to vector<8x128xf32>
    %379 = math.tanh %378 : vector<8x128xf32>
    %380 = vector.extract_strided_slice %365 {offsets = [0, 384], sizes = [8, 128], strides = [1, 1]} : vector<8x512xf32> to vector<8x128xf32>
    %381 = arith.negf %380 : vector<8x128xf32>
    %382 = math.exp %381 : vector<8x128xf32>
    %cst_278 = arith.constant 1.000000e+00 : f32
    %383 = vector.broadcast %cst_278 : f32 to vector<8x128xf32>
    %384 = arith.addf %383, %382 : vector<8x128xf32>
    %385 = arith.divf %383, %384 : vector<8x128xf32>
    %386 = arith.mulf %377, %357 : vector<8x128xf32>
    %387 = arith.mulf %371, %379 : vector<8x128xf32>
    %388 = arith.addf %386, %387 : vector<8x128xf32>
    %389 = math.tanh %388 : vector<8x128xf32>
    %390 = arith.mulf %385, %389 : vector<8x128xf32>
    %c32_279 = arith.constant 32 : index
    %c0_280 = arith.constant 0 : index
    %391 = vector.load %arg14[%c32_279, %c0_280] : memref<64x128xf32, #tpu.memory_space<vmem>>, vector<8x128xf32>
    tpu.vector_store %arg14[%c32_279, %c0_280], %390 {strides = array<i32>} : memref<64x128xf32, #tpu.memory_space<vmem>>, vector<8x128xf32>,
    %c40_281 = arith.constant 40 : index
    %c0_282 = arith.constant 0 : index
    %392 = vector.load %arg13[%c40_281, %c0_282] : memref<64x512xf32, #tpu.memory_space<vmem>>, vector<8x512xf32>
    %393 = arith.truncf %390 : vector<8x128xf32> to vector<8x128xbf16>
    %c0_283 = arith.constant 0 : index
    %c0_284 = arith.constant 0 : index
    %394 = vector.load %arg7[%c0_283, %c0_284] : memref<128x512xbf16, #tpu.memory_space<vmem>>, vector<128x512xbf16>
    %cst_285 = arith.constant dense<0.000000e+00> : vector<8x512xf32>
    %395 = tpu.matmul %393, %394, %cst_285 {dimension_numbers = #tpu.dot_dimension_numbers<[1], [0], [0], [1], [0, 0, 1, 1], [], []>} : vector<8x128xbf16>, vector<128x512xbf16>, vector<8x512xf32> -> vector<8x512xf32>
    %396 = arith.addf %392, %395 : vector<8x512xf32>
    %397 = vector.extract_strided_slice %396 {offsets = [0, 0], sizes = [8, 128], strides = [1, 1]} : vector<8x512xf32> to vector<8x128xf32>
    %398 = arith.negf %397 : vector<8x128xf32>
    %399 = math.exp %398 : vector<8x128xf32>
    %cst_286 = arith.constant 1.000000e+00 : f32
    %400 = vector.broadcast %cst_286 : f32 to vector<8x128xf32>
    %401 = arith.addf %400, %399 : vector<8x128xf32>
    %402 = arith.divf %400, %401 : vector<8x128xf32>
    %403 = vector.extract_strided_slice %396 {offsets = [0, 128], sizes = [8, 128], strides = [1, 1]} : vector<8x512xf32> to vector<8x128xf32>
    %404 = arith.negf %403 : vector<8x128xf32>
    %405 = math.exp %404 : vector<8x128xf32>
    %cst_287 = arith.constant 1.000000e+00 : f32
    %406 = vector.broadcast %cst_287 : f32 to vector<8x128xf32>
    %407 = arith.addf %406, %405 : vector<8x128xf32>
    %408 = arith.divf %406, %407 : vector<8x128xf32>
    %409 = vector.extract_strided_slice %396 {offsets = [0, 256], sizes = [8, 128], strides = [1, 1]} : vector<8x512xf32> to vector<8x128xf32>
    %410 = math.tanh %409 : vector<8x128xf32>
    %411 = vector.extract_strided_slice %396 {offsets = [0, 384], sizes = [8, 128], strides = [1, 1]} : vector<8x512xf32> to vector<8x128xf32>
    %412 = arith.negf %411 : vector<8x128xf32>
    %413 = math.exp %412 : vector<8x128xf32>
    %cst_288 = arith.constant 1.000000e+00 : f32
    %414 = vector.broadcast %cst_288 : f32 to vector<8x128xf32>
    %415 = arith.addf %414, %413 : vector<8x128xf32>
    %416 = arith.divf %414, %415 : vector<8x128xf32>
    %417 = arith.mulf %408, %388 : vector<8x128xf32>
    %418 = arith.mulf %402, %410 : vector<8x128xf32>
    %419 = arith.addf %417, %418 : vector<8x128xf32>
    %420 = math.tanh %419 : vector<8x128xf32>
    %421 = arith.mulf %416, %420 : vector<8x128xf32>
    %c40_289 = arith.constant 40 : index
    %c0_290 = arith.constant 0 : index
    %422 = vector.load %arg14[%c40_289, %c0_290] : memref<64x128xf32, #tpu.memory_space<vmem>>, vector<8x128xf32>
    tpu.vector_store %arg14[%c40_289, %c0_290], %421 {strides = array<i32>} : memref<64x128xf32, #tpu.memory_space<vmem>>, vector<8x128xf32>,
    %c48_291 = arith.constant 48 : index
    %c0_292 = arith.constant 0 : index
    %423 = vector.load %arg13[%c48_291, %c0_292] : memref<64x512xf32, #tpu.memory_space<vmem>>, vector<8x512xf32>
    %424 = arith.truncf %421 : vector<8x128xf32> to vector<8x128xbf16>
    %c0_293 = arith.constant 0 : index
    %c0_294 = arith.constant 0 : index
    %425 = vector.load %arg7[%c0_293, %c0_294] : memref<128x512xbf16, #tpu.memory_space<vmem>>, vector<128x512xbf16>
    %cst_295 = arith.constant dense<0.000000e+00> : vector<8x512xf32>
    %426 = tpu.matmul %424, %425, %cst_295 {dimension_numbers = #tpu.dot_dimension_numbers<[1], [0], [0], [1], [0, 0, 1, 1], [], []>} : vector<8x128xbf16>, vector<128x512xbf16>, vector<8x512xf32> -> vector<8x512xf32>
    %427 = arith.addf %423, %426 : vector<8x512xf32>
    %428 = vector.extract_strided_slice %427 {offsets = [0, 0], sizes = [8, 128], strides = [1, 1]} : vector<8x512xf32> to vector<8x128xf32>
    %429 = arith.negf %428 : vector<8x128xf32>
    %430 = math.exp %429 : vector<8x128xf32>
    %cst_296 = arith.constant 1.000000e+00 : f32
    %431 = vector.broadcast %cst_296 : f32 to vector<8x128xf32>
    %432 = arith.addf %431, %430 : vector<8x128xf32>
    %433 = arith.divf %431, %432 : vector<8x128xf32>
    %434 = vector.extract_strided_slice %427 {offsets = [0, 128], sizes = [8, 128], strides = [1, 1]} : vector<8x512xf32> to vector<8x128xf32>
    %435 = arith.negf %434 : vector<8x128xf32>
    %436 = math.exp %435 : vector<8x128xf32>
    %cst_297 = arith.constant 1.000000e+00 : f32
    %437 = vector.broadcast %cst_297 : f32 to vector<8x128xf32>
    %438 = arith.addf %437, %436 : vector<8x128xf32>
    %439 = arith.divf %437, %438 : vector<8x128xf32>
    %440 = vector.extract_strided_slice %427 {offsets = [0, 256], sizes = [8, 128], strides = [1, 1]} : vector<8x512xf32> to vector<8x128xf32>
    %441 = math.tanh %440 : vector<8x128xf32>
    %442 = vector.extract_strided_slice %427 {offsets = [0, 384], sizes = [8, 128], strides = [1, 1]} : vector<8x512xf32> to vector<8x128xf32>
    %443 = arith.negf %442 : vector<8x128xf32>
    %444 = math.exp %443 : vector<8x128xf32>
    %cst_298 = arith.constant 1.000000e+00 : f32
    %445 = vector.broadcast %cst_298 : f32 to vector<8x128xf32>
    %446 = arith.addf %445, %444 : vector<8x128xf32>
    %447 = arith.divf %445, %446 : vector<8x128xf32>
    %448 = arith.mulf %439, %419 : vector<8x128xf32>
    %449 = arith.mulf %433, %441 : vector<8x128xf32>
    %450 = arith.addf %448, %449 : vector<8x128xf32>
    %451 = math.tanh %450 : vector<8x128xf32>
    %452 = arith.mulf %447, %451 : vector<8x128xf32>
    %c48_299 = arith.constant 48 : index
    %c0_300 = arith.constant 0 : index
    %453 = vector.load %arg14[%c48_299, %c0_300] : memref<64x128xf32, #tpu.memory_space<vmem>>, vector<8x128xf32>
    tpu.vector_store %arg14[%c48_299, %c0_300], %452 {strides = array<i32>} : memref<64x128xf32, #tpu.memory_space<vmem>>, vector<8x128xf32>,
    %c56_301 = arith.constant 56 : index
    %c0_302 = arith.constant 0 : index
    %454 = vector.load %arg13[%c56_301, %c0_302] : memref<64x512xf32, #tpu.memory_space<vmem>>, vector<8x512xf32>
    %455 = arith.truncf %452 : vector<8x128xf32> to vector<8x128xbf16>
    %c0_303 = arith.constant 0 : index
    %c0_304 = arith.constant 0 : index
    %456 = vector.load %arg7[%c0_303, %c0_304] : memref<128x512xbf16, #tpu.memory_space<vmem>>, vector<128x512xbf16>
    %cst_305 = arith.constant dense<0.000000e+00> : vector<8x512xf32>
    %457 = tpu.matmul %455, %456, %cst_305 {dimension_numbers = #tpu.dot_dimension_numbers<[1], [0], [0], [1], [0, 0, 1, 1], [], []>} : vector<8x128xbf16>, vector<128x512xbf16>, vector<8x512xf32> -> vector<8x512xf32>
    %458 = arith.addf %454, %457 : vector<8x512xf32>
    %459 = vector.extract_strided_slice %458 {offsets = [0, 0], sizes = [8, 128], strides = [1, 1]} : vector<8x512xf32> to vector<8x128xf32>
    %460 = arith.negf %459 : vector<8x128xf32>
    %461 = math.exp %460 : vector<8x128xf32>
    %cst_306 = arith.constant 1.000000e+00 : f32
    %462 = vector.broadcast %cst_306 : f32 to vector<8x128xf32>
    %463 = arith.addf %462, %461 : vector<8x128xf32>
    %464 = arith.divf %462, %463 : vector<8x128xf32>
    %465 = vector.extract_strided_slice %458 {offsets = [0, 128], sizes = [8, 128], strides = [1, 1]} : vector<8x512xf32> to vector<8x128xf32>
    %466 = arith.negf %465 : vector<8x128xf32>
    %467 = math.exp %466 : vector<8x128xf32>
    %cst_307 = arith.constant 1.000000e+00 : f32
    %468 = vector.broadcast %cst_307 : f32 to vector<8x128xf32>
    %469 = arith.addf %468, %467 : vector<8x128xf32>
    %470 = arith.divf %468, %469 : vector<8x128xf32>
    %471 = vector.extract_strided_slice %458 {offsets = [0, 256], sizes = [8, 128], strides = [1, 1]} : vector<8x512xf32> to vector<8x128xf32>
    %472 = math.tanh %471 : vector<8x128xf32>
    %473 = vector.extract_strided_slice %458 {offsets = [0, 384], sizes = [8, 128], strides = [1, 1]} : vector<8x512xf32> to vector<8x128xf32>
    %474 = arith.negf %473 : vector<8x128xf32>
    %475 = math.exp %474 : vector<8x128xf32>
    %cst_308 = arith.constant 1.000000e+00 : f32
    %476 = vector.broadcast %cst_308 : f32 to vector<8x128xf32>
    %477 = arith.addf %476, %475 : vector<8x128xf32>
    %478 = arith.divf %476, %477 : vector<8x128xf32>
    %479 = arith.mulf %470, %450 : vector<8x128xf32>
    %480 = arith.mulf %464, %472 : vector<8x128xf32>
    %481 = arith.addf %479, %480 : vector<8x128xf32>
    %482 = math.tanh %481 : vector<8x128xf32>
    %483 = arith.mulf %478, %482 : vector<8x128xf32>
    %c56_309 = arith.constant 56 : index
    %c0_310 = arith.constant 0 : index
    %484 = vector.load %arg14[%c56_309, %c0_310] : memref<64x128xf32, #tpu.memory_space<vmem>>, vector<8x128xf32>
    tpu.vector_store %arg14[%c56_309, %c0_310], %483 {strides = array<i32>} : memref<64x128xf32, #tpu.memory_space<vmem>>, vector<8x128xf32>,
    tpu.wait_dma2 semaphore(%arg16 : memref<!tpu.dma_semaphore, #tpu.memory_space<semaphore_mem>>) src(%arg9 : memref<128x128xbf16, #tpu.memory_space<any>>) dst(%arg15 : memref<128x128xbf16, #tpu.memory_space<vmem>>)
    %c0_311 = arith.constant 0 : index
    %c0_312 = arith.constant 0 : index
    %485 = vector.load %arg14[%c0_311, %c0_312] : memref<64x128xf32, #tpu.memory_space<vmem>>, vector<64x128xf32>
    %486 = arith.truncf %485 : vector<64x128xf32> to vector<64x128xbf16>
    %c0_313 = arith.constant 0 : index
    %c0_314 = arith.constant 0 : index
    %487 = vector.load %arg15[%c0_313, %c0_314] : memref<128x128xbf16, #tpu.memory_space<vmem>>, vector<128x128xbf16>
    %cst_315 = arith.constant dense<0.000000e+00> : vector<64x128xf32>
    %488 = tpu.matmul %486, %487, %cst_315 {dimension_numbers = #tpu.dot_dimension_numbers<[1], [0], [0], [1], [0, 0, 1, 1], [], []>} : vector<64x128xbf16>, vector<128x128xbf16>, vector<64x128xf32> -> vector<64x128xf32>
    %c0_316 = arith.constant 0 : index
    %c0_317 = arith.constant 0 : index
    %489 = vector.load %arg10[%c0_316, %c0_317] : memref<1x128xf32, #tpu.memory_space<vmem>>, vector<1x128xf32>
    %490 = vector.broadcast %489 : vector<1x128xf32> to vector<64x128xf32>
    %491 = arith.addf %488, %490 : vector<64x128xf32>
    %492 = vector.shape_cast %491 : vector<64x128xf32> to vector<8x8x128xf32>
    %c0_318 = arith.constant 0 : index
    %c0_319 = arith.constant 0 : index
    %c0_320 = arith.constant 0 : index
    %493 = vector.load %arg11[%c0_318, %c0_319, %c0_320] : memref<8x8x128xf32, #tpu.memory_space<vmem>>, vector<8x8x128xf32>
    tpu.vector_store %arg11[%c0_318, %c0_319, %c0_320], %492 {strides = array<i32>} : memref<8x8x128xf32, #tpu.memory_space<vmem>>, vector<8x8x128xf32>,
    return
  }
  func.func @transform_0(%arg0: i32, %arg1: memref<8x7xi32, #tpu.memory_space<smem>>) -> (i32, i32) {
    %c0_i32 = arith.constant 0 : i32
    %c0_i32_0 = arith.constant 0 : i32
    %c0_i32_1 = arith.constant 0 : i32
    return %c0_i32, %c0_i32_0 : i32, i32
  }
  func.func @transform_1(%arg0: i32, %arg1: memref<8x7xi32, #tpu.memory_space<smem>>) -> (i32, i32) {
    %c0_i32 = arith.constant 0 : i32
    %c0_i32_0 = arith.constant 0 : i32
    %c0_i32_1 = arith.constant 0 : i32
    return %c0_i32, %c0_i32_0 : i32, i32
  }
  func.func @transform_2(%arg0: i32, %arg1: memref<8x7xi32, #tpu.memory_space<smem>>) -> (i32, i32) {
    %c0_i32 = arith.constant 0 : i32
    %c0_i32_0 = arith.constant 0 : i32
    %c0_i32_1 = arith.constant 0 : i32
    return %c0_i32, %c0_i32_0 : i32, i32
  }
  func.func @transform_3(%arg0: i32, %arg1: memref<8x7xi32, #tpu.memory_space<smem>>) -> (i32, i32) {
    %c0_i32 = arith.constant 0 : i32
    %c0_i32_0 = arith.constant 0 : i32
    %c0_i32_1 = arith.constant 0 : i32
    return %c0_i32, %c0_i32_0 : i32, i32
  }
  func.func @transform_4(%arg0: i32, %arg1: memref<8x7xi32, #tpu.memory_space<smem>>) -> (i32, i32) {
    %c0_i32 = arith.constant 0 : i32
    %c0_i32_0 = arith.constant 0 : i32
    %c0_i32_1 = arith.constant 0 : i32
    return %c0_i32, %c0_i32_0 : i32, i32
  }
  func.func @transform_5(%arg0: i32, %arg1: memref<8x7xi32, #tpu.memory_space<smem>>) -> (i32, i32) {
    %c0_i32 = arith.constant 0 : i32
    %c0_i32_0 = arith.constant 0 : i32
    %c0_i32_1 = arith.constant 0 : i32
    return %c0_i32, %c0_i32_0 : i32, i32
  }
  func.func @transform_6(%arg0: i32, %arg1: memref<8x7xi32, #tpu.memory_space<smem>>) -> (i32, i32) {
    %c0_i32 = arith.constant 0 : i32
    %c0_i32_0 = arith.constant 0 : i32
    %c0_i32_1 = arith.constant 0 : i32
    return %c0_i32, %c0_i32_0 : i32, i32
  }
  func.func @transform_8(%arg0: i32, %arg1: memref<8x7xi32, #tpu.memory_space<smem>>) -> (i32, i32) {
    %c0_i32 = arith.constant 0 : i32
    %c0_i32_0 = arith.constant 0 : i32
    %c0_i32_1 = arith.constant 0 : i32
    return %c0_i32, %c0_i32_0 : i32, i32
  }
  func.func @transform_9(%arg0: i32, %arg1: memref<8x7xi32, #tpu.memory_space<smem>>) -> (i32, i32, i32) {
    %c0_i32 = arith.constant 0 : i32
    %c0_i32_0 = arith.constant 0 : i32
    %c0_i32_1 = arith.constant 0 : i32
    %c0_i32_2 = arith.constant 0 : i32
    return %c0_i32, %c0_i32_0, %c0_i32_1 : i32, i32, i32
  }
}

</mosaic_0001>

<bundles_post_ra>
// kernel: lstm_captioning_forward.1
= control target key start
LH: loop header
LB: loop body
LE: loop exit
PB: predicated region body
PF: predicated region fallthrough
CT: control target
= control target key end

     0   :  { %s4933_s0 = inlined_call_operand.hbm [shape: s32[8,7], index: 0, kind: input, shape index: {}]   ;;  %s4934_s1 = inlined_call_operand.hbm [shape: f32[8,128], index: 1, kind: input, shape index: {}]   ;;  %s4935_s2 = inlined_call_operand.hbm [shape: f32[128,128], index: 2, kind: input, shape index: {}]   ;;  %s4936_s3 = inlined_call_operand.hbm [shape: bf16[128,128], index: 3, kind: input, shape index: {}]   ;;  %s4937_s4 = inlined_call_operand.vmem [shape: f32[1,128], index: 4, kind: input, shape index: {}]   ;;  %s4938_s5 = inlined_call_operand.hbm [shape: bf16[128,512], index: 5, kind: input, shape index: {}]   ;;  %s4939_s6 = inlined_call_operand.hbm [shape: bf16[128,512], index: 6, kind: input, shape index: {}]   ;;  %s4940_s7 = inlined_call_operand.vmem [shape: f32[1,512], index: 7, kind: input, shape index: {}]   ;;  %s4941_s8 = inlined_call_operand.hbm [shape: bf16[128,128], index: 8, kind: input, shape index: {}]   ;;  %s4942_s9 = inlined_call_operand.vmem [shape: f32[1,128], index: 9, kind: input, shape index: {}]   ;;  %s4943_s10 = inlined_call_operand.vmem [shape: f32[8,8,128], index: 10, kind: output, shape index: {}]  }
   0x1   :  { %s3932_s15 = scalar_lea.hbm %s4933_s0, 128 }
   0x2   :  { %p3933_p0 = scmp.ne.s32.totalorder %s4933_s0, %s3932_s15  ;;  %p3936_p1 = scmp.lt.u32.totalorder %s3932_s15, %s4933_s0 }
   0x4   :  { %p3938_p2 = pnand %p3936_p1, %p3933_p0 }
   0x6   :  { %3941 = shalt.err (!%p3938_p2)  }
   0x7   :  { %s4084_s20 = smov [#allocation8]  }
   0x8   :  { %16 = dma.hbm_to_smem %s4933_s0, 128, %s4084_s20, [#allocation7] }
   0x9   :  { %4074 = dma.done.wait [#allocation7], 128 }
   0xa   :  { %4075 = vsyncadd [#allocation7], 4294967168 }
   0xb   :  { %18 = sfence }
   0xc   :  { %19 = vsyncpa [#allocation10], 0 }
   0xd   :  { %20 = vsyncpa [#allocation12], 0 }
   0xe   :  { %21 = vsyncpa [#allocation15], 0  ;;  %s4085_s23 = smov [#allocation11]   ;;  %s3942_s27 = scalar_lea.hbm %s4935_s2, 2048 }
   0xf   :  { %s37_s24 = sshll.u32 %s4085_s23, 4  ;;  %p3943_p3 = scmp.ne.s32.totalorder %s4935_s2, %s3942_s27  ;;  %s38_s24 = int_to_ptr.vmem [resolvable:$true] %s37_s24 }
  0x10   :  { %p3946_p4 = scmp.lt.u32.totalorder %s3942_s27, %s4935_s2 }
  0x12   :  { %p3948_p5 = pnand %p3946_p4, %p3943_p3 }
  0x14   :  { %3951 = shalt.err (!%p3948_p5)
}
  0x15   :  { %s3952_s0 = scalar_lea.vmem %s38_s24, 2048  ;;  %p3957_p7 = scmp.lt.s32.totalorder %s38_s24, %s38_s24 }
  0x16   :  { %p3953_p6 = scmp.ne.s32.totalorder %s38_s24, %s3952_s0  ;;  %p3958_p8 = scmp.lt.s32.totalorder %s3952_s0, %s3952_s0 }
  0x18   :  { %p3959_p9 = por %p3958_p8, %p3957_p7 }
  0x1a   :  { %p3960_p10 = pnand %p3959_p9, %p3953_p6 }
  0x1c   :  { %3963 = shalt.err (!%p3960_p10)
}
  0x1d   :  { %s4086_s12 = smov 128   ;;  %s4087_s13 = smov 8  }
  0x1e   :  { %43 = dma.hbm_to_vmem [thread:$0]  %s4935_s2, 2048, %s38_s24, [#allocation12], %s4086_s12, %s4086_s12, %s4087_s13  }
  0x1f   :  { %s4088_s16 = smov [#allocation14]   ;;  %s3964_s20 = scalar_lea.hbm %s4938_s5, 4096 }
  0x20   :  { %s63_s17 = sshll.u32 %s4088_s16, 4  ;;  %p3965_p11 = scmp.ne.s32.totalorder %s4938_s5, %s3964_s20  ;;  %s64_s17 = int_to_ptr.vmem [resolvable:$true] %s63_s17 }
  0x21   :  { %p3968_p12 = scmp.lt.u32.totalorder %s3964_s20, %s4938_s5 }
  0x23   :  { %p3970_p13 = pnand %p3968_p12, %p3965_p11 }
  0x25   :  { %3973 = shalt.err (!%p3970_p13)
}
  0x26   :  { %s3974_s26 = scalar_lea.vmem %s64_s17, 4096  ;;  %p3979_p1 = scmp.lt.s32.totalorder %s64_s17, %s64_s17 }
  0x27   :  { %p3975_p0 = scmp.ne.s32.totalorder %s64_s17, %s3974_s26  ;;  %p3980_p2 = scmp.lt.s32.totalorder %s3974_s26, %s3974_s26 }
  0x29   :  { %p3981_p3 = por %p3980_p2, %p3979_p1 }
  0x2b   :  { %p3982_p4 = pnand %p3981_p3, %p3975_p0 }
  0x2d   :  { %3985 = shalt.err (!%p3982_p4)
}
  0x2e   :  { %s4089_s2 = smov 256   ;;  %s4090_s24 = smov 16  }
  0x2f   :  { %69 = dma.hbm_to_vmem [thread:$0]  %s4938_s5, 4096, %s64_s17, [#allocation15], %s4089_s2, %s4089_s2, %s4090_s24  }
  0x30   :  { %s4091_s29 = smov [#allocation9]   ;;  %s4092_s11 = smov [#allocation13]  }
  0x31   :  { %s28_s30 = sshll.u32 %s4091_s29, 4  ;;  %s49_s0 = sshll.u32 %s4092_s11, 4  ;;  %s29_s30 = int_to_ptr.vmem [resolvable:$true] %s28_s30  ;;  %s4194_s0 = int_to_ptr.vmem [resolvable:$true] %s49_s0 }
  0x32   :  { %s3986_s14 = scalar_lea.hbm %s4934_s1, 128 }
  0x33   :  { %p3987_p5 = scmp.ne.s32.totalorder %s4934_s1, %s3986_s14  ;;  %p3990_p6 = scmp.lt.u32.totalorder %s3986_s14, %s4934_s1 }
  0x35   :  { %p3992_p7 = pnand %p3990_p6, %p3987_p5 }
  0x37   :  { %3995 = shalt.err (!%p3992_p7)
}
  0x38   :  { %s3996_s5 = scalar_lea.vmem %s29_s30, 128  ;;  %p4001_p9 = scmp.lt.s32.totalorder %s29_s30, %s29_s30 }
  0x39   :  { %p3997_p8 = scmp.ne.s32.totalorder %s29_s30, %s3996_s5  ;;  %p4002_p10 = scmp.lt.s32.totalorder %s3996_s5, %s3996_s5 }
  0x3b   :  { %p4003_p11 = por %p4002_p10, %p4001_p9 }
  0x3d   :  { %p4004_p12 = pnand %p4003_p11, %p3997_p8 }
  0x3f   :  { %4007 = shalt.err (!%p4004_p12)
}
  0x40   :  { %31 = dma.hbm_to_vmem [thread:$0]  %s4934_s1, 128, %s29_s30, [#allocation10]  }
  0x41   :  { %s4008_s23 = scalar_lea.hbm %s4936_s3, 1024 }
  0x42   :  { %p4009_p13 = scmp.ne.s32.totalorder %s4936_s3, %s4008_s23  ;;  %p4012_p0 = scmp.lt.u32.totalorder %s4008_s23, %s4936_s3 }
  0x44   :  { %p4014_p1 = pnand %p4012_p0, %p4009_p13 }
  0x46   :  { %4017 = shalt.err (!%p4014_p1)
}
  0x47   :  { %s4018_s29 = scalar_lea.vmem %s4194_s0, 1024  ;;  %p4023_p3 = scmp.lt.s32.totalorder %s4194_s0, %s4194_s0 }
  0x48   :  { %p4019_p2 = scmp.ne.s32.totalorder %s4194_s0, %s4018_s29  ;;  %p4024_p4 = scmp.lt.s32.totalorder %s4018_s29, %s4018_s29 }
  0x4a   :  { %p4025_p5 = por %p4024_p4, %p4023_p3 }
  0x4c   :  { %p4026_p6 = pnand %p4025_p5, %p4019_p2 }
  0x4e   :  { %4029 = shalt.err (!%p4026_p6)
}
  0x4f   :  { %s4093_s1 = smov 64   ;;  %s4094_s30 = smov 4  }
  0x50   :  { %55 = dma.hbm_to_vmem [thread:$0]  %s4936_s3, 1024, %s4194_s0, [#allocation12], %s4093_s1, %s4093_s1, %s4094_s30  }
  0x51   :  { %s4095_s13 = smov [#allocation16]   ;;  %s4030_s18 = scalar_lea.hbm %s4939_s6, 4096 }
  0x52   :  { %s75_s14 = sshll.u32 %s4095_s13, 4  ;;  %p4031_p7 = scmp.ne.s32.totalorder %s4939_s6, %s4030_s18  ;;  %s76_s14 = int_to_ptr.vmem [resolvable:$true] %s75_s14 }
  0x53   :  { %p4034_p8 = scmp.lt.u32.totalorder %s4030_s18, %s4939_s6 }
  0x55   :  { %p4036_p9 = pnand %p4034_p8, %p4031_p7 }
  0x57   :  { %4039 = shalt.err (!%p4036_p9)
}
  0x58   :  { %s4040_s21 = scalar_lea.vmem %s76_s14, 4096  ;;  %p4045_p11 = scmp.lt.s32.totalorder %s76_s14, %s76_s14 }
  0x59   :  { %p4041_p10 = scmp.ne.s32.totalorder %s76_s14, %s4040_s21  ;;  %p4046_p12 = scmp.lt.s32.totalorder %s4040_s21, %s4040_s21 }
  0x5b   :  { %p4047_p13 = por %p4046_p12, %p4045_p11 }
  0x5d   :  { %p4048_p0 = pnand %p4047_p13, %p4041_p10 }
  0x5f   :  { %4051 = shalt.err (!%p4048_p0)
}
  0x60   :  { %81 = dma.hbm_to_vmem [thread:$0]  %s4939_s6, 4096, %s76_s14, [#allocation15], %s4089_s2, %s4089_s2, %s4090_s24  }
  0x61   :  { %4076 = dma.done.wait [#allocation10], 128  }
  0x62   :  { %4077 = vsyncadd [#allocation10], 4294967168 }
  0x63   :  { %4078 = dma.done.wait [#allocation12], 3072  }
  0x64   :  { %4079 = vsyncadd [#allocation12], 4294964224 }
  0x65   :  { %4080 = dma.done.wait [#allocation15], 8192  }
  0x66   :  { %4081 = vsyncadd [#allocation15], 4294959104  ;;  %v4096_v0 = vmov 0.0   ;;  %vm4097_vm0 = vmmov 0   ;;  %v3640_v1 = vld [vmem:[#allocation13] sm:$0xff]   ;;  %v3641_v2 = vld [vmem:[#allocation13 + $0x8] sm:$0xff]  }
  0x67   :  { %3580 = vmatprep.subr.bf16.mxu0 %v4096_v0  ;;  %3596 = vmatprep.mubr.msk.bf16.mxu0 %vm4097_vm0, %v4096_v0  ;;  %v3642_v3 = vld [vmem:[#allocation13 + $0x10] sm:$0xff]   ;;  %v3643_v5 = vld [vmem:[#allocation13 + $0x18] sm:$0xff]   ;;  %v3644_v8 = vld [vmem:[#allocation13 + $0x20] sm:$0xff]   ;;  %s227_s6 = sld [smem:[#allocation8]]  ;;  %v4944_v51 = vmov 0   ;;  %s3229_s18 = sld [smem:[#allocation8 + $0x1]] }
  0x68   :  { %3581 = vmatpush3.bf16.msra.mxu0 %v3640_v1  ;;  %v3648_v4 = vld [vmem:[#allocation14 + $0x4] ss:$16 sps:$4 sm:$0xff]   ;;  %v3653_v6 = vld [vmem:[#allocation14] ss:$16 sps:$4 sm:$0xff]   ;;  %v3645_v13 = vld [vmem:[#allocation13 + $0x28] sm:$0xff]   ;;  %s3222_s2 = sld [smem:[#allocation8 + $0x80]]  ;;  %709 = vmatprep.mubr.bf16.mxu1 %v4944_v51 }
  0x69   :  { %3582 = vmatprep.subr.bf16.mxu0 %v4096_v0  ;;  %677 = vmatprep.subr.bf16.mxu1 %v3648_v4  ;;  %v3654_v7 = vld [vmem:[#allocation14 + $0x24] ss:$16 sps:$4 sm:$0xff]   ;;  %v3659_v9 = vld [vmem:[#allocation14 + $0x20] ss:$16 sps:$4 sm:$0xff]   ;;  %v3647_v18 = vld [vmem:[#allocation13 + $0x38] sm:$0xff]   ;;  %s3223_s24 = sld [smem:[#allocation8 + $0x100]] }
  0x6a   :  { %678 = vmatpush1.bf16.msra.mxu1 %v3653_v6  ;;  %v3660_v10 = vld [vmem:[#allocation14 + $0x44] ss:$16 sps:$4 sm:$0xff]   ;;  %v3665_v11 = vld [vmem:[#allocation14 + $0x40] ss:$16 sps:$4 sm:$0xff]   ;;  %v113_v19 = vld [vmem:[#allocation9] sm:$0xff]  ;;  %s3224_s22 = sld [smem:[#allocation8 + $0x180]] }
  0x6b   :  { %679 = vmatprep.subr.bf16.mxu1 %v3654_v7  ;;  %v3666_v12 = vld [vmem:[#allocation14 + $0x64] ss:$16 sps:$4 sm:$0xff]   ;;  %v3671_v14 = vld [vmem:[#allocation14 + $0x60] ss:$16 sps:$4 sm:$0xff]   ;;  %v3652_v20 = vld [vmem:[#allocation14 + $0xc] ss:$16 sps:$4 sm:$0xff]   ;;  %v114_v22 = vpack.c.bf16 %v113_v19, %v113_v19 }
  0x6c   :  { %3583 = vmatpush3.bf16.msra.mxu0 %v3641_v2  ;;  %v3646_v15 = vld [vmem:[#allocation13 + $0x30] sm:$0xff]   ;;  %v3650_v21 = vld [vmem:[#allocation14 + $0x8] ss:$16 sps:$4 sm:$0xff]   ;;  %v3658_v23 = vld [vmem:[#allocation14 + $0x2c] ss:$16 sps:$4 sm:$0xff]   ;;  %s4240_s23 = sld [smem:[#allocation8 + $0x200]] }
  0x6d   :  { %3584 = vmatprep.subr.bf16.mxu0 %v4096_v0  ;;  %v3672_v16 = vld [vmem:[#allocation14 + $0x84] ss:$16 sps:$4 sm:$0xff]   ;;  %v3677_v17 = vld [vmem:[#allocation14 + $0x80] ss:$16 sps:$4 sm:$0xff]   ;;  %v3656_v24 = vld [vmem:[#allocation14 + $0x28] ss:$16 sps:$4 sm:$0xff]  }
  0x6e   :  { %680 = vmatpush1.bf16.msra.mxu1 %v3659_v9  ;;  %v3664_v25 = vld [vmem:[#allocation14 + $0x4c] ss:$16 sps:$4 sm:$0xff]   ;;  %v3662_v26 = vld [vmem:[#allocation14 + $0x48] ss:$16 sps:$4 sm:$0xff]   ;;  %s4242_s25 = sld [smem:[#allocation8 + $0x280]]  ;;  %s228_s28 = scalar_lea.vmem [#allocation11], %s227_s6 }
  0x6f   :  { %681 = vmatprep.subr.bf16.mxu1 %v3660_v10  ;;  %v3670_v27 = vld [vmem:[#allocation14 + $0x6c] ss:$16 sps:$4 sm:$0xff]   ;;  %v3668_v28 = vld [vmem:[#allocation14 + $0x68] ss:$16 sps:$4 sm:$0xff]   ;;  %s4244_s26 = sld [smem:[#allocation8 + $0x300]]  ;;  %s232_s29 = scalar_lea.vmem [#allocation11], %s3222_s2 }
  0x70   :  { %3585 = vmatpush3.bf16.msra.mxu0 %v3642_v3  ;;  %v3676_v29 = vld [vmem:[#allocation14 + $0x8c] ss:$16 sps:$4 sm:$0xff]   ;;  %v3674_v30 = vld [vmem:[#allocation14 + $0x88] ss:$16 sps:$4 sm:$0xff]   ;;  %s4246_s27 = sld [smem:[#allocation8 + $0x380]]  ;;  %s236_s1 = scalar_lea.vmem [#allocation11], %s3223_s24 }
  0x71   :  { %3586 = vmatprep.subr.bf16.mxu0 %v4096_v0  ;;  %v3678_v31 = vld [vmem:[#allocation14 + $0xa4] ss:$16 sps:$4 sm:$0xff]   ;;  %v3682_v32 = vld [vmem:[#allocation14 + $0xac] ss:$16 sps:$4 sm:$0xff]   ;;  %v3680_v33 = vld [vmem:[#allocation14 + $0xa8] ss:$16 sps:$4 sm:$0xff]  }
  0x72   :  { %682 = vmatpush1.bf16.msra.mxu1 %v3665_v11  ;;  %v3683_v34 = vld [vmem:[#allocation14 + $0xa0] ss:$16 sps:$4 sm:$0xff]   ;;  %v229_v35 = vld [vmem:[%s228_s28] sm:$0x1]  ;;  %v3684_v37 = vld [vmem:[#allocation14 + $0xc4] ss:$16 sps:$4 sm:$0xff]  }
  0x73   :  { %683 = vmatprep.subr.bf16.mxu1 %v3666_v12  ;;  %v233_v36 = vld [vmem:[%s232_s29] sm:$0x1]  ;;  %v3688_v38 = vld [vmem:[#allocation14 + $0xcc] ss:$16 sps:$4 sm:$0xff]   ;;  %230 = vst [vmem:[#allocation2 + $0x8] sm:$0x1] %v229_v35 }
  0x74   :  { %3587 = vmatpush3.bf16.msra.mxu0 %v3643_v5  ;;  %234 = vst [vmem:[#allocation2 + $0x9] sm:$0x1] %v233_v36  ;;  %v237_v39 = vld [vmem:[%s236_s1] sm:$0x1]  ;;  %v3689_v41 = vld [vmem:[#allocation14 + $0xc0] ss:$16 sps:$4 sm:$0xff]  }
  0x75   :  { %3588 = vmatprep.subr.bf16.mxu0 %v4096_v0  ;;  %v3686_v40 = vld [vmem:[#allocation14 + $0xc8] ss:$16 sps:$4 sm:$0xff]   ;;  %238 = vst [vmem:[#allocation2 + $0xa] sm:$0x1] %v237_v39  ;;  %s240_s30 = scalar_lea.vmem [#allocation11], %s3224_s22  ;;  %s244_s11 = scalar_lea.vmem [#allocation11], %s4240_s23 }
  0x76   :  { %684 = vmatpush1.bf16.msra.mxu1 %v3671_v14  ;;  %v241_v42 = vld [vmem:[%s240_s30] sm:$0x1]  ;;  %s248_s12 = scalar_lea.vmem [#allocation11], %s4242_s25  ;;  %v3690_v45 = vld [vmem:[#allocation14 + $0xe4] ss:$16 sps:$4 sm:$0xff]   ;;  %s252_s13 = scalar_lea.vmem [#allocation11], %s4244_s26 }
  0x77   :  { %685 = vmatprep.subr.bf16.mxu1 %v3672_v16  ;;  %242 = vst [vmem:[#allocation2 + $0xb] sm:$0x1] %v241_v42  ;;  %v245_v43 = vld [vmem:[%s244_s11] sm:$0x1]  ;;  %v3694_v46 = vld [vmem:[#allocation14 + $0xec] ss:$16 sps:$4 sm:$0xff]  }
  0x78   :  { %3589 = vmatpush3.bf16.msra.mxu0 %v3644_v8  ;;  %v249_v44 = vld [vmem:[%s248_s12] sm:$0x1]  ;;  %246 = vst [vmem:[#allocation2 + $0xc] sm:$0x1] %v245_v43  ;;  %v3695_v49 = vld [vmem:[#allocation14 + $0xe0] ss:$16 sps:$4 sm:$0xff]  }
  0x79   :  { %3590 = vmatprep.subr.bf16.mxu0 %v4096_v0  ;;  %250 = vst [vmem:[#allocation2 + $0xd] sm:$0x1] %v249_v44  ;;  %v253_v47 = vld [vmem:[%s252_s13] sm:$0x1]  ;;  %s256_s14 = scalar_lea.vmem [#allocation11], %s4246_s27  ;;  %s3230_s19 = sld [smem:[#allocation8 + $0x81]] }
  0x7a   :  { %686 = vmatpush1.bf16.msra.mxu1 %v3677_v17  ;;  %v3692_v48 = vld [vmem:[#allocation14 + $0xe8] ss:$16 sps:$4 sm:$0xff]   ;;  %254 = vst [vmem:[#allocation2 + $0xe] sm:$0x1] %v253_v47  ;;  %s3231_s5 = sld [smem:[#allocation8 + $0x101]]  ;;  %s4259_s0 = sld [smem:[#allocation8 + $0x2]] }
  0x7b   :  { %687 = vmatprep.subr.bf16.mxu1 %v3678_v31  ;;  %v257_v50 = vld [vmem:[%s256_s14] sm:$0x1]  ;;  %s3232_s17 = sld [smem:[#allocation8 + $0x181]]  ;;  %s4261_s6 = sld [smem:[#allocation8 + $0x82]]  ;;  %v4267_v4 = vld [vmem:[#allocation16 + $0x4] ss:$16 sps:$4 sm:$0xff]  }
  0x7c   :  { %3591 = vmatpush3.bf16.msra.mxu0 %v3645_v13  ;;  %258 = vst [vmem:[#allocation2 + $0xf] sm:$0x1] %v257_v50  ;;  %v3213_v52 = vld [vmem:[%s4937_s4] ss:$0 sm:$0xff]  ;;  %s3233_s20 = sld [smem:[#allocation8 + $0x201]]  ;;  %s4263_s2 = sld [smem:[#allocation8 + $0x102]] }
  0x7d   :  { %3592 = vmatprep.subr.bf16.mxu0 %v4096_v0  ;;  %s3234_s21 = sld [smem:[#allocation8 + $0x281]]  ;;  %s4265_s24 = sld [smem:[#allocation8 + $0x182]]  ;;  %v4269_v5 = vld [vmem:[#allocation16 + $0xc] ss:$16 sps:$4 sm:$0xff]   ;;  %v4272_v7 = vld [vmem:[#allocation16] ss:$16 sps:$4 sm:$0xff]  }
  0x7e   :  { %688 = vmatpush1.bf16.msra.mxu1 %v3683_v34  ;;  %s3235_s4 = sld [smem:[#allocation8 + $0x301]]  ;;  %s260_s22 = scalar_lea.vmem [#allocation11], %s3229_s18  ;;  %v4274_v8 = vld [vmem:[#allocation16 + $0x8] ss:$16 sps:$4 sm:$0xff]   ;;  %v4283_v12 = vld [vmem:[#allocation16 + $0x24] ss:$16 sps:$4 sm:$0xff]  }
  0x7f   :  { %689 = vmatprep.subr.bf16.mxu1 %v3684_v37  ;;  %s3236_s3 = sld [smem:[#allocation8 + $0x381]]  ;;  %v261_v60 = vld [vmem:[%s260_s22] sm:$0x1]  ;;  %s264_s23 = scalar_lea.vmem [#allocation11], %s3230_s19  ;;  %v4285_v13 = vld [vmem:[#allocation16 + $0x2c] ss:$16 sps:$4 sm:$0xff]  }
  0x80   :  { %3593 = vmatpush3.bf16.msra.mxu0 %v3646_v15  ;;  %v265_v61 = vld [vmem:[%s264_s23] sm:$0x1]  ;;  %262 = vst [vmem:[#allocation2 + $0x10] sm:$0x1] %v261_v60  ;;  %s268_s25 = scalar_lea.vmem [#allocation11], %s3231_s5  ;;  %s292_s30 = scalar_lea.vmem [#allocation11], %s4259_s0 }
  0x81   :  { %3594 = vmatprep.subr.bf16.mxu0 %v4096_v0  ;;  %266 = vst [vmem:[#allocation2 + $0x11] sm:$0x1] %v265_v61  ;;  %v269_v62 = vld [vmem:[%s268_s25] sm:$0x1]  ;;  %s272_s26 = scalar_lea.vmem [#allocation11], %s3232_s17  ;;  %s296_s11 = scalar_lea.vmem [#allocation11], %s4261_s6 }
  0x82   :  { %690 = vmatpush1.bf16.msra.mxu1 %v3689_v41  ;;  %v273_v63 = vld [vmem:[%s272_s26] sm:$0x1]  ;;  %270 = vst [vmem:[#allocation2 + $0x12] sm:$0x1] %v269_v62  ;;  %s276_s27 = scalar_lea.vmem [#allocation11], %s3233_s20  ;;  %s300_s12 = scalar_lea.vmem [#allocation11], %s4263_s2 }
  0x83   :  { %691 = vmatprep.subr.bf16.mxu1 %v3690_v45  ;;  %v452_v54 = vld [vmem:[#allocation2 + $0x8] sm:$0xff]  ;;  %274 = vst [vmem:[#allocation2 + $0x13] sm:$0x1] %v273_v63  ;;  %v277_v0 = vld [vmem:[%s276_s27] sm:$0x1]  ;;  %s280_s28 = scalar_lea.vmem [#allocation11], %s3234_s21 }
  0x84   :  { %3595 = vmatpush3.bf16.msra.mxu0 %v3647_v18  ;;  %v281_v1 = vld [vmem:[%s280_s28] sm:$0x1]  ;;  %278 = vst [vmem:[#allocation2 + $0x14] sm:$0x1] %v277_v0  ;;  %s284_s29 = scalar_lea.vmem [#allocation11], %s3235_s4  ;;  %s304_s13 = scalar_lea.vmem [#allocation11], %s4265_s24 }
  0x85   :  { %750 = vmatprep.subr.bf16.mxu0 %v3652_v20  ;;  %282 = vst [vmem:[#allocation2 + $0x15] sm:$0x1] %v281_v1  ;;  %v285_v2 = vld [vmem:[%s284_s29] sm:$0x1]  ;;  %s288_s1 = scalar_lea.vmem [#allocation11], %s3236_s3  ;;  %s3241_s14 = sld [smem:[#allocation8 + $0x202]] }
  0x86   :  { %692 = vmatpush1.bf16.msra.mxu1 %v3695_v49  ;;  %v289_v3 = vld [vmem:[%s288_s1] sm:$0x1]  ;;  %286 = vst [vmem:[#allocation2 + $0x16] sm:$0x1] %v285_v2  ;;  %s3242_s15 = sld [smem:[#allocation8 + $0x282]]  ;;  %s4293_s19 = sld [smem:[#allocation8 + $0x3]] }
  0x87   :  { %3597 = vmatmul.mubr.bf16.vlgmr.msra.gmra.mrb[0].mxu0 %v114_v22  ;;  %290 = vst [vmem:[#allocation2 + $0x17] sm:$0x1] %v289_v3  ;;  %v293_v6 = vld [vmem:[%s292_s30] sm:$0x1]  ;;  %1081 = vmatprep.subr.bf16.mxu1 %v4267_v4  ;;  %v4287_v14 = vld [vmem:[#allocation16 + $0x20] ss:$16 sps:$4 sm:$0xff]  }
  0x88   :  { %751 = vmatpush1.bf16.msra.mxu0 %v3650_v21  ;;  %782 = vmatprep.mubr.bf16.mxu0 %v4944_v51  ;;  %294 = vst [vmem:[#allocation2 + $0x18] sm:$0x1] %v293_v6  ;;  %v297_v9 = vld [vmem:[%s296_s11] sm:$0x1]  ;;  %s3243_s16 = sld [smem:[#allocation8 + $0x302]]  ;;  %s4297_s5 = sld [smem:[#allocation8 + $0x83]] }
  0x89   :  { %752 = vmatprep.subr.bf16.mxu0 %v3658_v23  ;;  %298 = vst [vmem:[#allocation2 + $0x19] sm:$0x1] %v297_v9  ;;  %v301_v10 = vld [vmem:[%s300_s12] sm:$0x1]  ;;  %s3244_s18 = sld [smem:[#allocation8 + $0x382]]  ;;  %s4299_s17 = sld [smem:[#allocation8 + $0x103]] }
  0x8a   :  { %v305_v11 = vld [vmem:[%s304_s13] sm:$0x1]  ;;  %302 = vst [vmem:[#allocation2 + $0x1a] sm:$0x1] %v301_v10  ;;  %v4301_v16 = vld [vmem:[#allocation16 + $0x44] ss:$16 sps:$4 sm:$0xff]  }
  0x8b   :  { %306 = vst [vmem:[#allocation2 + $0x1b] sm:$0x1] %v305_v11  ;;  %v4289_v15 = vld [vmem:[#allocation16 + $0x28] ss:$16 sps:$4 sm:$0xff]   ;;  %v4303_v17 = vld [vmem:[#allocation16 + $0x4c] ss:$16 sps:$4 sm:$0xff]  }
  0x8c   :  { %753 = vmatpush1.bf16.msra.mxu0 %v3656_v24  ;;  %s4305_s20 = sld [smem:[#allocation8 + $0x183]]  ;;  %v4307_v18 = vld [vmem:[#allocation16 + $0x40] ss:$16 sps:$4 sm:$0xff]   ;;  %v4309_v19 = vld [vmem:[#allocation16 + $0x48] ss:$16 sps:$4 sm:$0xff]   ;;  %s308_s21 = scalar_lea.vmem [#allocation11], %s3241_s14 }
  0x8d   :  { %754 = vmatprep.subr.bf16.mxu0 %v3664_v25  ;;  %v309_v20 = vld [vmem:[%s308_s21] sm:$0x1]  ;;  %s4313_s4 = sld [smem:[#allocation8 + $0x203]]  ;;  %s312_s3 = scalar_lea.vmem [#allocation11], %s3242_s15  ;;  %v4319_v23 = vld [vmem:[#allocation16 + $0x64] ss:$16 sps:$4 sm:$0xff]  }
  0x8e   :  { %310 = vst [vmem:[#allocation2 + $0x1c] sm:$0x1] %v309_v20  ;;  %v313_v21 = vld [vmem:[%s312_s3] sm:$0x1]  ;;  %s4317_s0 = sld [smem:[#allocation8 + $0x283]]  ;;  %s316_s6 = scalar_lea.vmem [#allocation11], %s3243_s16 }
  0x8f   :  { %314 = vst [vmem:[#allocation2 + $0x1d] sm:$0x1] %v313_v21  ;;  %v317_v22 = vld [vmem:[%s316_s6] sm:$0x1]  ;;  %s320_s2 = scalar_lea.vmem [#allocation11], %s3244_s18  ;;  %s324_s24 = scalar_lea.vmem [#allocation11], %s4293_s19 }
  0x90   :  { %755 = vmatpush1.bf16.msra.mxu0 %v3662_v26  ;;  %318 = vst [vmem:[#allocation2 + $0x1e] sm:$0x1] %v317_v22  ;;  %v321_v24 = vld [vmem:[%s320_s2] sm:$0x1]  ;;  %v4321_v25 = vld [vmem:[#allocation16 + $0x60] ss:$16 sps:$4 sm:$0xff]  }
  0x91   :  { %756 = vmatprep.subr.bf16.mxu0 %v3670_v27  ;;  %v4323_v26 = vld [vmem:[#allocation16 + $0x68] ss:$16 sps:$4 sm:$0xff]   ;;  %322 = vst [vmem:[#allocation2 + $0x1f] sm:$0x1] %v321_v24  ;;  %v4326_v27 = vld [vmem:[#allocation16 + $0x6c] ss:$16 sps:$4 sm:$0xff]  }
  0x92   :  { %s328_s22 = scalar_lea.vmem [#allocation11], %s4297_s5  ;;  %s332_s23 = scalar_lea.vmem [#allocation11], %s4299_s17  ;;  %v4347_v35 = vld [vmem:[#allocation16 + $0x80] ss:$16 sps:$4 sm:$0xff]   ;;  %v4353_v36 = vld [vmem:[#allocation16 + $0x84] ss:$16 sps:$4 sm:$0xff]  }
  0x93   :  { %s336_s25 = scalar_lea.vmem [#allocation11], %s4305_s20  ;;  %s3251_s26 = sld [smem:[#allocation8 + $0x303]]  ;;  %v4360_v39 = vld [vmem:[#allocation16 + $0x88] ss:$16 sps:$4 sm:$0xff]   ;;  %v4365_v42 = vld [vmem:[#allocation16 + $0xa0] ss:$16 sps:$4 sm:$0xff]  }
  0x94   :  { %757 = vmatpush1.bf16.msra.mxu0 %v3668_v28  ;;  %v325_v28 = vld [vmem:[%s324_s24] sm:$0x1]  ;;  %s340_s27 = scalar_lea.vmem [#allocation11], %s4313_s4  ;;  %s4335_s28 = sld [smem:[#allocation8 + $0x383]]  ;;  %v4368_v44 = vld [vmem:[#allocation16 + $0xa4] ss:$16 sps:$4 sm:$0xff]  }
  0x95   :  { %758 = vmatprep.subr.bf16.mxu0 %v3676_v29  ;;  %326 = vst [vmem:[#allocation2 + $0x20] sm:$0x1] %v325_v28  ;;  %v329_v29 = vld [vmem:[%s328_s22] sm:$0x1]  ;;  %s344_s29 = scalar_lea.vmem [#allocation11], %s4317_s0  ;;  %s4339_s1 = sld [smem:[#allocation8 + $0x4]] }
  0x96   :  { %330 = vst [vmem:[#allocation2 + $0x21] sm:$0x1] %v329_v29  ;;  %v337_v31 = vld [vmem:[%s336_s25] sm:$0x1]  ;;  %s4341_s30 = sld [smem:[#allocation8 + $0x84]]  ;;  %s3261_s2 = sld [smem:[#allocation8 + $0x5]] }
  0x97   :  { %338 = vst [vmem:[#allocation2 + $0x23] sm:$0x1] %v337_v31  ;;  %v345_v34 = vld [vmem:[%s344_s29] sm:$0x1]  ;;  %s4343_s11 = sld [smem:[#allocation8 + $0x104]]  ;;  %s3262_s24 = sld [smem:[#allocation8 + $0x85]] }
  0x98   :  { %759 = vmatpush1.bf16.msra.mxu0 %v3674_v30  ;;  %v333_v30 = vld [vmem:[%s332_s23] sm:$0x1]  ;;  %346 = vst [vmem:[#allocation2 + $0x25] sm:$0x1] %v345_v34  ;;  %s4345_s12 = sld [smem:[#allocation8 + $0x184]]  ;;  %v454_v37 = vld [vmem:[#allocation2 + $0x18] sm:$0xff] }
  0x99   :  { %760 = vmatprep.subr.bf16.mxu0 %v3682_v32  ;;  %334 = vst [vmem:[#allocation2 + $0x22] sm:$0x1] %v333_v30  ;;  %v453_v32 = vld [vmem:[#allocation2 + $0x10] sm:$0xff]  ;;  %s4349_s13 = sld [smem:[#allocation8 + $0x204]]  ;;  %s348_s18 = scalar_lea.vmem [#allocation11], %s3251_s26 }
  0x9a   :  { %s4351_s14 = sld [smem:[#allocation8 + $0x284]]  ;;  %v349_v41 = vld [vmem:[%s348_s18] sm:$0x1]  ;;  %s352_s19 = scalar_lea.vmem [#allocation11], %s4335_s28  ;;  %v4418_v60 = vld [vmem:[#allocation16 + $0xcc] ss:$16 sps:$4 sm:$0xff]  }
  0x9b   :  { %s4355_s15 = sld [smem:[#allocation8 + $0x304]]  ;;  %350 = vst [vmem:[#allocation2 + $0x26] sm:$0x1] %v349_v41  ;;  %v353_v43 = vld [vmem:[%s352_s19] sm:$0x1]  ;;  %s356_s5 = scalar_lea.vmem [#allocation11], %s4339_s1 }
  0x9c   :  { %761 = vmatpush1.bf16.msra.mxu0 %v3680_v33  ;;  %v341_v33 = vld [vmem:[%s340_s27] sm:$0x1]  ;;  %s4357_s16 = sld [smem:[#allocation8 + $0x384]]  ;;  %354 = vst [vmem:[#allocation2 + $0x27] sm:$0x1] %v353_v43  ;;  %s360_s17 = scalar_lea.vmem [#allocation11], %s4341_s30 }
  0x9d   :  { %762 = vmatprep.subr.bf16.mxu0 %v3688_v38  ;;  %342 = vst [vmem:[#allocation2 + $0x24] sm:$0x1] %v341_v33  ;;  %v460_v38 = vpack.c.bf16 %v454_v37, %v453_v32  ;;  %v357_v45 = vld [vmem:[%s356_s5] sm:$0x1]  ;;  %s364_s20 = scalar_lea.vmem [#allocation11], %s4343_s11  ;;  %s4388_s22 = sld [smem:[#allocation8 + $0x105]] }
  0x9e   :  { %358 = vst [vmem:[#allocation2 + $0x28] sm:$0x1] %v357_v45  ;;  %v365_v47 = vld [vmem:[%s364_s20] sm:$0x1]  ;;  %s368_s21 = scalar_lea.vmem [#allocation11], %s4345_s12  ;;  %s4390_s23 = sld [smem:[#allocation8 + $0x185]] }
  0x9f   :  { %366 = vst [vmem:[#allocation2 + $0x2a] sm:$0x1] %v365_v47  ;;  %s372_s4 = scalar_lea.vmem [#allocation11], %s4349_s13  ;;  %s4395_s25 = sld [smem:[#allocation8 + $0x205]]  ;;  %v4420_v61 = vld [vmem:[#allocation16 + $0xe0] ss:$16 sps:$4 sm:$0xff]  }
  0xa0   :  { %763 = vmatpush1.bf16.msra.mxu0 %v3686_v40  ;;  %v4362_v40 = vld [vmem:[#allocation16 + $0x8c] ss:$16 sps:$4 sm:$0xff]   ;;  %v373_v49 = vld [vmem:[%s372_s4] sm:$0x1]  ;;  %s376_s3 = scalar_lea.vmem [#allocation11], %s4351_s14  ;;  %s4397_s26 = sld [smem:[#allocation8 + $0x285]] }
  0xa1   :  { %764 = vmatprep.subr.bf16.mxu0 %v3694_v46  ;;  %v361_v46 = vld [vmem:[%s360_s17] sm:$0x1]  ;;  %374 = vst [vmem:[#allocation2 + $0x2c] sm:$0x1] %v373_v49  ;;  %s380_s0 = scalar_lea.vmem [#allocation11], %s4355_s15  ;;  %s4401_s27 = sld [smem:[#allocation8 + $0x305]] }
  0xa2   :  { %362 = vst [vmem:[#allocation2 + $0x29] sm:$0x1] %v361_v46  ;;  %v377_v50 = vld [vmem:[%s376_s3] sm:$0x1]  ;;  %s384_s6 = scalar_lea.vmem [#allocation11], %s4357_s16  ;;  %s4403_s28 = sld [smem:[#allocation8 + $0x385]] }
  0xa3   :  { %378 = vst [vmem:[#allocation2 + $0x2d] sm:$0x1] %v377_v50  ;;  %s4406_s29 = sld [smem:[#allocation8 + $0x6]]  ;;  %v4422_v62 = vld [vmem:[#allocation16 + $0xe4] ss:$16 sps:$4 sm:$0xff]   ;;  %s388_s12 = scalar_lea.vmem [#allocation11], %s3261_s2 }
  0xa4   :  { %765 = vmatpush1.bf16.msra.mxu0 %v3692_v48  ;;  %v369_v48 = vld [vmem:[%s368_s21] sm:$0x1]  ;;  %s4408_s1 = sld [smem:[#allocation8 + $0x86]]  ;;  %s392_s13 = scalar_lea.vmem [#allocation11], %s3262_s24  ;;  %v4443_v30 = vld [vmem:[#allocation16 + $0xec] ss:$16 sps:$4 sm:$0xff]  }
  0xa5   :  { %1122 = vmatprep.subr.bf16.mxu0 %v4269_v5  ;;  %370 = vst [vmem:[#allocation2 + $0x2b] sm:$0x1] %v369_v48  ;;  %s4413_s30 = sld [smem:[#allocation8 + $0x106]]  ;;  %v389_v0 = vld [vmem:[%s388_s12] sm:$0x1]  ;;  %s396_s14 = scalar_lea.vmem [#allocation11], %s4388_s22 }
  0xa6   :  { %s4415_s11 = sld [smem:[#allocation8 + $0x186]]  ;;  %v393_v1 = vld [vmem:[%s392_s13] sm:$0x1]  ;;  %390 = vst [vmem:[#allocation2 + $0x30] sm:$0x1] %v389_v0  ;;  %s400_s15 = scalar_lea.vmem [#allocation11], %s4390_s23 }
  0xa7   :  { %394 = vst [vmem:[#allocation2 + $0x31] sm:$0x1] %v393_v1  ;;  %v397_v3 = vld [vmem:[%s396_s14] sm:$0x1]  ;;  %s404_s16 = scalar_lea.vmem [#allocation11], %s4395_s25  ;;  %s408_s18 = scalar_lea.vmem [#allocation11], %s4397_s26 }
  0xa8   :  { %398 = vst [vmem:[#allocation2 + $0x32] sm:$0x1] %v397_v3  ;;  %v401_v6 = vld [vmem:[%s400_s15] sm:$0x1]  ;;  %s412_s19 = scalar_lea.vmem [#allocation11], %s4401_s27  ;;  %s416_s5 = scalar_lea.vmem [#allocation11], %s4403_s28 }
  0xa9   :  { %v405_v9 = vld [vmem:[%s404_s16] sm:$0x1]  ;;  %402 = vst [vmem:[#allocation2 + $0x33] sm:$0x1] %v401_v6  ;;  %s420_s17 = scalar_lea.vmem [#allocation11], %s4406_s29  ;;  %s3273_s3 = sld [smem:[#allocation8 + $0x206]] }
  0xaa   :  { %406 = vst [vmem:[#allocation2 + $0x34] sm:$0x1] %v405_v9  ;;  %v409_v10 = vld [vmem:[%s408_s18] sm:$0x1]  ;;  %s424_s20 = scalar_lea.vmem [#allocation11], %s4408_s1  ;;  %s3276_s2 = sld [smem:[#allocation8 + $0x386]] }
  0xab   :  { %v413_v11 = vld [vmem:[%s412_s19] sm:$0x1]  ;;  %410 = vst [vmem:[#allocation2 + $0x35] sm:$0x1] %v409_v10  ;;  %s428_s21 = scalar_lea.vmem [#allocation11], %s4413_s30  ;;  %s4052_s30 = scalar_lea.hbm %s4941_s8, 1024 }
  0xac   :  { %414 = vst [vmem:[#allocation2 + $0x36] sm:$0x1] %v413_v11  ;;  %v417_v20 = vld [vmem:[%s416_s5] sm:$0x1]  ;;  %s432_s4 = scalar_lea.vmem [#allocation11], %s4415_s11  ;;  %p4053_p1 = scmp.ne.s32.totalorder %s4941_s8, %s4052_s30 }
  0xad   :  { %v421_v21 = vld [vmem:[%s420_s17] sm:$0x1]  ;;  %418 = vst [vmem:[#allocation2 + $0x37] sm:$0x1] %v417_v20  ;;  %p4056_p2 = scmp.lt.u32.totalorder %s4052_s30, %s4941_s8 }
  0xae   :  { %v4437_v22 = vld [vmem:[#allocation16 + $0xe8] ss:$16 sps:$4 sm:$0xff]   ;;  %422 = vst [vmem:[#allocation2 + $0x38] sm:$0x1] %v421_v21 }
  0xaf   :  { %v425_v24 = vld [vmem:[%s424_s20] sm:$0x1]  ;;  %s436_s24 = scalar_lea.vmem [#allocation11], %s3273_s3  ;;  %p4058_p3 = pnand %p4056_p2, %p4053_p1 }
  0xb0   :  { %v429_v28 = vld [vmem:[%s428_s21] sm:$0x1]  ;;  %426 = vst [vmem:[#allocation2 + $0x39] sm:$0x1] %v425_v24  ;;  %s448_s25 = scalar_lea.vmem [#allocation11], %s3276_s2 }
  0xb1   :  { %430 = vst [vmem:[#allocation2 + $0x3a] sm:$0x1] %v429_v28  ;;  %v433_v29 = vld [vmem:[%s432_s4] sm:$0x1] }
  0xb2   :  { %434 = vst [vmem:[#allocation2 + $0x3b] sm:$0x1] %v433_v29  ;;  %v437_v31 = vld [vmem:[%s436_s24] sm:$0x1] }
  0xb3   :  { %438 = vst [vmem:[#allocation2 + $0x3c] sm:$0x1] %v437_v31  ;;  %v449_v33 = vld [vmem:[%s448_s25] sm:$0x1] }
  0xb4   :  { %450 = vst [vmem:[#allocation2 + $0x3f] sm:$0x1] %v449_v33  ;;  %v457_v34 = vld [vmem:[#allocation2 + $0x30] sm:$0xff]  ;;  %v495_v45 = vld [vmem:[%s4940_s7] sm:$0xf]  ;;  %s4099_s7 = smov [#allocation5]  }
  0xb5   :  { %s109_s28 = sshll.u32 %s4099_s7, 4  ;;  %s110_s28 = int_to_ptr.vmem [resolvable:$true] %s109_s28 }
 0x15a   :  { %v220_v53 = vpop.f32.mrb[0].mxu0 }
 0x15b   :  { %v221_v55 = vadd.f32 %v3213_v52, %v220_v53  ;;  %v3598_v56 = vpop.f32.mrb[1].mxu0  ;;  %v381_v52 = vld [vmem:[%s380_s0] sm:$0x1]  ;;  %s3274_s0 = sld [smem:[#allocation8 + $0x286]] }
 0x15c   :  { %v223_v57 = vpop.f32.mrb[2].mxu0  ;;  %v385_v53 = vld [vmem:[%s384_s6] sm:$0x1]  ;;  %382 = vst [vmem:[#allocation2 + $0x2e] sm:$0x1] %v381_v52  ;;  %s3275_s6 = sld [smem:[#allocation8 + $0x306]] }
 0x15d   :  { %v3599_v58 = vpop.f32.mrb[3].mxu0  ;;  %v459_v59 = vpack.c.bf16 %v452_v54, %v221_v55  ;;  %v4384_v54 = vld [vmem:[#allocation16 + $0xa8] ss:$16 sps:$4 sm:$0xff]   ;;  %386 = vst [vmem:[#allocation2 + $0x2f] sm:$0x1] %v385_v53 }
 0x15e   :  { %v4386_v55 = vld [vmem:[#allocation16 + $0xac] ss:$16 sps:$4 sm:$0xff]   ;;  %v4392_v56 = vld [vmem:[#allocation16 + $0xc0] ss:$16 sps:$4 sm:$0xff]   ;;  %v4399_v57 = vld [vmem:[#allocation16 + $0xc4] ss:$16 sps:$4 sm:$0xff]  }
 0x15f   :  { %710 = vmatmul.mubr.bf16.vlgmr.msra.gmra.mrb[0].mxu1 %v459_v59  ;;  %783 = vmatmul.mubr.bf16.vlgmr.msra.gmra.mrb[4].mxu0 %v459_v59  ;;  %v455_v58 = vld [vmem:[#allocation2 + $0x20] sm:$0xff] }
 0x160   :  { %719 = vmatprep.mubr.bf16.mxu1 %v4944_v51  ;;  %792 = vmatprep.mubr.bf16.mxu0 %v4944_v51  ;;  %v4411_v59 = vld [vmem:[#allocation16 + $0xc8] ss:$16 sps:$4 sm:$0xff]  }
 0x161   :  { %1082 = vmatpush1.bf16.msra.mxu1 %v4272_v7  ;;  %1123 = vmatpush1.bf16.msra.mxu0 %v4274_v8  ;;  %s440_s22 = scalar_lea.vmem [#allocation11], %s3274_s0 }
 0x162   :  { %1083 = vmatprep.subr.bf16.mxu1 %v4283_v12  ;;  %1124 = vmatprep.subr.bf16.mxu0 %v4285_v13  ;;  %s444_s23 = scalar_lea.vmem [#allocation11], %s3275_s6 }
 0x163   :  { %v445_v32 = vld [vmem:[%s444_s23] sm:$0x1] }
 0x164   :  { %v456_v63 = vld [vmem:[#allocation2 + $0x28] sm:$0xff]  ;;  %446 = vst [vmem:[#allocation2 + $0x3e] sm:$0x1] %v445_v32 }
 0x165   :  { %1084 = vmatpush1.bf16.msra.mxu1 %v4287_v14  ;;  %1125 = vmatpush1.bf16.msra.mxu0 %v4289_v15  ;;  %v461_v2 = vpack.c.bf16 %v456_v63, %v455_v58 }
 0x166   :  { %1085 = vmatprep.subr.bf16.mxu1 %v4301_v16  ;;  %1126 = vmatprep.subr.bf16.mxu0 %v4303_v17 }
 0x167   :  { %720 = vmatmul.mubr.bf16.gmra.mrb[4].mxu1 %v460_v38  ;;  %793 = vmatmul.mubr.bf16.gmra.mrb[8].mxu0 %v460_v38 }
 0x168   :  { %729 = vmatprep.mubr.bf16.mxu1 %v4944_v51  ;;  %802 = vmatprep.mubr.bf16.mxu0 %v4944_v51 }
 0x169   :  { %1086 = vmatpush1.bf16.msra.mxu1 %v4307_v18  ;;  %1127 = vmatpush1.bf16.msra.mxu0 %v4309_v19 }
 0x16a   :  { %1087 = vmatprep.subr.bf16.mxu1 %v4319_v23  ;;  %1128 = vmatprep.subr.bf16.mxu0 %v4326_v27 }
 0x16d   :  { %1088 = vmatpush1.bf16.msra.mxu1 %v4321_v25  ;;  %1129 = vmatpush1.bf16.msra.mxu0 %v4323_v26 }
 0x16e   :  { %1089 = vmatprep.subr.bf16.mxu1 %v4353_v36  ;;  %1130 = vmatprep.subr.bf16.mxu0 %v4362_v40 }
 0x16f   :  { %730 = vmatmul.mubr.bf16.gmra.mrb[8].mxu1 %v461_v2  ;;  %803 = vmatmul.mubr.bf16.gmra.mrb[12].mxu0 %v461_v2 }
 0x170   :  { %739 = vmatprep.mubr.bf16.mxu1 %v4944_v51  ;;  %812 = vmatprep.mubr.bf16.mxu0 %v4944_v51 }
 0x171   :  { %1090 = vmatpush1.bf16.msra.mxu1 %v4347_v35  ;;  %1131 = vmatpush1.bf16.msra.mxu0 %v4360_v39 }
 0x172   :  { %1091 = vmatprep.subr.bf16.mxu1 %v4368_v44  ;;  %1132 = vmatprep.subr.bf16.mxu0 %v4386_v55 }
 0x175   :  { %1092 = vmatpush1.bf16.msra.mxu1 %v4365_v42  ;;  %1133 = vmatpush1.bf16.msra.mxu0 %v4384_v54 }
 0x176   :  { %1093 = vmatprep.subr.bf16.mxu1 %v4399_v57  ;;  %1134 = vmatprep.subr.bf16.mxu0 %v4418_v60 }
 0x179   :  { %1094 = vmatpush1.bf16.msra.mxu1 %v4392_v56  ;;  %1135 = vmatpush1.bf16.msra.mxu0 %v4411_v59 }
 0x17a   :  { %1095 = vmatprep.subr.bf16.mxu1 %v4422_v62  ;;  %1136 = vmatprep.subr.bf16.mxu0 %v4443_v30 }
 0x17d   :  { %1096 = vmatpush1.bf16.msra.mxu1 %v4420_v61  ;;  %1137 = vmatpush1.bf16.msra.mxu0 %v4437_v22 }
 0x17e   :  { %1389 = vmatprep.subr.bf16.mxu1 %v4267_v4  ;;  %1430 = vmatprep.subr.bf16.mxu0 %v4269_v5  ;;  %v441_v4 = vld [vmem:[%s440_s22] sm:$0x1]  ;;  %v497_v5 = vlaneseq }
 0x17f   :  { %442 = vst [vmem:[#allocation2 + $0x3d] sm:$0x1] %v441_v4 }
 0x180   :  { %v498_v41 = vshrl.u32 %v497_v5, 7 }
 0x182   :  { %v499_v43 = vsub.s32 0, %v498_v41  ;;  %v503_v46 = vsub.s32 1, %v498_v41  ;;  %v511_v52 = vsub.s32 3, %v498_v41  ;;  %v507_v20 = vsub.s32 2, %v498_v41 }
 0x184   :  { %v4453_v47 = vrot.slane %v495_v45, %v499_v43  ;;  %v4455_v48 = vrot.slane %v495_v45, %v503_v46  ;;  %v4467_v11 = vrot.slane %v495_v45, %v511_v52  ;;  %v4470_v24 = vrot.slane %v495_v45, %v507_v20 }
 0x186   :  { %v458_v37 = vld [vmem:[#allocation2 + $0x38] sm:$0xff] }
 0x187   :  { %v462_v38 = vpack.c.bf16 %v458_v37, %v457_v34 }
 0x189   :  { %740 = vmatmul.mubr.bf16.gmra.mrb[12].mxu1 %v462_v38  ;;  %813 = vmatmul.mubr.bf16.gmra.mrb[16].mxu0 %v462_v38 }
 0x18a   :  { %1113 = vmatprep.mubr.bf16.mxu1 %v4944_v51  ;;  %1154 = vmatprep.mubr.bf16.mxu0 %v4944_v51 }
 0x232   :  { %v711_v49 = vpop.f32.mrb[0].mxu1  ;;  %v784_v50 = vpop.f32.mrb[4].mxu0 }
 0x233   :  { %v712_v53 = vadd.f32 %v711_v49, %v4453_v47  ;;  %v713_v58 = vpop.f32.mrb[1].mxu1  ;;  %v786_v63 = vpop.f32.mrb[5].mxu0  ;;  %v785_v29 = vadd.f32 %v784_v50, %v4470_v24 }
 0x234   :  { %v714_v0 = vadd.f32 %v713_v58, %v4455_v48  ;;  %v4459_v1 = vpop.f32.mrb[2].mxu1  ;;  %v4461_v2 = vpop.f32.mrb[6].mxu0  ;;  %v787_v21 = vadd.f32 %v786_v63, %v4467_v11 }
 0x235   :  { %v3309_v3 = vmul.f32 -1.442695, %v712_v53  ;;  %v4463_v6 = vpop.f32.mrb[3].mxu1  ;;  %v4465_v9 = vpop.f32.mrb[7].mxu0 }
 0x236   :  { %v3310_v10 = vmul.f32 -1.442695, %v714_v0  ;;  %v3311_v28 = vmul.f32 -1.442695, %v787_v21 }
 0x237   :  { %3804 = vpow2.f32 %v3309_v3 }
 0x238   :  { %3806 = vpow2.f32 %v3310_v10 }
 0x239   :  { %3808 = vpow2.f32 %v3311_v28 }
 0x23a   :  { %3810 = vtanh.f32 %v785_v29 }
 0x241   :  { %v3805_v31 = vpop.eup %3804 }
 0x242   :  { %v3807_v4 = vpop.eup %3806  ;;  %v862_v32 = vadd.f32 1.0, %v3805_v31 }
 0x243   :  { %v868_v33 = vadd.f32 1.0, %v3807_v4  ;;  %v3809_v34 = vpop.eup %3808 }
 0x244   :  { %3812 = vrcp.f32 %v862_v32  ;;  %v3811_v37 = vpop.eup %3810  ;;  %v875_v43 = vadd.f32 1.0, %v3809_v34 }
 0x245   :  { %3814 = vrcp.f32 %v868_v33 }
 0x246   :  { %3816 = vrcp.f32 %v875_v43  ;;  %v716_v43 = vadd.f32 %v4459_v1, %v4453_v47 }
 0x24e   :  { %v3813_v38 = vpop.eup %3812 }
 0x24f   :  { %v3815_v5 = vpop.eup %3814  ;;  %v879_v41 = vmul.f32 %v3813_v38, %v3811_v37 }
 0x250   :  { %v878_v46 = vmul.f32 0.0, %v3815_v5  ;;  %v3817_v49 = vpop.eup %3816 }
 0x252   :  { %v4473_v45 = vadd.f32 %v879_v41, %v878_v46  ;;  %v789_v46 = vadd.f32 %v4461_v2, %v4470_v24 }
 0x254   :  { %3818 = vtanh.f32 %v4473_v45 }
 0x25e   :  { %v3819_v50 = vpop.eup %3818 }
 0x25f   :  { %v4476_v52 = vmul.f32 %v3819_v50, %v3817_v49  ;;  %v718_v49 = vadd.f32 %v4463_v6, %v4455_v48  ;;  %v791_v50 = vadd.f32 %v4465_v9, %v4467_v11 }
 0x261   :  { %4947 = vst [vmem:[#allocation26_spill] sm:$0xff] %v4476_v52  ;;  %v888_v53 = vpack.c.bf16 %v4476_v52, %v4476_v52 }
 0x263   :  { %1114 = vmatmul.mubr.bf16.vlgmr.msra.gmra.mrb[16].mxu1 %v888_v53  ;;  %1155 = vmatmul.mubr.bf16.vlgmr.msra.gmra.mrb[20].mxu0 %v888_v53 }
 0x264   :  { %1390 = vmatpush1.bf16.msra.mxu1 %v4272_v7  ;;  %1431 = vmatpush1.bf16.msra.mxu0 %v4274_v8  ;;  %v4512_v7 = vpop.f32.mrb[4].mxu1  ;;  %v4514_v8 = vpop.f32.mrb[8].mxu0 }
 0x265   :  { %1391 = vmatprep.subr.bf16.mxu1 %v4283_v12  ;;  %1432 = vmatprep.subr.bf16.mxu0 %v4285_v13  ;;  %v4516_v12 = vpop.f32.mrb[5].mxu1  ;;  %v4518_v13 = vpop.f32.mrb[9].mxu0 }
 0x266   :  { %1421 = vmatprep.mubr.bf16.mxu1 %v4944_v51  ;;  %1462 = vmatprep.mubr.bf16.mxu0 %v4944_v51 }
 0x268   :  { %1392 = vmatpush1.bf16.msra.mxu1 %v4287_v14  ;;  %1433 = vmatpush1.bf16.msra.mxu0 %v4289_v15  ;;  %v4520_v14 = vpop.f32.mrb[6].mxu1  ;;  %v4522_v15 = vpop.f32.mrb[10].mxu0 }
 0x269   :  { %1393 = vmatprep.subr.bf16.mxu1 %v4301_v16  ;;  %1434 = vmatprep.subr.bf16.mxu0 %v4303_v17  ;;  %v4524_v58 = vpop.f32.mrb[7].mxu1  ;;  %v4526_v63 = vpop.f32.mrb[11].mxu0 }
 0x26a   :  { %v4528_v0 = vpop.f32.mrb[8].mxu1  ;;  %v4530_v3 = vpop.f32.mrb[12].mxu0 }
 0x26b   :  { %v4532_v10 = vpop.f32.mrb[9].mxu1  ;;  %v4534_v20 = vpop.f32.mrb[13].mxu0 }
 0x26c   :  { %1394 = vmatpush1.bf16.msra.mxu1 %v4307_v18  ;;  %1435 = vmatpush1.bf16.msra.mxu0 %v4309_v19  ;;  %v4536_v21 = vpop.f32.mrb[10].mxu1  ;;  %v4538_v28 = vpop.f32.mrb[14].mxu0 }
 0x26d   :  { %1395 = vmatprep.subr.bf16.mxu1 %v4319_v23  ;;  %1436 = vmatprep.subr.bf16.mxu0 %v4326_v27  ;;  %4948 = vst [vmem:[#allocation27_spill] sm:$0xff] %v4538_v28  ;;  %v4540_v29 = vpop.f32.mrb[11].mxu1  ;;  %v4542_v31 = vpop.f32.mrb[15].mxu0 }
 0x26e   :  { %4949 = vst [vmem:[#allocation28_spill] sm:$0xff] %v4540_v29  ;;  %4950 = vst [vmem:[#allocation29_spill] sm:$0xff] %v4542_v31  ;;  %v4544_v4 = vpop.f32.mrb[12].mxu1  ;;  %v4546_v32 = vpop.f32.mrb[16].mxu0 }
 0x26f   :  { %4951 = vst [vmem:[#allocation30_spill] sm:$0xff] %v4544_v4  ;;  %4952 = vst [vmem:[#allocation31_spill] sm:$0xff] %v4546_v32  ;;  %v4548_v33 = vpop.f32.mrb[13].mxu1  ;;  %v4550_v34 = vpop.f32.mrb[17].mxu0 }
 0x270   :  { %1396 = vmatpush1.bf16.msra.mxu1 %v4321_v25  ;;  %1437 = vmatpush1.bf16.msra.mxu0 %v4323_v26  ;;  %4953 = vst [vmem:[#allocation32_spill] sm:$0xff] %v4548_v33  ;;  %4954 = vst [vmem:[#allocation33_spill] sm:$0xff] %v4550_v34  ;;  %v4552_v37 = vpop.f32.mrb[14].mxu1  ;;  %v4554_v38 = vpop.f32.mrb[18].mxu0 }
 0x271   :  { %1397 = vmatprep.subr.bf16.mxu1 %v4353_v36  ;;  %1438 = vmatprep.subr.bf16.mxu0 %v4362_v40  ;;  %4955 = vst [vmem:[#allocation34_spill] sm:$0xff] %v4552_v37  ;;  %4956 = vst [vmem:[#allocation35_spill] sm:$0xff] %v4554_v38  ;;  %v4556_v5 = vpop.f32.mrb[15].mxu1  ;;  %v4558_v41 = vpop.f32.mrb[19].mxu0 }
 0x272   :  { %4957 = vst [vmem:[#allocation36_spill] sm:$0xff] %v4556_v5  ;;  %4958 = vst [vmem:[#allocation37_spill] sm:$0xff] %v4558_v41 }
 0x274   :  { %1398 = vmatpush1.bf16.msra.mxu1 %v4347_v35  ;;  %1439 = vmatpush1.bf16.msra.mxu0 %v4360_v39 }
 0x275   :  { %1399 = vmatprep.subr.bf16.mxu1 %v4368_v44  ;;  %1440 = vmatprep.subr.bf16.mxu0 %v4386_v55 }
 0x278   :  { %1400 = vmatpush1.bf16.msra.mxu1 %v4365_v42  ;;  %1441 = vmatpush1.bf16.msra.mxu0 %v4384_v54 }
 0x279   :  { %1401 = vmatprep.subr.bf16.mxu1 %v4399_v57  ;;  %1442 = vmatprep.subr.bf16.mxu0 %v4418_v60 }
 0x27c   :  { %1402 = vmatpush1.bf16.msra.mxu1 %v4392_v56  ;;  %1443 = vmatpush1.bf16.msra.mxu0 %v4411_v59 }
 0x27d   :  { %1403 = vmatprep.subr.bf16.mxu1 %v4422_v62  ;;  %1444 = vmatprep.subr.bf16.mxu0 %v4443_v30 }
 0x280   :  { %1404 = vmatpush1.bf16.msra.mxu1 %v4420_v61  ;;  %1445 = vmatpush1.bf16.msra.mxu0 %v4437_v22 }
 0x336   :  { %v1115_v53 = vpop.f32.mrb[16].mxu1  ;;  %v1156_v51 = vpop.f32.mrb[20].mxu0 }
 0x337   :  { %v1163_v52 = vadd.f32 %v1115_v53, %v716_v43  ;;  %v1165_v38 = vadd.f32 %v1156_v51, %v789_v46  ;;  %v1117_v37 = vpop.f32.mrb[17].mxu1  ;;  %v1158_v5 = vpop.f32.mrb[21].mxu0  ;;  %v4578_v46 = vld [vmem:[#allocation16 + $0x4] ss:$16 sps:$4 sm:$0xff]  }
 0x338   :  { %v1164_v34 = vadd.f32 %v1117_v37, %v718_v49  ;;  %v1166_v41 = vadd.f32 %v1158_v5, %v791_v50  ;;  %v1119_v33 = vpop.f32.mrb[18].mxu1  ;;  %v1160_v32 = vpop.f32.mrb[22].mxu0  ;;  %v4582_v49 = vld [vmem:[#allocation16] ss:$16 sps:$4 sm:$0xff]   ;;  %v4584_v50 = vld [vmem:[#allocation16 + $0x8] ss:$16 sps:$4 sm:$0xff]   ;;  %1697 = vmatprep.subr.bf16.mxu1 %v4578_v46 }
 0x339   :  { %v3344_v1 = vmul.f32 -1.442695, %v1163_v52  ;;  %v1120_v4 = vpop.f32.mrb[19].mxu1  ;;  %v1161_v31 = vpop.f32.mrb[23].mxu0  ;;  %v4590_v53 = vld [vmem:[#allocation16 + $0x24] ss:$16 sps:$4 sm:$0xff]  }
 0x33a   :  { %v3345_v2 = vmul.f32 -1.442695, %v1164_v34  ;;  %v3346_v6 = vmul.f32 -1.442695, %v1166_v41 }
 0x33b   :  { %3820 = vpow2.f32 %v3344_v1  ;;  %v4592_v1 = vld [vmem:[#allocation16 + $0x2c] ss:$16 sps:$4 sm:$0xff]  }
 0x33c   :  { %3822 = vpow2.f32 %v3345_v2  ;;  %v4594_v2 = vld [vmem:[#allocation16 + $0x20] ss:$16 sps:$4 sm:$0xff]  }
 0x33d   :  { %3824 = vpow2.f32 %v3346_v6  ;;  %v4596_v6 = vld [vmem:[#allocation16 + $0x28] ss:$16 sps:$4 sm:$0xff]  }
 0x33e   :  { %3826 = vtanh.f32 %v1165_v38  ;;  %v4959_v38 = vmov 0  }
 0x345   :  { %v3821_v29 = vpop.eup %3820 }
 0x346   :  { %v3823_v28 = vpop.eup %3822  ;;  %v1170_v9 = vadd.f32 1.0, %v3821_v29 }
 0x347   :  { %v1176_v43 = vadd.f32 1.0, %v3823_v28  ;;  %v3825_v51 = vpop.eup %3824 }
 0x348   :  { %3828 = vrcp.f32 %v1170_v9  ;;  %v3827_v37 = vpop.eup %3826  ;;  %v1183_v52 = vadd.f32 1.0, %v3825_v51 }
 0x349   :  { %3830 = vrcp.f32 %v1176_v43 }
 0x34a   :  { %3832 = vrcp.f32 %v1183_v52 }
 0x352   :  { %v3829_v5 = vpop.eup %3828 }
 0x353   :  { %v3831_v33 = vpop.eup %3830  ;;  %v1187_v32 = vmul.f32 %v3829_v5, %v3827_v37 }
 0x354   :  { %v1186_v31 = vmul.f32 %v3831_v33, %v4473_v45  ;;  %v3833_v34 = vpop.eup %3832  ;;  %v4580_v45 = vld [vmem:[#allocation16 + $0xc] ss:$16 sps:$4 sm:$0xff]  }
 0x355   :  { %1738 = vmatprep.subr.bf16.mxu0 %v4580_v45 }
 0x356   :  { %v4569_v4 = vadd.f32 %v1187_v32, %v1186_v31 }
 0x358   :  { %3834 = vtanh.f32 %v4569_v4 }
 0x362   :  { %v3835_v29 = vpop.eup %3834 }
 0x363   :  { %v4572_v41 = vmul.f32 %v3835_v29, %v3833_v34 }
 0x365   :  { %v1196_v28 = vpack.c.bf16 %v4572_v41, %v4572_v41 }
 0x367   :  { %1422 = vmatmul.mubr.bf16.vlgmr.msra.gmra.mrb[20].mxu1 %v1196_v28  ;;  %1463 = vmatmul.mubr.bf16.vlgmr.msra.gmra.mrb[24].mxu0 %v1196_v28 }
 0x368   :  { %1729 = vmatprep.mubr.bf16.mxu1 %v4959_v38  ;;  %1770 = vmatprep.mubr.bf16.mxu0 %v4959_v38 }
 0x369   :  { %1698 = vmatpush1.bf16.msra.mxu1 %v4582_v49  ;;  %1739 = vmatpush1.bf16.msra.mxu0 %v4584_v50 }
 0x36a   :  { %1699 = vmatprep.subr.bf16.mxu1 %v4590_v53  ;;  %1740 = vmatprep.subr.bf16.mxu0 %v4592_v1 }
 0x36d   :  { %1700 = vmatpush1.bf16.msra.mxu1 %v4594_v2  ;;  %1741 = vmatpush1.bf16.msra.mxu0 %v4596_v6 }
 0x36e   :  { %1701 = vmatprep.subr.bf16.mxu1 %v4301_v16  ;;  %1742 = vmatprep.subr.bf16.mxu0 %v4303_v17  ;;  %v722_v16 = vadd.f32 %v4512_v7, %v4453_v47  ;;  %v795_v17 = vadd.f32 %v4514_v8, %v4470_v24 }
 0x371   :  { %1702 = vmatpush1.bf16.msra.mxu1 %v4307_v18  ;;  %1743 = vmatpush1.bf16.msra.mxu0 %v4309_v19  ;;  %v724_v18 = vadd.f32 %v4516_v12, %v4455_v48  ;;  %v797_v19 = vadd.f32 %v4518_v13, %v4467_v11 }
 0x372   :  { %1703 = vmatprep.subr.bf16.mxu1 %v4319_v23  ;;  %1744 = vmatprep.subr.bf16.mxu0 %v4326_v27 }
 0x375   :  { %1704 = vmatpush1.bf16.msra.mxu1 %v4321_v25  ;;  %1745 = vmatpush1.bf16.msra.mxu0 %v4323_v26 }
 0x376   :  { %1705 = vmatprep.subr.bf16.mxu1 %v4353_v36  ;;  %1746 = vmatprep.subr.bf16.mxu0 %v4362_v40 }
 0x379   :  { %1706 = vmatpush1.bf16.msra.mxu1 %v4347_v35  ;;  %1747 = vmatpush1.bf16.msra.mxu0 %v4360_v39 }
 0x37a   :  { %1707 = vmatprep.subr.bf16.mxu1 %v4368_v44  ;;  %1748 = vmatprep.subr.bf16.mxu0 %v4386_v55 }
 0x37d   :  { %1708 = vmatpush1.bf16.msra.mxu1 %v4365_v42  ;;  %1749 = vmatpush1.bf16.msra.mxu0 %v4384_v54 }
 0x37e   :  { %1709 = vmatprep.subr.bf16.mxu1 %v4399_v57  ;;  %1750 = vmatprep.subr.bf16.mxu0 %v4418_v60 }
 0x381   :  { %1710 = vmatpush1.bf16.msra.mxu1 %v4392_v56  ;;  %1751 = vmatpush1.bf16.msra.mxu0 %v4411_v59 }
 0x382   :  { %1711 = vmatprep.subr.bf16.mxu1 %v4422_v62  ;;  %1752 = vmatprep.subr.bf16.mxu0 %v4443_v30 }
 0x385   :  { %1712 = vmatpush1.bf16.msra.mxu1 %v4420_v61  ;;  %1753 = vmatpush1.bf16.msra.mxu0 %v4437_v22 }
 0x386   :  { %2005 = vmatprep.subr.bf16.mxu1 %v4578_v46  ;;  %2046 = vmatprep.subr.bf16.mxu0 %v4580_v45 }
 0x43a   :  { %v1423_v23 = vpop.f32.mrb[20].mxu1  ;;  %v1464_v25 = vpop.f32.mrb[24].mxu0 }
 0x43b   :  { %v1471_v26 = vadd.f32 %v1423_v23, %v722_v16  ;;  %v1473_v27 = vadd.f32 %v1464_v25, %v795_v17  ;;  %v1425_v9 = vpop.f32.mrb[21].mxu1  ;;  %v1466_v43 = vpop.f32.mrb[25].mxu0 }
 0x43c   :  { %v1472_v51 = vadd.f32 %v1425_v9, %v724_v18  ;;  %v1474_v37 = vadd.f32 %v1466_v43, %v797_v19  ;;  %v1427_v5 = vpop.f32.mrb[22].mxu1  ;;  %v1468_v33 = vpop.f32.mrb[26].mxu0 }
 0x43d   :  { %v3379_v7 = vmul.f32 -1.442695, %v1471_v26  ;;  %v1428_v32 = vpop.f32.mrb[23].mxu1  ;;  %v1469_v52 = vpop.f32.mrb[27].mxu0  ;;  %v4656_v5 = vld [vmem:[#allocation16 + $0x40] ss:$16 sps:$4 sm:$0xff]  }
 0x43e   :  { %v3380_v8 = vmul.f32 -1.442695, %v1472_v51  ;;  %v3381_v12 = vmul.f32 -1.442695, %v1474_v37  ;;  %v4654_v37 = vld [vmem:[#allocation16 + $0x4c] ss:$16 sps:$4 sm:$0xff]  }
 0x43f   :  { %3836 = vpow2.f32 %v3379_v7  ;;  %v4658_v33 = vld [vmem:[#allocation16 + $0x48] ss:$16 sps:$4 sm:$0xff]   ;;  %v4664_v7 = vld [vmem:[#allocation16 + $0x64] ss:$16 sps:$4 sm:$0xff]   ;;  %v4666_v32 = vld [vmem:[#allocation16 + $0x6c] ss:$16 sps:$4 sm:$0xff]  }
 0x440   :  { %3838 = vpow2.f32 %v3380_v8  ;;  %v4668_v52 = vld [vmem:[#allocation16 + $0x60] ss:$16 sps:$4 sm:$0xff]   ;;  %v4670_v8 = vld [vmem:[#allocation16 + $0x68] ss:$16 sps:$4 sm:$0xff]  }
 0x441   :  { %3840 = vpow2.f32 %v3381_v12 }
 0x442   :  { %3842 = vtanh.f32 %v1473_v27 }
 0x449   :  { %v3837_v31 = vpop.eup %3836 }
 0x44a   :  { %v3839_v34 = vpop.eup %3838  ;;  %v1478_v13 = vadd.f32 1.0, %v3837_v31 }
 0x44b   :  { %v1484_v29 = vadd.f32 1.0, %v3839_v34  ;;  %v3841_v28 = vpop.eup %3840 }
 0x44c   :  { %3844 = vrcp.f32 %v1478_v13  ;;  %v3843_v16 = vpop.eup %3842  ;;  %v1491_v23 = vadd.f32 1.0, %v3841_v28 }
 0x44d   :  { %3846 = vrcp.f32 %v1484_v29 }
 0x44e   :  { %3848 = vrcp.f32 %v1491_v23 }
 0x456   :  { %v3845_v17 = vpop.eup %3844 }
 0x457   :  { %v3847_v18 = vpop.eup %3846  ;;  %v1495_v19 = vmul.f32 %v3845_v17, %v3843_v16 }
 0x458   :  { %v1494_v25 = vmul.f32 %v3847_v18, %v4569_v4  ;;  %v3849_v9 = vpop.eup %3848  ;;  %v4652_v4 = vld [vmem:[#allocation16 + $0x44] ss:$16 sps:$4 sm:$0xff]  }
 0x45a   :  { %v4637_v26 = vadd.f32 %v1495_v19, %v1494_v25 }
 0x45c   :  { %3850 = vtanh.f32 %v4637_v26 }
 0x466   :  { %v3851_v43 = vpop.eup %3850 }
 0x467   :  { %v4640_v51 = vmul.f32 %v3851_v43, %v3849_v9 }
 0x469   :  { %v1504_v27 = vpack.c.bf16 %v4640_v51, %v4640_v51 }
 0x46b   :  { %1730 = vmatmul.mubr.bf16.vlgmr.msra.gmra.mrb[24].mxu1 %v1504_v27  ;;  %1771 = vmatmul.mubr.bf16.vlgmr.msra.gmra.mrb[28].mxu0 %v1504_v27 }
 0x46c   :  { %2006 = vmatpush1.bf16.msra.mxu1 %v4582_v49  ;;  %2047 = vmatpush1.bf16.msra.mxu0 %v4584_v50 }
 0x46d   :  { %2007 = vmatprep.subr.bf16.mxu1 %v4590_v53  ;;  %2048 = vmatprep.subr.bf16.mxu0 %v4592_v1 }
 0x46e   :  { %2037 = vmatprep.mubr.bf16.mxu1 %v4959_v38  ;;  %2078 = vmatprep.mubr.bf16.mxu0 %v4959_v38 }
 0x470   :  { %2008 = vmatpush1.bf16.msra.mxu1 %v4594_v2  ;;  %2049 = vmatpush1.bf16.msra.mxu0 %v4596_v6 }
 0x471   :  { %2009 = vmatprep.subr.bf16.mxu1 %v4652_v4  ;;  %2050 = vmatprep.subr.bf16.mxu0 %v4654_v37 }
 0x474   :  { %2010 = vmatpush1.bf16.msra.mxu1 %v4656_v5  ;;  %2051 = vmatpush1.bf16.msra.mxu0 %v4658_v33 }
 0x475   :  { %2011 = vmatprep.subr.bf16.mxu1 %v4664_v7  ;;  %2052 = vmatprep.subr.bf16.mxu0 %v4666_v32 }
 0x478   :  { %2012 = vmatpush1.bf16.msra.mxu1 %v4668_v52  ;;  %2053 = vmatpush1.bf16.msra.mxu0 %v4670_v8 }
 0x479   :  { %2013 = vmatprep.subr.bf16.mxu1 %v4353_v36  ;;  %2054 = vmatprep.subr.bf16.mxu0 %v4362_v40  ;;  %v799_v36 = vadd.f32 %v4522_v15, %v4470_v24  ;;  %v801_v40 = vadd.f32 %v4526_v63, %v4467_v11 }
 0x47c   :  { %2014 = vmatpush1.bf16.msra.mxu1 %v4347_v35  ;;  %2055 = vmatpush1.bf16.msra.mxu0 %v4360_v39  ;;  %v726_v35 = vadd.f32 %v4520_v14, %v4453_v47  ;;  %v728_v39 = vadd.f32 %v4524_v58, %v4455_v48 }
 0x47d   :  { %2015 = vmatprep.subr.bf16.mxu1 %v4368_v44  ;;  %2056 = vmatprep.subr.bf16.mxu0 %v4386_v55 }
 0x480   :  { %2016 = vmatpush1.bf16.msra.mxu1 %v4365_v42  ;;  %2057 = vmatpush1.bf16.msra.mxu0 %v4384_v54 }
 0x481   :  { %2017 = vmatprep.subr.bf16.mxu1 %v4399_v57  ;;  %2058 = vmatprep.subr.bf16.mxu0 %v4418_v60 }
 0x484   :  { %2018 = vmatpush1.bf16.msra.mxu1 %v4392_v56  ;;  %2059 = vmatpush1.bf16.msra.mxu0 %v4411_v59 }
 0x485   :  { %2019 = vmatprep.subr.bf16.mxu1 %v4422_v62  ;;  %2060 = vmatprep.subr.bf16.mxu0 %v4443_v30 }
 0x488   :  { %2020 = vmatpush1.bf16.msra.mxu1 %v4420_v61  ;;  %2061 = vmatpush1.bf16.msra.mxu0 %v4437_v22 }
 0x489   :  { %2313 = vmatprep.subr.bf16.mxu1 %v4578_v46  ;;  %2354 = vmatprep.subr.bf16.mxu0 %v4580_v45 }
 0x53e   :  { %v1731_v42 = vpop.f32.mrb[24].mxu1  ;;  %v1772_v44 = vpop.f32.mrb[28].mxu0 }
 0x53f   :  { %v1779_v54 = vadd.f32 %v1731_v42, %v726_v35  ;;  %v1781_v55 = vadd.f32 %v1772_v44, %v799_v36  ;;  %v1733_v56 = vpop.f32.mrb[25].mxu1  ;;  %v1774_v57 = vpop.f32.mrb[29].mxu0  ;;  %v4728_v35 = vld [vmem:[#allocation16 + $0x84] ss:$16 sps:$4 sm:$0xff]   ;;  %v4730_v36 = vld [vmem:[#allocation16 + $0x88] ss:$16 sps:$4 sm:$0xff]  }
 0x540   :  { %v1780_v59 = vadd.f32 %v1733_v56, %v728_v39  ;;  %v1782_v60 = vadd.f32 %v1774_v57, %v801_v40  ;;  %v1735_v61 = vpop.f32.mrb[26].mxu1  ;;  %v1776_v62 = vpop.f32.mrb[30].mxu0  ;;  %v4732_v39 = vld [vmem:[#allocation16 + $0x8c] ss:$16 sps:$4 sm:$0xff]   ;;  %v4734_v40 = vld [vmem:[#allocation16 + $0xa4] ss:$16 sps:$4 sm:$0xff]  }
 0x541   :  { %v3414_v22 = vmul.f32 -1.442695, %v1779_v54  ;;  %v1736_v30 = vpop.f32.mrb[27].mxu1  ;;  %v1777_v14 = vpop.f32.mrb[31].mxu0  ;;  %v4737_v42 = vld [vmem:[#allocation16 + $0xac] ss:$16 sps:$4 sm:$0xff]  }
 0x542   :  { %v3415_v15 = vmul.f32 -1.442695, %v1780_v59  ;;  %v3416_v58 = vmul.f32 -1.442695, %v1782_v60  ;;  %v4741_v44 = vld [vmem:[#allocation16 + $0xa0] ss:$16 sps:$4 sm:$0xff]   ;;  %v732_v30 = vadd.f32 %v4528_v0, %v4453_v47  ;;  %v805_v14 = vadd.f32 %v4530_v3, %v4470_v24 }
 0x543   :  { %3852 = vpow2.f32 %v3414_v22  ;;  %v4745_v54 = vld [vmem:[#allocation16 + $0xa8] ss:$16 sps:$4 sm:$0xff]   ;;  %v4750_v56 = vld [vmem:[#allocation16 + $0xcc] ss:$16 sps:$4 sm:$0xff]   ;;  %v4753_v57 = vld [vmem:[#allocation16 + $0xc0] ss:$16 sps:$4 sm:$0xff]  }
 0x544   :  { %3854 = vpow2.f32 %v3415_v15  ;;  %v4757_v59 = vld [vmem:[#allocation16 + $0xc8] ss:$16 sps:$4 sm:$0xff]   ;;  %v4759_v60 = vld [vmem:[#allocation16 + $0xe4] ss:$16 sps:$4 sm:$0xff]   ;;  %v4762_v61 = vld [vmem:[#allocation16 + $0xec] ss:$16 sps:$4 sm:$0xff]   ;;  %v734_v15 = vadd.f32 %v4532_v10, %v4455_v48 }
 0x545   :  { %3856 = vpow2.f32 %v3416_v58  ;;  %v4765_v62 = vld [vmem:[#allocation16 + $0xe0] ss:$16 sps:$4 sm:$0xff]   ;;  %v4769_v22 = vld [vmem:[#allocation16 + $0xe8] ss:$16 sps:$4 sm:$0xff]   ;;  %v807_v58 = vadd.f32 %v4534_v20, %v4467_v11 }
 0x546   :  { %3858 = vtanh.f32 %v1781_v55  ;;  %v4747_v55 = vld [vmem:[#allocation16 + $0xc4] ss:$16 sps:$4 sm:$0xff]  }
 0x54d   :  { %v3853_v12 = vpop.eup %3852 }
 0x54e   :  { %v3855_v31 = vpop.eup %3854  ;;  %v1786_v63 = vadd.f32 1.0, %v3853_v12 }
 0x54f   :  { %v1792_v34 = vadd.f32 1.0, %v3855_v31  ;;  %v3857_v13 = vpop.eup %3856 }
 0x550   :  { %3860 = vrcp.f32 %v1786_v63  ;;  %v3859_v29 = vpop.eup %3858  ;;  %v1799_v18 = vadd.f32 1.0, %v3857_v13 }
 0x551   :  { %3862 = vrcp.f32 %v1792_v34 }
 0x552   :  { %3864 = vrcp.f32 %v1799_v18 }
 0x55a   :  { %v3861_v28 = vpop.eup %3860 }
 0x55b   :  { %v3863_v16 = vpop.eup %3862  ;;  %v1803_v17 = vmul.f32 %v3861_v28, %v3859_v29 }
 0x55c   :  { %v1802_v19 = vmul.f32 %v3863_v16, %v4637_v26  ;;  %v3865_v25 = vpop.eup %3864  ;;  %v4726_v26 = vld [vmem:[#allocation16 + $0x80] ss:$16 sps:$4 sm:$0xff]  }
 0x55e   :  { %v4703_v23 = vadd.f32 %v1803_v17, %v1802_v19 }
 0x560   :  { %3866 = vtanh.f32 %v4703_v23 }
 0x56a   :  { %v3867_v9 = vpop.eup %3866 }
 0x56b   :  { %v4706_v43 = vmul.f32 %v3867_v9, %v3865_v25 }
 0x56d   :  { %v1812_v27 = vpack.c.bf16 %v4706_v43, %v4706_v43 }
 0x56f   :  { %2038 = vmatmul.mubr.bf16.vlgmr.msra.gmra.mrb[28].mxu1 %v1812_v27  ;;  %2079 = vmatmul.mubr.bf16.vlgmr.msra.gmra.mrb[32].mxu0 %v1812_v27 }
 0x570   :  { %2314 = vmatpush1.bf16.msra.mxu1 %v4582_v49  ;;  %2355 = vmatpush1.bf16.msra.mxu0 %v4584_v50 }
 0x571   :  { %2315 = vmatprep.subr.bf16.mxu1 %v4590_v53  ;;  %2356 = vmatprep.subr.bf16.mxu0 %v4592_v1 }
 0x572   :  { %2345 = vmatprep.mubr.bf16.mxu1 %v4959_v38  ;;  %2386 = vmatprep.mubr.bf16.mxu0 %v4959_v38 }
 0x574   :  { %2316 = vmatpush1.bf16.msra.mxu1 %v4594_v2  ;;  %2357 = vmatpush1.bf16.msra.mxu0 %v4596_v6 }
 0x575   :  { %2317 = vmatprep.subr.bf16.mxu1 %v4652_v4  ;;  %2358 = vmatprep.subr.bf16.mxu0 %v4654_v37 }
 0x578   :  { %2318 = vmatpush1.bf16.msra.mxu1 %v4656_v5  ;;  %2359 = vmatpush1.bf16.msra.mxu0 %v4658_v33 }
 0x579   :  { %2319 = vmatprep.subr.bf16.mxu1 %v4664_v7  ;;  %2360 = vmatprep.subr.bf16.mxu0 %v4666_v32 }
 0x57c   :  { %2320 = vmatpush1.bf16.msra.mxu1 %v4668_v52  ;;  %2361 = vmatpush1.bf16.msra.mxu0 %v4670_v8 }
 0x57d   :  { %2321 = vmatprep.subr.bf16.mxu1 %v4728_v35  ;;  %2362 = vmatprep.subr.bf16.mxu0 %v4732_v39 }
 0x580   :  { %2322 = vmatpush1.bf16.msra.mxu1 %v4726_v26  ;;  %2363 = vmatpush1.bf16.msra.mxu0 %v4730_v36 }
 0x581   :  { %2323 = vmatprep.subr.bf16.mxu1 %v4734_v40  ;;  %2364 = vmatprep.subr.bf16.mxu0 %v4737_v42 }
 0x584   :  { %2324 = vmatpush1.bf16.msra.mxu1 %v4741_v44  ;;  %2365 = vmatpush1.bf16.msra.mxu0 %v4745_v54 }
 0x585   :  { %2325 = vmatprep.subr.bf16.mxu1 %v4747_v55  ;;  %2366 = vmatprep.subr.bf16.mxu0 %v4750_v56 }
 0x588   :  { %2326 = vmatpush1.bf16.msra.mxu1 %v4753_v57  ;;  %2367 = vmatpush1.bf16.msra.mxu0 %v4757_v59 }
 0x589   :  { %2327 = vmatprep.subr.bf16.mxu1 %v4759_v60  ;;  %2368 = vmatprep.subr.bf16.mxu0 %v4762_v61 }
 0x58c   :  { %2328 = vmatpush1.bf16.msra.mxu1 %v4765_v62  ;;  %2369 = vmatpush1.bf16.msra.mxu0 %v4769_v22 }
 0x58d   :  { %2621 = vmatprep.subr.bf16.mxu1 %v4578_v46  ;;  %2662 = vmatprep.subr.bf16.mxu0 %v4580_v45 }
 0x642   :  { %v2039_v12 = vpop.f32.mrb[28].mxu1  ;;  %v2080_v31 = vpop.f32.mrb[32].mxu0 }
 0x643   :  { %v2087_v63 = vadd.f32 %v2039_v12, %v732_v30  ;;  %v2089_v34 = vadd.f32 %v2080_v31, %v805_v14  ;;  %v2041_v13 = vpop.f32.mrb[29].mxu1  ;;  %v2082_v46 = vpop.f32.mrb[33].mxu0 }
 0x644   :  { %v2088_v29 = vadd.f32 %v2041_v13, %v734_v15  ;;  %v2090_v45 = vadd.f32 %v2082_v46, %v807_v58  ;;  %v2043_v28 = vpop.f32.mrb[30].mxu1  ;;  %v2084_v16 = vpop.f32.mrb[34].mxu0 }
 0x645   :  { %v3449_v0 = vmul.f32 -1.442695, %v2087_v63  ;;  %v2044_v17 = vpop.f32.mrb[31].mxu1  ;;  %v2085_v18 = vpop.f32.mrb[35].mxu0 }
 0x646   :  { %v3450_v3 = vmul.f32 -1.442695, %v2088_v29  ;;  %v3451_v10 = vmul.f32 -1.442695, %v2090_v45 }
 0x647   :  { %3868 = vpow2.f32 %v3449_v0 }
 0x648   :  { %3870 = vpow2.f32 %v3450_v3 }
 0x649   :  { %3872 = vpow2.f32 %v3451_v10 }
 0x64a   :  { %3874 = vtanh.f32 %v2089_v34 }
 0x651   :  { %v3869_v19 = vpop.eup %3868 }
 0x652   :  { %v3871_v25 = vpop.eup %3870  ;;  %v2094_v20 = vadd.f32 1.0, %v3869_v19 }
 0x653   :  { %v2100_v9 = vadd.f32 1.0, %v3871_v25  ;;  %v3873_v27 = vpop.eup %3872 }
 0x654   :  { %3876 = vrcp.f32 %v2094_v20  ;;  %v3875_v30 = vpop.eup %3874  ;;  %v2107_v12 = vadd.f32 1.0, %v3873_v27 }
 0x655   :  { %3878 = vrcp.f32 %v2100_v9 }
 0x656   :  { %3880 = vrcp.f32 %v2107_v12 }
 0x65e   :  { %v3877_v14 = vpop.eup %3876 }
 0x65f   :  { %v3879_v15 = vpop.eup %3878  ;;  %v2111_v58 = vmul.f32 %v3877_v14, %v3875_v30 }
 0x660   :  { %v2110_v31 = vmul.f32 %v3879_v15, %v4703_v23  ;;  %v3881_v13 = vpop.eup %3880 }
 0x662   :  { %v4785_v63 = vadd.f32 %v2111_v58, %v2110_v31 }
 0x664   :  { %3882 = vtanh.f32 %v4785_v63 }
 0x66e   :  { %v3883_v46 = vpop.eup %3882 }
 0x66f   :  { %v4788_v29 = vmul.f32 %v3883_v46, %v3881_v13 }
 0x671   :  { %v2120_v34 = vpack.c.bf16 %v4788_v29, %v4788_v29 }
 0x673   :  { %2346 = vmatmul.mubr.bf16.vlgmr.msra.gmra.mrb[32].mxu1 %v2120_v34  ;;  %2387 = vmatmul.mubr.bf16.vlgmr.msra.gmra.mrb[36].mxu0 %v2120_v34 }
 0x674   :  { %2622 = vmatpush1.bf16.msra.mxu1 %v4582_v49  ;;  %2663 = vmatpush1.bf16.msra.mxu0 %v4584_v50  ;;  %v736_v49 = vadd.f32 %v4536_v21, %v4453_v47  ;;  %v4960_v50 = vld [vmem:[#allocation27_spill] sm:$0xff] }
 0x675   :  { %2623 = vmatprep.subr.bf16.mxu1 %v4590_v53  ;;  %2664 = vmatprep.subr.bf16.mxu0 %v4592_v1  ;;  %v809_v53 = vadd.f32 %v4960_v50, %v4470_v24  ;;  %v4961_v1 = vld [vmem:[#allocation28_spill] sm:$0xff] }
 0x676   :  { %2653 = vmatprep.mubr.bf16.mxu1 %v4959_v38  ;;  %2694 = vmatprep.mubr.bf16.mxu0 %v4959_v38 }
 0x678   :  { %2624 = vmatpush1.bf16.msra.mxu1 %v4594_v2  ;;  %2665 = vmatpush1.bf16.msra.mxu0 %v4596_v6  ;;  %v738_v2 = vadd.f32 %v4961_v1, %v4455_v48  ;;  %v4962_v6 = vld [vmem:[#allocation29_spill] sm:$0xff] }
 0x679   :  { %2625 = vmatprep.subr.bf16.mxu1 %v4652_v4  ;;  %2666 = vmatprep.subr.bf16.mxu0 %v4654_v37  ;;  %v811_v23 = vadd.f32 %v4962_v6, %v4467_v11 }
 0x67c   :  { %2626 = vmatpush1.bf16.msra.mxu1 %v4656_v5  ;;  %2667 = vmatpush1.bf16.msra.mxu0 %v4658_v33 }
 0x67d   :  { %2627 = vmatprep.subr.bf16.mxu1 %v4664_v7  ;;  %2668 = vmatprep.subr.bf16.mxu0 %v4666_v32 }
 0x680   :  { %2628 = vmatpush1.bf16.msra.mxu1 %v4668_v52  ;;  %2669 = vmatpush1.bf16.msra.mxu0 %v4670_v8 }
 0x681   :  { %2629 = vmatprep.subr.bf16.mxu1 %v4728_v35  ;;  %2670 = vmatprep.subr.bf16.mxu0 %v4732_v39 }
 0x684   :  { %2630 = vmatpush1.bf16.msra.mxu1 %v4726_v26  ;;  %2671 = vmatpush1.bf16.msra.mxu0 %v4730_v36 }
 0x685   :  { %2631 = vmatprep.subr.bf16.mxu1 %v4734_v40  ;;  %2672 = vmatprep.subr.bf16.mxu0 %v4737_v42 }
 0x688   :  { %2632 = vmatpush1.bf16.msra.mxu1 %v4741_v44  ;;  %2673 = vmatpush1.bf16.msra.mxu0 %v4745_v54 }
 0x689   :  { %2633 = vmatprep.subr.bf16.mxu1 %v4747_v55  ;;  %2674 = vmatprep.subr.bf16.mxu0 %v4750_v56 }
 0x68c   :  { %2634 = vmatpush1.bf16.msra.mxu1 %v4753_v57  ;;  %2675 = vmatpush1.bf16.msra.mxu0 %v4757_v59 }
 0x68d   :  { %2635 = vmatprep.subr.bf16.mxu1 %v4759_v60  ;;  %2676 = vmatprep.subr.bf16.mxu0 %v4762_v61 }
 0x690   :  { %2636 = vmatpush1.bf16.msra.mxu1 %v4765_v62  ;;  %2677 = vmatpush1.bf16.msra.mxu0 %v4769_v22 }
 0x746   :  { %v2347_v45 = vpop.f32.mrb[32].mxu1  ;;  %v2388_v28 = vpop.f32.mrb[36].mxu0 }
 0x747   :  { %v2395_v16 = vadd.f32 %v2347_v45, %v736_v49  ;;  %v2397_v0 = vadd.f32 %v2388_v28, %v809_v53  ;;  %v2349_v17 = vpop.f32.mrb[33].mxu1  ;;  %v2390_v18 = vpop.f32.mrb[37].mxu0  ;;  %v3794_v28 = vld [vmem:[#allocation16 + $0x4] ss:$16 sps:$4 sm:$0xff]  }
 0x748   :  { %v2396_v3 = vadd.f32 %v2349_v17, %v738_v2  ;;  %v2398_v10 = vadd.f32 %v2390_v18, %v811_v23  ;;  %v2351_v19 = vpop.f32.mrb[34].mxu1  ;;  %v2392_v25 = vpop.f32.mrb[38].mxu0  ;;  %2929 = vmatprep.subr.bf16.mxu1 %v3794_v28  ;;  %v3800_v17 = vld [vmem:[#allocation16 + $0x24] ss:$16 sps:$4 sm:$0xff]   ;;  %v3803_v18 = vld [vmem:[#allocation16 + $0x2c] ss:$16 sps:$4 sm:$0xff]  }
 0x749   :  { %v3484_v21 = vmul.f32 -1.442695, %v2395_v16  ;;  %v2352_v20 = vpop.f32.mrb[35].mxu1  ;;  %v2393_v9 = vpop.f32.mrb[39].mxu0  ;;  %v3792_v16 = vld [vmem:[#allocation16] ss:$16 sps:$4 sm:$0xff]  }
 0x74a   :  { %v3485_v27 = vmul.f32 -1.442695, %v2396_v3  ;;  %v3486_v30 = vmul.f32 -1.442695, %v2398_v10  ;;  %v3798_v3 = vld [vmem:[#allocation16 + $0x20] ss:$16 sps:$4 sm:$0xff]  }
 0x74b   :  { %3884 = vpow2.f32 %v3484_v21  ;;  %v3801_v10 = vld [vmem:[#allocation16 + $0x28] ss:$16 sps:$4 sm:$0xff]  }
 0x74c   :  { %3886 = vpow2.f32 %v3485_v27 }
 0x74d   :  { %3888 = vpow2.f32 %v3486_v30 }
 0x74e   :  { %3890 = vtanh.f32 %v2397_v0  ;;  %v3795_v0 = vld [vmem:[#allocation16 + $0x8] ss:$16 sps:$4 sm:$0xff]  }
 0x755   :  { %v3885_v14 = vpop.eup %3884 }
 0x756   :  { %v3887_v15 = vpop.eup %3886  ;;  %v2402_v58 = vadd.f32 1.0, %v3885_v14 }
 0x757   :  { %v2408_v12 = vadd.f32 1.0, %v3887_v15  ;;  %v3889_v31 = vpop.eup %3888 }
 0x758   :  { %3892 = vrcp.f32 %v2402_v58  ;;  %v3891_v13 = vpop.eup %3890  ;;  %v2415_v50 = vadd.f32 1.0, %v3889_v31 }
 0x759   :  { %3894 = vrcp.f32 %v2408_v12 }
 0x75a   :  { %3896 = vrcp.f32 %v2415_v50 }
 0x762   :  { %v3893_v46 = vpop.eup %3892 }
 0x763   :  { %v3895_v34 = vpop.eup %3894  ;;  %v2419_v49 = vmul.f32 %v3893_v46, %v3891_v13 }
 0x764   :  { %v2418_v53 = vmul.f32 %v3895_v34, %v4785_v63  ;;  %v3897_v2 = vpop.eup %3896  ;;  %v3797_v63 = vld [vmem:[#allocation16 + $0xc] ss:$16 sps:$4 sm:$0xff]  }
 0x765   :  { %2970 = vmatprep.subr.bf16.mxu0 %v3797_v63 }
 0x766   :  { %v4833_v1 = vadd.f32 %v2419_v49, %v2418_v53 }
 0x768   :  { %3898 = vtanh.f32 %v4833_v1 }
 0x772   :  { %v3899_v6 = vpop.eup %3898 }
 0x773   :  { %v4836_v23 = vmul.f32 %v3899_v6, %v3897_v2 }
 0x775   :  { %v2428_v45 = vpack.c.bf16 %v4836_v23, %v4836_v23 }
 0x777   :  { %2654 = vmatmul.mubr.bf16.vlgmr.msra.gmra.mrb[36].mxu1 %v2428_v45  ;;  %2695 = vmatmul.mubr.bf16.vlgmr.msra.gmra.mrb[40].mxu0 %v2428_v45 }
 0x778   :  { %2961 = vmatprep.mubr.bf16.mxu1 %v4959_v38  ;;  %3002 = vmatprep.mubr.bf16.mxu0 %v4959_v38  ;;  %v4963_v38 = vld [vmem:[#allocation30_spill] sm:$0xff] }
 0x779   :  { %2930 = vmatpush1.bf16.msra.mxu1 %v3792_v16  ;;  %2971 = vmatpush1.bf16.msra.mxu0 %v3795_v0 }
 0x77a   :  { %2931 = vmatprep.subr.bf16.mxu1 %v3800_v17  ;;  %2972 = vmatprep.subr.bf16.mxu0 %v3803_v18 }
 0x77d   :  { %2932 = vmatpush1.bf16.msra.mxu1 %v3798_v3  ;;  %2973 = vmatpush1.bf16.msra.mxu0 %v3801_v10 }
 0x77e   :  { %2933 = vmatprep.subr.bf16.mxu1 %v4652_v4  ;;  %2974 = vmatprep.subr.bf16.mxu0 %v4654_v37  ;;  %v742_v4 = vadd.f32 %v4963_v38, %v4453_v47  ;;  %v4964_v37 = vld [vmem:[#allocation31_spill] sm:$0xff] }
 0x781   :  { %2934 = vmatpush1.bf16.msra.mxu1 %v4656_v5  ;;  %2975 = vmatpush1.bf16.msra.mxu0 %v4658_v33  ;;  %v815_v5 = vadd.f32 %v4964_v37, %v4470_v24  ;;  %v4965_v33 = vld [vmem:[#allocation32_spill] sm:$0xff] }
 0x782   :  { %2935 = vmatprep.subr.bf16.mxu1 %v4664_v7  ;;  %2976 = vmatprep.subr.bf16.mxu0 %v4666_v32  ;;  %v744_v7 = vadd.f32 %v4965_v33, %v4455_v48  ;;  %v4966_v32 = vld [vmem:[#allocation33_spill] sm:$0xff] }
 0x785   :  { %2936 = vmatpush1.bf16.msra.mxu1 %v4668_v52  ;;  %2977 = vmatpush1.bf16.msra.mxu0 %v4670_v8  ;;  %v817_v52 = vadd.f32 %v4966_v32, %v4467_v11 }
 0x786   :  { %2937 = vmatprep.subr.bf16.mxu1 %v4728_v35  ;;  %2978 = vmatprep.subr.bf16.mxu0 %v4732_v39 }
 0x789   :  { %2938 = vmatpush1.bf16.msra.mxu1 %v4726_v26  ;;  %2979 = vmatpush1.bf16.msra.mxu0 %v4730_v36 }
 0x78a   :  { %2939 = vmatprep.subr.bf16.mxu1 %v4734_v40  ;;  %2980 = vmatprep.subr.bf16.mxu0 %v4737_v42 }
 0x78d   :  { %2940 = vmatpush1.bf16.msra.mxu1 %v4741_v44  ;;  %2981 = vmatpush1.bf16.msra.mxu0 %v4745_v54 }
 0x78e   :  { %2941 = vmatprep.subr.bf16.mxu1 %v4747_v55  ;;  %2982 = vmatprep.subr.bf16.mxu0 %v4750_v56 }
 0x791   :  { %2942 = vmatpush1.bf16.msra.mxu1 %v4753_v57  ;;  %2983 = vmatpush1.bf16.msra.mxu0 %v4757_v59 }
 0x792   :  { %2943 = vmatprep.subr.bf16.mxu1 %v4759_v60  ;;  %2984 = vmatprep.subr.bf16.mxu0 %v4762_v61 }
 0x795   :  { %2944 = vmatpush1.bf16.msra.mxu1 %v4765_v62  ;;  %2985 = vmatpush1.bf16.msra.mxu0 %v4769_v22 }
 0x84a   :  { %v2655_v8 = vpop.f32.mrb[36].mxu1  ;;  %v2696_v26 = vpop.f32.mrb[40].mxu0 }
 0x84b   :  { %v2703_v35 = vadd.f32 %v2655_v8, %v742_v4  ;;  %v2705_v36 = vadd.f32 %v2696_v26, %v815_v5  ;;  %v2657_v39 = vpop.f32.mrb[37].mxu1  ;;  %v2698_v40 = vpop.f32.mrb[41].mxu0 }
 0x84c   :  { %v2704_v42 = vadd.f32 %v2657_v39, %v744_v7  ;;  %v2706_v44 = vadd.f32 %v2698_v40, %v817_v52  ;;  %v2659_v54 = vpop.f32.mrb[38].mxu1  ;;  %v2700_v55 = vpop.f32.mrb[42].mxu0 }
 0x84d   :  { %v3519_v56 = vmul.f32 -1.442695, %v2703_v35  ;;  %v2660_v57 = vpop.f32.mrb[39].mxu1  ;;  %v2701_v59 = vpop.f32.mrb[43].mxu0 }
 0x84e   :  { %v3520_v60 = vmul.f32 -1.442695, %v2704_v42  ;;  %v3521_v61 = vmul.f32 -1.442695, %v2706_v44 }
 0x84f   :  { %3900 = vpow2.f32 %v3519_v56 }
 0x850   :  { %3902 = vpow2.f32 %v3520_v60 }
 0x851   :  { %3904 = vpow2.f32 %v3521_v61 }
 0x852   :  { %3906 = vtanh.f32 %v2705_v36 }
 0x859   :  { %v3901_v62 = vpop.eup %3900 }
 0x85a   :  { %v3903_v22 = vpop.eup %3902  ;;  %v2710_v19 = vadd.f32 1.0, %v3901_v62 }
 0x85b   :  { %v2716_v25 = vadd.f32 1.0, %v3903_v22  ;;  %v3905_v21 = vpop.eup %3904 }
 0x85c   :  { %3908 = vrcp.f32 %v2710_v19  ;;  %v3907_v20 = vpop.eup %3906  ;;  %v2723_v14 = vadd.f32 1.0, %v3905_v21 }
 0x85d   :  { %3910 = vrcp.f32 %v2716_v25 }
 0x85e   :  { %3912 = vrcp.f32 %v2723_v14 }
 0x866   :  { %v3909_v9 = vpop.eup %3908 }
 0x867   :  { %v3911_v27 = vpop.eup %3910  ;;  %v2727_v30 = vmul.f32 %v3909_v9, %v3907_v20 }
 0x868   :  { %v2726_v15 = vmul.f32 %v3911_v27, %v4833_v1  ;;  %v3913_v12 = vpop.eup %3912 }
 0x86a   :  { %v2728_v58 = vadd.f32 %v2727_v30, %v2726_v15 }
 0x86c   :  { %3914 = vtanh.f32 %v2728_v58 }
 0x876   :  { %v3915_v31 = vpop.eup %3914 }
 0x877   :  { %v4875_v13 = vmul.f32 %v3915_v31, %v3913_v12 }
 0x879   :  { %v2736_v46 = vpack.c.bf16 %v4875_v13, %v4875_v13 }
 0x87b   :  { %2962 = vmatmul.mubr.bf16.vlgmr.msra.gmra.mrb[40].mxu1 %v2736_v46  ;;  %3003 = vmatmul.mubr.bf16.vlgmr.msra.gmra.mrb[44].mxu0 %v2736_v46 }
 0x87c   :  { %4061 = shalt.err (!%p4058_p3)  }
 0x87d   :  { %s4062_s15 = scalar_lea.vmem %s110_s28, 1024  ;;  %p4067_p5 = scmp.lt.s32.totalorder %s110_s28, %s110_s28 }
 0x87e   :  { %p4063_p4 = scmp.ne.s32.totalorder %s110_s28, %s4062_s15  ;;  %p4068_p6 = scmp.lt.s32.totalorder %s4062_s15, %s4062_s15 }
 0x880   :  { %p4069_p7 = por %p4068_p6, %p4067_p5 }
 0x882   :  { %p4070_p8 = pnand %p4069_p7, %p4063_p4 }
 0x884   :  { %4073 = shalt.err (!%p4070_p8)  }
 0x885   :  { %112 = dma.hbm_to_vmem [thread:$0]  %s4941_s8, 1024, %s110_s28, [#allocation6]  ;;  %v4967_v34 = vld [vmem:[#allocation34_spill] sm:$0xff]  ;;  %v4968_v50 = vld [vmem:[#allocation35_spill] sm:$0xff]  ;;  %v4969_v1 = vld [vmem:[#allocation36_spill] sm:$0xff] }
 0x886   :  { %v746_v49 = vadd.f32 %v4967_v34, %v4453_v47  ;;  %v819_v53 = vadd.f32 %v4968_v50, %v4470_v24  ;;  %v748_v2 = vadd.f32 %v4969_v1, %v4455_v48  ;;  %v4970_v6 = vld [vmem:[#allocation37_spill] sm:$0xff] }
 0x887   :  { %v821_v45 = vadd.f32 %v4970_v6, %v4467_v11 }
 0x94e   :  { %v2963_v28 = vpop.f32.mrb[40].mxu1  ;;  %v3004_v63 = vpop.f32.mrb[44].mxu0 }
 0x94f   :  { %v3011_v16 = vadd.f32 %v2963_v28, %v746_v49  ;;  %v3013_v0 = vadd.f32 %v3004_v63, %v819_v53  ;;  %v2965_v17 = vpop.f32.mrb[41].mxu1  ;;  %v3006_v18 = vpop.f32.mrb[45].mxu0 }
 0x950   :  { %v3012_v3 = vadd.f32 %v2965_v17, %v748_v2  ;;  %v3014_v10 = vadd.f32 %v3006_v18, %v821_v45  ;;  %v2967_v38 = vpop.f32.mrb[42].mxu1  ;;  %v3008_v4 = vpop.f32.mrb[46].mxu0 }
 0x951   :  { %v3554_v47 = vmul.f32 -1.442695, %v3011_v16  ;;  %v2968_v37 = vpop.f32.mrb[43].mxu1  ;;  %v3009_v5 = vpop.f32.mrb[47].mxu0 }
 0x952   :  { %v3555_v24 = vmul.f32 -1.442695, %v3012_v3  ;;  %v3556_v48 = vmul.f32 -1.442695, %v3014_v10 }
 0x953   :  { %3916 = vpow2.f32 %v3554_v47 }
 0x954   :  { %3918 = vpow2.f32 %v3555_v24 }
 0x955   :  { %3920 = vpow2.f32 %v3556_v48 }
 0x956   :  { %3922 = vtanh.f32 %v3013_v0 }
 0x95d   :  { %v3917_v33 = vpop.eup %3916 }
 0x95e   :  { %v3919_v7 = vpop.eup %3918  ;;  %v3018_v11 = vadd.f32 1.0, %v3917_v33 }
 0x95f   :  { %v3024_v32 = vadd.f32 1.0, %v3919_v7  ;;  %v3921_v52 = vpop.eup %3920 }
 0x960   :  { %3924 = vrcp.f32 %v3018_v11  ;;  %v3923_v8 = vpop.eup %3922  ;;  %v3031_v39 = vadd.f32 1.0, %v3921_v52 }
 0x961   :  { %3926 = vrcp.f32 %v3024_v32 }
 0x962   :  { %3928 = vrcp.f32 %v3031_v39 }
 0x96a   :  { %v3925_v26 = vpop.eup %3924 }
 0x96b   :  { %v3927_v35 = vpop.eup %3926  ;;  %v3035_v36 = vmul.f32 %v3925_v26, %v3923_v8 }
 0x96c   :  { %v3034_v40 = vmul.f32 %v3927_v35, %v2728_v58  ;;  %v3929_v44 = vpop.eup %3928 }
 0x96e   :  { %v3036_v42 = vadd.f32 %v3035_v36, %v3034_v40 }
 0x970   :  { %3930 = vtanh.f32 %v3036_v42 }
 0x97a   :  { %v3931_v54 = vpop.eup %3930 }
 0x97b   :  { %v3038_v55 = vmul.f32 %v3931_v54, %v3929_v44 }
 0x97c   :  { %4082 = dma.done.wait [#allocation6], 1024 }
 0x97d   :  { %4083 = vsyncadd [#allocation6], 4294966272  ;;  %v4971_v56 = vld [vmem:[#allocation26_spill] sm:$0xff]  ;;  %v3056_v59 = vld [vmem:[#allocation5] sm:$0xff]  ;;  %v3053_v21 = vpack.c.bf16 %v4706_v43, %v4640_v51  ;;  %v3054_v20 = vpack.c.bf16 %v4836_v23, %v4788_v29  ;;  %v3055_v9 = vpack.c.bf16 %v3038_v55, %v4875_v13 }
 0x97e   :  { %v3052_v57 = vpack.c.bf16 %v4572_v41, %v4971_v56  ;;  %v3057_v60 = vld [vmem:[#allocation5 + $0x8] sm:$0xff]  ;;  %3600 = vmatprep.subr.bf16.mxu1 %v3056_v59  ;;  %v3058_v61 = vld [vmem:[#allocation5 + $0x10] sm:$0xff]  ;;  %v3059_v62 = vld [vmem:[#allocation5 + $0x18] sm:$0xff] }
 0x97f   :  { %3601 = vmatpush3.bf16.msra.mxu1 %v3056_v59  ;;  %v3060_v22 = vld [vmem:[#allocation5 + $0x20] sm:$0xff]  ;;  %v3061_v19 = vld [vmem:[#allocation5 + $0x28] sm:$0xff]  ;;  %v3062_v25 = vld [vmem:[#allocation5 + $0x30] sm:$0xff] }
 0x980   :  { %3616 = vmatprep.mubr.bf16.mxu1 %v3052_v57  ;;  %3602 = vmatprep.subr.bf16.mxu1 %v3057_v60  ;;  %v3063_v41 = vld [vmem:[#allocation5 + $0x38] sm:$0xff]  ;;  %v3557_v27 = vld [vmem:[%s4942_s9] ss:$0 sm:$0xff] }
 0x983   :  { %3603 = vmatpush3.bf16.msra.mxu1 %v3057_v60 }
 0x984   :  { %3604 = vmatprep.subr.bf16.mxu1 %v3058_v61 }
 0x987   :  { %3605 = vmatpush3.bf16.msra.mxu1 %v3058_v61 }
 0x988   :  { %3606 = vmatprep.subr.bf16.mxu1 %v3059_v62 }
 0x98b   :  { %3607 = vmatpush3.bf16.msra.mxu1 %v3059_v62 }
 0x98c   :  { %3608 = vmatprep.subr.bf16.mxu1 %v3060_v22 }
 0x98f   :  { %3609 = vmatpush3.bf16.msra.mxu1 %v3060_v22 }
 0x990   :  { %3610 = vmatprep.subr.bf16.mxu1 %v3061_v19 }
 0x993   :  { %3611 = vmatpush3.bf16.msra.mxu1 %v3061_v19 }
 0x994   :  { %3612 = vmatprep.subr.bf16.mxu1 %v3062_v25 }
 0x997   :  { %3613 = vmatpush3.bf16.msra.mxu1 %v3062_v25 }
 0x998   :  { %3614 = vmatprep.subr.bf16.mxu1 %v3063_v41 }
 0x99b   :  { %3615 = vmatpush3.bf16.msra.mxu1 %v3063_v41 }
 0x99e   :  { %3617 = vmatmul.mubr.bf16.vlgmr.msra.gmra.mrb[44].mxu1 %v3053_v21 }
 0x99f   :  { %3620 = vmatprep.mubr.bf16.mxu1 %v3054_v20 }
 0x9a6   :  { %3621 = vmatmul.mubr.bf16.gmra.mrb[48].mxu1 %v3055_v9 }
 0xa71   :  { %v3618_v30 = vpop.f32.mrb[44].mxu1 }
 0xa72   :  { %v3114_v14 = vadd.f32 %v3618_v30, %v3557_v27  ;;  %v3105_v15 = vpop.f32.mrb[45].mxu1 }
 0xa73   :  { %v3106_v58 = vadd.f32 %v3557_v27, %v3105_v15  ;;  %v3619_v12 = vpop.f32.mrb[46].mxu1 }
 0xa74   :  { %3138 = vst [vmem:[%s4943_s10 + $0x10] sm:$0xff] %v3114_v14  ;;  %v3117_v51 = vadd.f32 %v3619_v12, %v3557_v27  ;;  %v3108_v43 = vpop.f32.mrb[47].mxu1 }
 0xa75   :  { %3136 = vst [vmem:[%s4943_s10] sm:$0xff] %v3106_v58  ;;  %v3109_v29 = vadd.f32 %v3557_v27, %v3108_v43 }
 0xa76   :  { %3139 = vst [vmem:[%s4943_s10 + $0x18] sm:$0xff] %v3117_v51 }
 0xa77   :  { %3137 = vst [vmem:[%s4943_s10 + $0x8] sm:$0xff] %v3109_v29 }
 0xa79   :  { %v3622_v23 = vpop.f32.mrb[48].mxu1 }
 0xa7a   :  { %v3130_v31 = vadd.f32 %v3622_v23, %v3557_v27  ;;  %v3121_v13 = vpop.f32.mrb[49].mxu1 }
 0xa7b   :  { %v3122_v46 = vadd.f32 %v3557_v27, %v3121_v13  ;;  %v3623_v34 = vpop.f32.mrb[50].mxu1 }
 0xa7c   :  { %3142 = vst [vmem:[%s4943_s10 + $0x30] sm:$0xff] %v3130_v31  ;;  %v3133_v49 = vadd.f32 %v3623_v34, %v3557_v27  ;;  %v3124_v50 = vpop.f32.mrb[51].mxu1 }
 0xa7d   :  { %3140 = vst [vmem:[%s4943_s10 + $0x20] sm:$0xff] %v3122_v46  ;;  %v3125_v53 = vadd.f32 %v3557_v27, %v3124_v50 }
 0xa7e   :  { %3143 = vst [vmem:[%s4943_s10 + $0x38] sm:$0xff] %v3133_v49 }
 0xa7f   :  { %3141 = vst [vmem:[%s4943_s10 + $0x28] sm:$0xff] %v3125_v53 }
 0xa80   :  { %3148 = vsyncpa [#allocation10], 1 }
 0xa81   :  { %3149 = vsyncpa [#allocation12], 1 }
 0xa82   :  { %3150 = vsyncpa [#allocation15], 1 }
 0xa83   :  { %3151 = vsyncmov [#allocation6] }
 0xa86   :  { %s3152_s7 = vpop.sfrf %3151 }
 0xa87   :  { %p3558_p9 = scmp.ne.s32.totalorder %s3152_s7, 0 }
 0xa89   :  { %3156 = shalt.err (%p3558_p9)  }

</bundles_post_ra>
